<compile_context>
chip_gen: v7x
topology: tpu7x:2x2x1
jax: 0.10.0
libtpu: 0.0.40
codegen_flags: <defaults>
</compile_context>

<pallas_src>
import functools

import numpy as np
import jax
import jax.numpy as jnp
from jax import lax
from jax.experimental import pallas as pl
from jax.experimental.pallas import tpu as pltpu


# --------------------------------------------------------------------------
# Fused kernel: normalize -> 2 MXU matmuls -> pair relayout -> DP -> backtrace
# --------------------------------------------------------------------------
def _fused_dtw_kernel(x_ref, y_ref, mask_ref,
                      sn_ref, sr_ref, pair_ref, code_ref,
                      *, c, f, b_pad, r_sub):
    """x_ref: (c*b_pad, d) rows ordered (time i, batch m); y_ref likewise for
    (time j, batch n).  mask_ref / pair_ref / code_ref: (c*f, r_sub, 128)
    where the per-cell tile [r, k*b_pad + n] holds pair (m = k*r_sub + r, n).
    """
    lanes = 128
    k_chunks = lanes // b_pad

    # ---- 1. normalization (VPU + EUP rsqrt) and the two similarity matmuls
    x = x_ref[...]
    y = y_ref[...]
    xn = x * lax.rsqrt(jnp.maximum(jnp.sum(x * x, axis=-1, keepdims=True), 1e-30))
    yn = y * lax.rsqrt(jnp.maximum(jnp.sum(y * y, axis=-1, keepdims=True), 1e-30))
    contract = (((1,), (1,)), ((), ()))        # contract feature dim of both
    # dt for j <= i uses normalized y (reference's in-place normalization),
    # dt for j >  i uses raw y; both matmuls are tiny, so compute both exactly.
    sn_ref[...] = lax.dot_general(xn, yn, contract,
                                  preferred_element_type=jnp.float32)
    sr_ref[...] = lax.dot_general(xn, y, contract,
                                  preferred_element_type=jnp.float32)

    # ---- 2. relayout into per-cell (r_sub, 128) pair tiles ----------------
    # pair tile [r, k*b_pad + n] <- sim[row = (i-1)*b_pad + k*r_sub + r,
    #                                   col = (j-1)*b_pad + n]
    for i in range(1, c + 1):
        for j in range(1, f + 1):
            cell = (i - 1) * f + (j - 1)
            src = sn_ref if j <= i else sr_ref
            for k in range(k_chunks):
                r0 = (i - 1) * b_pad + k * r_sub
                c0 = (j - 1) * b_pad
                pair_ref[cell, :, k * b_pad:(k + 1) * b_pad] = \
                    src[r0:r0 + r_sub, c0:c0 + b_pad]

    # ---- 3. forward DP (fully unrolled; each statement = one-tile VPU op) --
    tile = (r_sub, lanes)
    neg_inf = jnp.full(tile, -jnp.inf, jnp.float32)
    zeros = jnp.zeros(tile, jnp.float32)
    prev_row = [zeros] + [neg_inf] * f           # D[0, 0..f]
    for i in range(1, c + 1):
        cur_row = [neg_inf]                      # D[i, 0]
        for j in range(1, f + 1):
            cell = (i - 1) * f + (j - 1)
            dt = pair_ref[cell]
            c_up, c_left, c_diag = prev_row[j], cur_row[j - 1], prev_row[j - 1]
            # first-max tie-break == Python max(..., key=...) order (up,left,diag)
            ge01 = c_up >= c_left
            best01 = jnp.where(ge01, c_up, c_left)
            code01 = jnp.where(ge01, 0.0, 1.0)
            ge = best01 >= c_diag
            cur_row.append(jnp.where(ge, best01, c_diag) + dt)
            # 0.0 -> came from (i-1,j), 1.0 -> (i,j-1), 2.0 -> (i-1,j-1)
            code_ref[cell] = jnp.where(ge, code01, 2.0)
        prev_row = cur_row

    # ---- 4. backtrace as reverse row-major on-path propagation ------------
    # (i,j) is on the path iff it is (c,f) or a successor's backpointer
    # targets it; no per-lane gathers needed.
    nrow_on = [zeros] * (f + 2)
    nrow_code = [zeros] * (f + 2)
    for i in range(c, 0, -1):
        crow_on = [zeros] * (f + 2)
        crow_code = [zeros] * (f + 2)
        for j in range(f, 0, -1):
            cell = (i - 1) * f + (j - 1)
            code_ij = code_ref[cell]
            if i == c and j == f:
                on = jnp.ones(tile, jnp.float32)
            else:
                on = zeros
                if i + 1 <= c:
                    on = jnp.maximum(on, jnp.where(nrow_code[j] == 0.0,
                                                   nrow_on[j], 0.0))
                if j + 1 <= f:
                    on = jnp.maximum(on, jnp.where(crow_code[j + 1] == 1.0,
                                                   crow_on[j + 1], 0.0))
                if i + 1 <= c and j + 1 <= f:
                    on = jnp.maximum(on, jnp.where(nrow_code[j + 1] == 2.0,
                                                   nrow_on[j + 1], 0.0))
            crow_on[j] = on
            crow_code[j] = code_ij
            mask_ref[cell] = on
        nrow_on, nrow_code = crow_on, crow_code


# --------------------------------------------------------------------------
# Forward wrapper (only tiny XLA layout plumbing outside the fused kernel)
# --------------------------------------------------------------------------
def _next_pow2(n: int) -> int:
    return 1 << max(0, int(n) - 1).bit_length()


@jax.jit
def fast_dtw_forward(c_feats, f_feats):
    b, c, d = c_feats.shape
    b2, f, d2 = f_feats.shape
    assert b == b2 and d == d2
    assert c <= f, "reference fastdtw semantics require c <= f"
    assert b <= 128, "TODO(synk): batch > 128 needs a multi-tile pair layout"

    # batch padded to a power of two in [16, 128] so b_pad divides 128 and
    # all B*B pairs tile into (r_sub, 128) vreg blocks.
    b_pad = max(16, _next_pow2(b))
    r_sub = (b_pad * b_pad) // 128
    k_chunks = 128 // b_pad

    # reorder rows to (time, batch) so each DP cell's pair block is a
    # contiguous (b_pad, b_pad) window of the similarity matrix.
    x = jnp.transpose(c_feats.astype(jnp.float32), (1, 0, 2))   # (c, b, d)
    y = jnp.transpose(f_feats.astype(jnp.float32), (1, 0, 2))   # (f, b, d)
    if b_pad != b:
        x = jnp.pad(x, ((0, 0), (0, b_pad - b), (0, 0)))
        y = jnp.pad(y, ((0, 0), (0, b_pad - b), (0, 0)))
    x = x.reshape(c * b_pad, d)
    y = y.reshape(f * b_pad, d)

    kern = functools.partial(_fused_dtw_kernel, c=c, f=f,
                             b_pad=b_pad, r_sub=r_sub)
    mask_flat = pl.pallas_call(
        kern,
        grid=(1,),
        in_specs=[pl.BlockSpec((c * b_pad, d), lambda i: (0, 0)),
                  pl.BlockSpec((f * b_pad, d), lambda i: (0, 0))],
        out_specs=pl.BlockSpec((c * f, r_sub, 128), lambda i: (0, 0, 0)),
        out_shape=jax.ShapeDtypeStruct((c * f, r_sub, 128), jnp.float32),
        scratch_shapes=[
            pltpu.VMEM((c * b_pad, f * b_pad), jnp.float32),   # normalized sim
            pltpu.VMEM((c * b_pad, f * b_pad), jnp.float32),   # raw-y sim
            pltpu.VMEM((c * f, r_sub, 128), jnp.float32),      # pair-layout sim
            pltpu.VMEM((c * f, r_sub, 128), jnp.float32),      # DP backpointers
        ],
        compiler_params=pltpu.CompilerParams(
            dimension_semantics=("arbitrary",)),
    )(x, y)

    # unflatten pair layout: tile index (r, k*b_pad+n) -> (m = k*r_sub + r, n)
    mask = mask_flat.reshape(c, f, r_sub, k_chunks, b_pad)
    mask = jnp.transpose(mask, (3, 2, 4, 0, 1))        # (k, r, n, c, f)
    mask = mask.reshape(b_pad, b_pad, c, f)[:b, :b]    # (b, b, c, f)
    return mask


# --------------------------------------------------------------------------
# NumPy reference mirroring the PyTorch module exactly (for verification)
# --------------------------------------------------------------------------
def _ref_forward_numpy(c_feats, f_feats):
    from collections import defaultdict

    def fastdtw(x, y):
        x = np.asanyarray(x, dtype='float')
        y = np.asanyarray(y, dtype='float')
        len_x, len_y = len(x), len(y)
        D = defaultdict(lambda: (float('-inf'),))
        D[0, 0] = (0, 0, 0)
        for i in range(1, len_x + 1):
            for j in range(1, len_y + 1):
                x[i - 1] = x[i - 1] / np.linalg.norm(x[i - 1], axis=-1, keepdims=True)
                y[i - 1] = y[i - 1] / np.linalg.norm(y[i - 1], axis=-1, keepdims=True)
                dt = x[i - 1] @ y[j - 1]
                D[i, j] = max((D[i - 1, j][0] + dt, i - 1, j),
                              (D[i, j - 1][0] + dt, i, j - 1),
                              (D[i - 1, j - 1][0] + dt, i - 1, j - 1),
                              key=lambda a: a[0])
        path = []
        i, j = len_x, len_y
        while not i == j == 0:
            path.append((i - 1, j - 1))
            i, j = D[i, j][1], D[i, j][2]
        path.reverse()
        return D[len_x, len_y][0], path

    b, c = c_feats.shape[0], c_feats.shape[1]
    f = f_feats.shape[1]
    mask = np.zeros((b, b, c, f), dtype=np.float32)
    for m in range(b):
        for n in range(b):
            _, path = fastdtw(np.array(c_feats[m]), np.array(f_feats[n]))
            for i, j in path:
                mask[m, n, i, j] = 1
    return mask


if __name__ == "__main__":
    # module scale is (B, C, F, D) = (32, 3, 6, 512); keep B/C/F, shrink D.
    B, C, F, D = 32, 3, 6, 128
    key = jax.random.PRNGKey(0)
    k1, k2 = jax.random.split(key)
    c_feats = jax.random.normal(k1, (B, C, D), jnp.float32)
    f_feats = jax.random.normal(k2, (B, F, D), jnp.float32)

    mask = jax.block_until_ready(fast_dtw_forward(c_feats, f_feats))

    ref = _ref_forward_numpy(np.asarray(c_feats), np.asarray(f_feats))
    out = np.asarray(mask)
    assert out.shape == (B, B, C, F)
    assert np.all((out == 0.0) | (out == 1.0))
    assert np.all(out[:, :, C - 1, F - 1] == 1.0)   # path always ends at (c-1,f-1)
    # f32 MXU vs float64 NumPy accumulation can flip a rare near-tie
    # backpointer, so require path identity for (almost) all pairs rather
    # than bit-exact equality of every entry.
    pair_match = (out == ref).all(axis=(2, 3))
    frac = float(pair_match.mean())
    assert frac >= 0.99, f"only {frac:.4f} of pair paths match the reference"
    print("KERNEL_OK")
</pallas_src>

<mosaic_0001>
module attributes {stable_mosaic.version = 11 : i64} {
  func.func @_fused_dtw_kernel(%arg0: i32, %arg1: memref<96x128xf32, #tpu.memory_space<vmem>>, %arg2: memref<192x128xf32, #tpu.memory_space<vmem>>, %arg3: memref<18x8x128xf32, #tpu.memory_space<vmem>>, %arg4: memref<96x192xf32, #tpu.memory_space<vmem>>, %arg5: memref<96x192xf32, #tpu.memory_space<vmem>>, %arg6: memref<18x8x128xf32, #tpu.memory_space<vmem>>, %arg7: memref<18x8x128xf32, #tpu.memory_space<vmem>>) attributes {dimension_semantics = [#tpu.dimension_semantics<arbitrary>], iteration_bounds = array<i64: 1>, scalar_prefetch = 0 : i64, scratch_operands = 4 : i64, tpu.core_type = #tpu.core_type<tc>, window_params = [{pipeline_mode = #tpu.pipeline_mode<synchronous>, transform_indices = @transform_0, window_bounds = array<i64: 96, 128>}, {pipeline_mode = #tpu.pipeline_mode<synchronous>, transform_indices = @transform_1, window_bounds = array<i64: 192, 128>}, {pipeline_mode = #tpu.pipeline_mode<synchronous>, transform_indices = @transform_2, window_bounds = array<i64: 18, 8, 128>}]} {
    %c0 = arith.constant 0 : index
    %c0_0 = arith.constant 0 : index
    %0 = vector.load %arg1[%c0, %c0_0] : memref<96x128xf32, #tpu.memory_space<vmem>>, vector<96x128xf32>
    %c0_1 = arith.constant 0 : index
    %c0_2 = arith.constant 0 : index
    %1 = vector.load %arg2[%c0_1, %c0_2] : memref<192x128xf32, #tpu.memory_space<vmem>>, vector<192x128xf32>
    %2 = arith.mulf %0, %0 : vector<96x128xf32>
    %cst = arith.constant dense<0.000000e+00> : vector<96xf32>
    %3 = vector.multi_reduction <add>, %2, %cst [1] : vector<96x128xf32> to vector<96xf32>
    %4 = vector.shape_cast %3 : vector<96xf32> to vector<96x1xf32>
    %cst_3 = arith.constant 1.000000e-30 : f32
    %5 = vector.broadcast %cst_3 : f32 to vector<96x1xf32>
    %6 = arith.maximumf %4, %5 : vector<96x1xf32>
    %7 = math.rsqrt %6 : vector<96x1xf32>
    %8 = vector.broadcast %7 : vector<96x1xf32> to vector<96x128xf32>
    %9 = arith.mulf %0, %8 : vector<96x128xf32>
    %10 = arith.mulf %1, %1 : vector<192x128xf32>
    %cst_4 = arith.constant dense<0.000000e+00> : vector<192xf32>
    %11 = vector.multi_reduction <add>, %10, %cst_4 [1] : vector<192x128xf32> to vector<192xf32>
    %12 = vector.shape_cast %11 : vector<192xf32> to vector<192x1xf32>
    %cst_5 = arith.constant 1.000000e-30 : f32
    %13 = vector.broadcast %cst_5 : f32 to vector<192x1xf32>
    %14 = arith.maximumf %12, %13 : vector<192x1xf32>
    %15 = math.rsqrt %14 : vector<192x1xf32>
    %16 = vector.broadcast %15 : vector<192x1xf32> to vector<192x128xf32>
    %17 = arith.mulf %1, %16 : vector<192x128xf32>
    %cst_6 = arith.constant dense<0.000000e+00> : vector<96x192xf32>
    %18 = tpu.matmul %9, %17, %cst_6 {dimension_numbers = #tpu.dot_dimension_numbers<[1], [1], [0], [0], [0, 0, 1, 0], [], []>} : vector<96x128xf32>, vector<192x128xf32>, vector<96x192xf32> -> vector<96x192xf32>
    %c0_7 = arith.constant 0 : index
    %c0_8 = arith.constant 0 : index
    %19 = vector.load %arg4[%c0_7, %c0_8] : memref<96x192xf32, #tpu.memory_space<vmem>>, vector<96x192xf32>
    tpu.vector_store %arg4[%c0_7, %c0_8], %18 {strides = array<i32>} : memref<96x192xf32, #tpu.memory_space<vmem>>, vector<96x192xf32>,
    %cst_9 = arith.constant dense<0.000000e+00> : vector<96x192xf32>
    %20 = tpu.matmul %9, %1, %cst_9 {dimension_numbers = #tpu.dot_dimension_numbers<[1], [1], [0], [0], [0, 0, 1, 0], [], []>} : vector<96x128xf32>, vector<192x128xf32>, vector<96x192xf32> -> vector<96x192xf32>
    %c0_10 = arith.constant 0 : index
    %c0_11 = arith.constant 0 : index
    %21 = vector.load %arg5[%c0_10, %c0_11] : memref<96x192xf32, #tpu.memory_space<vmem>>, vector<96x192xf32>
    tpu.vector_store %arg5[%c0_10, %c0_11], %20 {strides = array<i32>} : memref<96x192xf32, #tpu.memory_space<vmem>>, vector<96x192xf32>,
    %c0_12 = arith.constant 0 : index
    %c0_13 = arith.constant 0 : index
    %22 = vector.load %arg4[%c0_12, %c0_13] : memref<96x192xf32, #tpu.memory_space<vmem>>, vector<8x32xf32>
    %c0_14 = arith.constant 0 : index
    %c0_15 = arith.constant 0 : index
    %c0_16 = arith.constant 0 : index
    %23 = vector.load %arg6[%c0_14, %c0_15, %c0_16] : memref<18x8x128xf32, #tpu.memory_space<vmem>>, vector<1x8x32xf32>
    %24 = vector.shape_cast %23 : vector<1x8x32xf32> to vector<8x32xf32>
    %25 = vector.shape_cast %22 : vector<8x32xf32> to vector<1x8x32xf32>
    tpu.vector_store %arg6[%c0_14, %c0_15, %c0_16], %25 {strides = array<i32>} : memref<18x8x128xf32, #tpu.memory_space<vmem>>, vector<1x8x32xf32>,
    %c8 = arith.constant 8 : index
    %c0_17 = arith.constant 0 : index
    %26 = vector.load %arg4[%c8, %c0_17] : memref<96x192xf32, #tpu.memory_space<vmem>>, vector<8x32xf32>
    %c0_18 = arith.constant 0 : index
    %c0_19 = arith.constant 0 : index
    %c32 = arith.constant 32 : index
    %27 = vector.load %arg6[%c0_18, %c0_19, %c32] : memref<18x8x128xf32, #tpu.memory_space<vmem>>, vector<1x8x32xf32>
    %28 = vector.shape_cast %27 : vector<1x8x32xf32> to vector<8x32xf32>
    %29 = vector.shape_cast %26 : vector<8x32xf32> to vector<1x8x32xf32>
    tpu.vector_store %arg6[%c0_18, %c0_19, %c32], %29 {strides = array<i32>} : memref<18x8x128xf32, #tpu.memory_space<vmem>>, vector<1x8x32xf32>,
    %c16 = arith.constant 16 : index
    %c0_20 = arith.constant 0 : index
    %30 = vector.load %arg4[%c16, %c0_20] : memref<96x192xf32, #tpu.memory_space<vmem>>, vector<8x32xf32>
    %c0_21 = arith.constant 0 : index
    %c0_22 = arith.constant 0 : index
    %c64 = arith.constant 64 : index
    %31 = vector.load %arg6[%c0_21, %c0_22, %c64] : memref<18x8x128xf32, #tpu.memory_space<vmem>>, vector<1x8x32xf32>
    %32 = vector.shape_cast %31 : vector<1x8x32xf32> to vector<8x32xf32>
    %33 = vector.shape_cast %30 : vector<8x32xf32> to vector<1x8x32xf32>
    tpu.vector_store %arg6[%c0_21, %c0_22, %c64], %33 {strides = array<i32>} : memref<18x8x128xf32, #tpu.memory_space<vmem>>, vector<1x8x32xf32>,
    %c24 = arith.constant 24 : index
    %c0_23 = arith.constant 0 : index
    %34 = vector.load %arg4[%c24, %c0_23] : memref<96x192xf32, #tpu.memory_space<vmem>>, vector<8x32xf32>
    %c0_24 = arith.constant 0 : index
    %c0_25 = arith.constant 0 : index
    %c96 = arith.constant 96 : index
    %35 = vector.load %arg6[%c0_24, %c0_25, %c96] : memref<18x8x128xf32, #tpu.memory_space<vmem>>, vector<1x8x32xf32>
    %36 = vector.shape_cast %35 : vector<1x8x32xf32> to vector<8x32xf32>
    %37 = vector.shape_cast %34 : vector<8x32xf32> to vector<1x8x32xf32>
    tpu.vector_store %arg6[%c0_24, %c0_25, %c96], %37 {strides = array<i32>} : memref<18x8x128xf32, #tpu.memory_space<vmem>>, vector<1x8x32xf32>,
    %c0_26 = arith.constant 0 : index
    %c32_27 = arith.constant 32 : index
    %38 = vector.load %arg5[%c0_26, %c32_27] : memref<96x192xf32, #tpu.memory_space<vmem>>, vector<8x32xf32>
    %c1 = arith.constant 1 : index
    %c0_28 = arith.constant 0 : index
    %c0_29 = arith.constant 0 : index
    %39 = vector.load %arg6[%c1, %c0_28, %c0_29] : memref<18x8x128xf32, #tpu.memory_space<vmem>>, vector<1x8x32xf32>
    %40 = vector.shape_cast %39 : vector<1x8x32xf32> to vector<8x32xf32>
    %41 = vector.shape_cast %38 : vector<8x32xf32> to vector<1x8x32xf32>
    tpu.vector_store %arg6[%c1, %c0_28, %c0_29], %41 {strides = array<i32>} : memref<18x8x128xf32, #tpu.memory_space<vmem>>, vector<1x8x32xf32>,
    %c8_30 = arith.constant 8 : index
    %c32_31 = arith.constant 32 : index
    %42 = vector.load %arg5[%c8_30, %c32_31] : memref<96x192xf32, #tpu.memory_space<vmem>>, vector<8x32xf32>
    %c1_32 = arith.constant 1 : index
    %c0_33 = arith.constant 0 : index
    %c32_34 = arith.constant 32 : index
    %43 = vector.load %arg6[%c1_32, %c0_33, %c32_34] : memref<18x8x128xf32, #tpu.memory_space<vmem>>, vector<1x8x32xf32>
    %44 = vector.shape_cast %43 : vector<1x8x32xf32> to vector<8x32xf32>
    %45 = vector.shape_cast %42 : vector<8x32xf32> to vector<1x8x32xf32>
    tpu.vector_store %arg6[%c1_32, %c0_33, %c32_34], %45 {strides = array<i32>} : memref<18x8x128xf32, #tpu.memory_space<vmem>>, vector<1x8x32xf32>,
    %c16_35 = arith.constant 16 : index
    %c32_36 = arith.constant 32 : index
    %46 = vector.load %arg5[%c16_35, %c32_36] : memref<96x192xf32, #tpu.memory_space<vmem>>, vector<8x32xf32>
    %c1_37 = arith.constant 1 : index
    %c0_38 = arith.constant 0 : index
    %c64_39 = arith.constant 64 : index
    %47 = vector.load %arg6[%c1_37, %c0_38, %c64_39] : memref<18x8x128xf32, #tpu.memory_space<vmem>>, vector<1x8x32xf32>
    %48 = vector.shape_cast %47 : vector<1x8x32xf32> to vector<8x32xf32>
    %49 = vector.shape_cast %46 : vector<8x32xf32> to vector<1x8x32xf32>
    tpu.vector_store %arg6[%c1_37, %c0_38, %c64_39], %49 {strides = array<i32>} : memref<18x8x128xf32, #tpu.memory_space<vmem>>, vector<1x8x32xf32>,
    %c24_40 = arith.constant 24 : index
    %c32_41 = arith.constant 32 : index
    %50 = vector.load %arg5[%c24_40, %c32_41] : memref<96x192xf32, #tpu.memory_space<vmem>>, vector<8x32xf32>
    %c1_42 = arith.constant 1 : index
    %c0_43 = arith.constant 0 : index
    %c96_44 = arith.constant 96 : index
    %51 = vector.load %arg6[%c1_42, %c0_43, %c96_44] : memref<18x8x128xf32, #tpu.memory_space<vmem>>, vector<1x8x32xf32>
    %52 = vector.shape_cast %51 : vector<1x8x32xf32> to vector<8x32xf32>
    %53 = vector.shape_cast %50 : vector<8x32xf32> to vector<1x8x32xf32>
    tpu.vector_store %arg6[%c1_42, %c0_43, %c96_44], %53 {strides = array<i32>} : memref<18x8x128xf32, #tpu.memory_space<vmem>>, vector<1x8x32xf32>,
    %c0_45 = arith.constant 0 : index
    %c64_46 = arith.constant 64 : index
    %54 = vector.load %arg5[%c0_45, %c64_46] : memref<96x192xf32, #tpu.memory_space<vmem>>, vector<8x32xf32>
    %c2 = arith.constant 2 : index
    %c0_47 = arith.constant 0 : index
    %c0_48 = arith.constant 0 : index
    %55 = vector.load %arg6[%c2, %c0_47, %c0_48] : memref<18x8x128xf32, #tpu.memory_space<vmem>>, vector<1x8x32xf32>
    %56 = vector.shape_cast %55 : vector<1x8x32xf32> to vector<8x32xf32>
    %57 = vector.shape_cast %54 : vector<8x32xf32> to vector<1x8x32xf32>
    tpu.vector_store %arg6[%c2, %c0_47, %c0_48], %57 {strides = array<i32>} : memref<18x8x128xf32, #tpu.memory_space<vmem>>, vector<1x8x32xf32>,
    %c8_49 = arith.constant 8 : index
    %c64_50 = arith.constant 64 : index
    %58 = vector.load %arg5[%c8_49, %c64_50] : memref<96x192xf32, #tpu.memory_space<vmem>>, vector<8x32xf32>
    %c2_51 = arith.constant 2 : index
    %c0_52 = arith.constant 0 : index
    %c32_53 = arith.constant 32 : index
    %59 = vector.load %arg6[%c2_51, %c0_52, %c32_53] : memref<18x8x128xf32, #tpu.memory_space<vmem>>, vector<1x8x32xf32>
    %60 = vector.shape_cast %59 : vector<1x8x32xf32> to vector<8x32xf32>
    %61 = vector.shape_cast %58 : vector<8x32xf32> to vector<1x8x32xf32>
    tpu.vector_store %arg6[%c2_51, %c0_52, %c32_53], %61 {strides = array<i32>} : memref<18x8x128xf32, #tpu.memory_space<vmem>>, vector<1x8x32xf32>,
    %c16_54 = arith.constant 16 : index
    %c64_55 = arith.constant 64 : index
    %62 = vector.load %arg5[%c16_54, %c64_55] : memref<96x192xf32, #tpu.memory_space<vmem>>, vector<8x32xf32>
    %c2_56 = arith.constant 2 : index
    %c0_57 = arith.constant 0 : index
    %c64_58 = arith.constant 64 : index
    %63 = vector.load %arg6[%c2_56, %c0_57, %c64_58] : memref<18x8x128xf32, #tpu.memory_space<vmem>>, vector<1x8x32xf32>
    %64 = vector.shape_cast %63 : vector<1x8x32xf32> to vector<8x32xf32>
    %65 = vector.shape_cast %62 : vector<8x32xf32> to vector<1x8x32xf32>
    tpu.vector_store %arg6[%c2_56, %c0_57, %c64_58], %65 {strides = array<i32>} : memref<18x8x128xf32, #tpu.memory_space<vmem>>, vector<1x8x32xf32>,
    %c24_59 = arith.constant 24 : index
    %c64_60 = arith.constant 64 : index
    %66 = vector.load %arg5[%c24_59, %c64_60] : memref<96x192xf32, #tpu.memory_space<vmem>>, vector<8x32xf32>
    %c2_61 = arith.constant 2 : index
    %c0_62 = arith.constant 0 : index
    %c96_63 = arith.constant 96 : index
    %67 = vector.load %arg6[%c2_61, %c0_62, %c96_63] : memref<18x8x128xf32, #tpu.memory_space<vmem>>, vector<1x8x32xf32>
    %68 = vector.shape_cast %67 : vector<1x8x32xf32> to vector<8x32xf32>
    %69 = vector.shape_cast %66 : vector<8x32xf32> to vector<1x8x32xf32>
    tpu.vector_store %arg6[%c2_61, %c0_62, %c96_63], %69 {strides = array<i32>} : memref<18x8x128xf32, #tpu.memory_space<vmem>>, vector<1x8x32xf32>,
    %c0_64 = arith.constant 0 : index
    %c96_65 = arith.constant 96 : index
    %70 = vector.load %arg5[%c0_64, %c96_65] : memref<96x192xf32, #tpu.memory_space<vmem>>, vector<8x32xf32>
    %c3 = arith.constant 3 : index
    %c0_66 = arith.constant 0 : index
    %c0_67 = arith.constant 0 : index
    %71 = vector.load %arg6[%c3, %c0_66, %c0_67] : memref<18x8x128xf32, #tpu.memory_space<vmem>>, vector<1x8x32xf32>
    %72 = vector.shape_cast %71 : vector<1x8x32xf32> to vector<8x32xf32>
    %73 = vector.shape_cast %70 : vector<8x32xf32> to vector<1x8x32xf32>
    tpu.vector_store %arg6[%c3, %c0_66, %c0_67], %73 {strides = array<i32>} : memref<18x8x128xf32, #tpu.memory_space<vmem>>, vector<1x8x32xf32>,
    %c8_68 = arith.constant 8 : index
    %c96_69 = arith.constant 96 : index
    %74 = vector.load %arg5[%c8_68, %c96_69] : memref<96x192xf32, #tpu.memory_space<vmem>>, vector<8x32xf32>
    %c3_70 = arith.constant 3 : index
    %c0_71 = arith.constant 0 : index
    %c32_72 = arith.constant 32 : index
    %75 = vector.load %arg6[%c3_70, %c0_71, %c32_72] : memref<18x8x128xf32, #tpu.memory_space<vmem>>, vector<1x8x32xf32>
    %76 = vector.shape_cast %75 : vector<1x8x32xf32> to vector<8x32xf32>
    %77 = vector.shape_cast %74 : vector<8x32xf32> to vector<1x8x32xf32>
    tpu.vector_store %arg6[%c3_70, %c0_71, %c32_72], %77 {strides = array<i32>} : memref<18x8x128xf32, #tpu.memory_space<vmem>>, vector<1x8x32xf32>,
    %c16_73 = arith.constant 16 : index
    %c96_74 = arith.constant 96 : index
    %78 = vector.load %arg5[%c16_73, %c96_74] : memref<96x192xf32, #tpu.memory_space<vmem>>, vector<8x32xf32>
    %c3_75 = arith.constant 3 : index
    %c0_76 = arith.constant 0 : index
    %c64_77 = arith.constant 64 : index
    %79 = vector.load %arg6[%c3_75, %c0_76, %c64_77] : memref<18x8x128xf32, #tpu.memory_space<vmem>>, vector<1x8x32xf32>
    %80 = vector.shape_cast %79 : vector<1x8x32xf32> to vector<8x32xf32>
    %81 = vector.shape_cast %78 : vector<8x32xf32> to vector<1x8x32xf32>
    tpu.vector_store %arg6[%c3_75, %c0_76, %c64_77], %81 {strides = array<i32>} : memref<18x8x128xf32, #tpu.memory_space<vmem>>, vector<1x8x32xf32>,
    %c24_78 = arith.constant 24 : index
    %c96_79 = arith.constant 96 : index
    %82 = vector.load %arg5[%c24_78, %c96_79] : memref<96x192xf32, #tpu.memory_space<vmem>>, vector<8x32xf32>
    %c3_80 = arith.constant 3 : index
    %c0_81 = arith.constant 0 : index
    %c96_82 = arith.constant 96 : index
    %83 = vector.load %arg6[%c3_80, %c0_81, %c96_82] : memref<18x8x128xf32, #tpu.memory_space<vmem>>, vector<1x8x32xf32>
    %84 = vector.shape_cast %83 : vector<1x8x32xf32> to vector<8x32xf32>
    %85 = vector.shape_cast %82 : vector<8x32xf32> to vector<1x8x32xf32>
    tpu.vector_store %arg6[%c3_80, %c0_81, %c96_82], %85 {strides = array<i32>} : memref<18x8x128xf32, #tpu.memory_space<vmem>>, vector<1x8x32xf32>,
    %c0_83 = arith.constant 0 : index
    %c128 = arith.constant 128 : index
    %86 = vector.load %arg5[%c0_83, %c128] : memref<96x192xf32, #tpu.memory_space<vmem>>, vector<8x32xf32>
    %c4 = arith.constant 4 : index
    %c0_84 = arith.constant 0 : index
    %c0_85 = arith.constant 0 : index
    %87 = vector.load %arg6[%c4, %c0_84, %c0_85] : memref<18x8x128xf32, #tpu.memory_space<vmem>>, vector<1x8x32xf32>
    %88 = vector.shape_cast %87 : vector<1x8x32xf32> to vector<8x32xf32>
    %89 = vector.shape_cast %86 : vector<8x32xf32> to vector<1x8x32xf32>
    tpu.vector_store %arg6[%c4, %c0_84, %c0_85], %89 {strides = array<i32>} : memref<18x8x128xf32, #tpu.memory_space<vmem>>, vector<1x8x32xf32>,
    %c8_86 = arith.constant 8 : index
    %c128_87 = arith.constant 128 : index
    %90 = vector.load %arg5[%c8_86, %c128_87] : memref<96x192xf32, #tpu.memory_space<vmem>>, vector<8x32xf32>
    %c4_88 = arith.constant 4 : index
    %c0_89 = arith.constant 0 : index
    %c32_90 = arith.constant 32 : index
    %91 = vector.load %arg6[%c4_88, %c0_89, %c32_90] : memref<18x8x128xf32, #tpu.memory_space<vmem>>, vector<1x8x32xf32>
    %92 = vector.shape_cast %91 : vector<1x8x32xf32> to vector<8x32xf32>
    %93 = vector.shape_cast %90 : vector<8x32xf32> to vector<1x8x32xf32>
    tpu.vector_store %arg6[%c4_88, %c0_89, %c32_90], %93 {strides = array<i32>} : memref<18x8x128xf32, #tpu.memory_space<vmem>>, vector<1x8x32xf32>,
    %c16_91 = arith.constant 16 : index
    %c128_92 = arith.constant 128 : index
    %94 = vector.load %arg5[%c16_91, %c128_92] : memref<96x192xf32, #tpu.memory_space<vmem>>, vector<8x32xf32>
    %c4_93 = arith.constant 4 : index
    %c0_94 = arith.constant 0 : index
    %c64_95 = arith.constant 64 : index
    %95 = vector.load %arg6[%c4_93, %c0_94, %c64_95] : memref<18x8x128xf32, #tpu.memory_space<vmem>>, vector<1x8x32xf32>
    %96 = vector.shape_cast %95 : vector<1x8x32xf32> to vector<8x32xf32>
    %97 = vector.shape_cast %94 : vector<8x32xf32> to vector<1x8x32xf32>
    tpu.vector_store %arg6[%c4_93, %c0_94, %c64_95], %97 {strides = array<i32>} : memref<18x8x128xf32, #tpu.memory_space<vmem>>, vector<1x8x32xf32>,
    %c24_96 = arith.constant 24 : index
    %c128_97 = arith.constant 128 : index
    %98 = vector.load %arg5[%c24_96, %c128_97] : memref<96x192xf32, #tpu.memory_space<vmem>>, vector<8x32xf32>
    %c4_98 = arith.constant 4 : index
    %c0_99 = arith.constant 0 : index
    %c96_100 = arith.constant 96 : index
    %99 = vector.load %arg6[%c4_98, %c0_99, %c96_100] : memref<18x8x128xf32, #tpu.memory_space<vmem>>, vector<1x8x32xf32>
    %100 = vector.shape_cast %99 : vector<1x8x32xf32> to vector<8x32xf32>
    %101 = vector.shape_cast %98 : vector<8x32xf32> to vector<1x8x32xf32>
    tpu.vector_store %arg6[%c4_98, %c0_99, %c96_100], %101 {strides = array<i32>} : memref<18x8x128xf32, #tpu.memory_space<vmem>>, vector<1x8x32xf32>,
    %c0_101 = arith.constant 0 : index
    %c160 = arith.constant 160 : index
    %102 = vector.load %arg5[%c0_101, %c160] : memref<96x192xf32, #tpu.memory_space<vmem>>, vector<8x32xf32>
    %c5 = arith.constant 5 : index
    %c0_102 = arith.constant 0 : index
    %c0_103 = arith.constant 0 : index
    %103 = vector.load %arg6[%c5, %c0_102, %c0_103] : memref<18x8x128xf32, #tpu.memory_space<vmem>>, vector<1x8x32xf32>
    %104 = vector.shape_cast %103 : vector<1x8x32xf32> to vector<8x32xf32>
    %105 = vector.shape_cast %102 : vector<8x32xf32> to vector<1x8x32xf32>
    tpu.vector_store %arg6[%c5, %c0_102, %c0_103], %105 {strides = array<i32>} : memref<18x8x128xf32, #tpu.memory_space<vmem>>, vector<1x8x32xf32>,
    %c8_104 = arith.constant 8 : index
    %c160_105 = arith.constant 160 : index
    %106 = vector.load %arg5[%c8_104, %c160_105] : memref<96x192xf32, #tpu.memory_space<vmem>>, vector<8x32xf32>
    %c5_106 = arith.constant 5 : index
    %c0_107 = arith.constant 0 : index
    %c32_108 = arith.constant 32 : index
    %107 = vector.load %arg6[%c5_106, %c0_107, %c32_108] : memref<18x8x128xf32, #tpu.memory_space<vmem>>, vector<1x8x32xf32>
    %108 = vector.shape_cast %107 : vector<1x8x32xf32> to vector<8x32xf32>
    %109 = vector.shape_cast %106 : vector<8x32xf32> to vector<1x8x32xf32>
    tpu.vector_store %arg6[%c5_106, %c0_107, %c32_108], %109 {strides = array<i32>} : memref<18x8x128xf32, #tpu.memory_space<vmem>>, vector<1x8x32xf32>,
    %c16_109 = arith.constant 16 : index
    %c160_110 = arith.constant 160 : index
    %110 = vector.load %arg5[%c16_109, %c160_110] : memref<96x192xf32, #tpu.memory_space<vmem>>, vector<8x32xf32>
    %c5_111 = arith.constant 5 : index
    %c0_112 = arith.constant 0 : index
    %c64_113 = arith.constant 64 : index
    %111 = vector.load %arg6[%c5_111, %c0_112, %c64_113] : memref<18x8x128xf32, #tpu.memory_space<vmem>>, vector<1x8x32xf32>
    %112 = vector.shape_cast %111 : vector<1x8x32xf32> to vector<8x32xf32>
    %113 = vector.shape_cast %110 : vector<8x32xf32> to vector<1x8x32xf32>
    tpu.vector_store %arg6[%c5_111, %c0_112, %c64_113], %113 {strides = array<i32>} : memref<18x8x128xf32, #tpu.memory_space<vmem>>, vector<1x8x32xf32>,
    %c24_114 = arith.constant 24 : index
    %c160_115 = arith.constant 160 : index
    %114 = vector.load %arg5[%c24_114, %c160_115] : memref<96x192xf32, #tpu.memory_space<vmem>>, vector<8x32xf32>
    %c5_116 = arith.constant 5 : index
    %c0_117 = arith.constant 0 : index
    %c96_118 = arith.constant 96 : index
    %115 = vector.load %arg6[%c5_116, %c0_117, %c96_118] : memref<18x8x128xf32, #tpu.memory_space<vmem>>, vector<1x8x32xf32>
    %116 = vector.shape_cast %115 : vector<1x8x32xf32> to vector<8x32xf32>
    %117 = vector.shape_cast %114 : vector<8x32xf32> to vector<1x8x32xf32>
    tpu.vector_store %arg6[%c5_116, %c0_117, %c96_118], %117 {strides = array<i32>} : memref<18x8x128xf32, #tpu.memory_space<vmem>>, vector<1x8x32xf32>,
    %c32_119 = arith.constant 32 : index
    %c0_120 = arith.constant 0 : index
    %118 = vector.load %arg4[%c32_119, %c0_120] : memref<96x192xf32, #tpu.memory_space<vmem>>, vector<8x32xf32>
    %c6 = arith.constant 6 : index
    %c0_121 = arith.constant 0 : index
    %c0_122 = arith.constant 0 : index
    %119 = vector.load %arg6[%c6, %c0_121, %c0_122] : memref<18x8x128xf32, #tpu.memory_space<vmem>>, vector<1x8x32xf32>
    %120 = vector.shape_cast %119 : vector<1x8x32xf32> to vector<8x32xf32>
    %121 = vector.shape_cast %118 : vector<8x32xf32> to vector<1x8x32xf32>
    tpu.vector_store %arg6[%c6, %c0_121, %c0_122], %121 {strides = array<i32>} : memref<18x8x128xf32, #tpu.memory_space<vmem>>, vector<1x8x32xf32>,
    %c40 = arith.constant 40 : index
    %c0_123 = arith.constant 0 : index
    %122 = vector.load %arg4[%c40, %c0_123] : memref<96x192xf32, #tpu.memory_space<vmem>>, vector<8x32xf32>
    %c6_124 = arith.constant 6 : index
    %c0_125 = arith.constant 0 : index
    %c32_126 = arith.constant 32 : index
    %123 = vector.load %arg6[%c6_124, %c0_125, %c32_126] : memref<18x8x128xf32, #tpu.memory_space<vmem>>, vector<1x8x32xf32>
    %124 = vector.shape_cast %123 : vector<1x8x32xf32> to vector<8x32xf32>
    %125 = vector.shape_cast %122 : vector<8x32xf32> to vector<1x8x32xf32>
    tpu.vector_store %arg6[%c6_124, %c0_125, %c32_126], %125 {strides = array<i32>} : memref<18x8x128xf32, #tpu.memory_space<vmem>>, vector<1x8x32xf32>,
    %c48 = arith.constant 48 : index
    %c0_127 = arith.constant 0 : index
    %126 = vector.load %arg4[%c48, %c0_127] : memref<96x192xf32, #tpu.memory_space<vmem>>, vector<8x32xf32>
    %c6_128 = arith.constant 6 : index
    %c0_129 = arith.constant 0 : index
    %c64_130 = arith.constant 64 : index
    %127 = vector.load %arg6[%c6_128, %c0_129, %c64_130] : memref<18x8x128xf32, #tpu.memory_space<vmem>>, vector<1x8x32xf32>
    %128 = vector.shape_cast %127 : vector<1x8x32xf32> to vector<8x32xf32>
    %129 = vector.shape_cast %126 : vector<8x32xf32> to vector<1x8x32xf32>
    tpu.vector_store %arg6[%c6_128, %c0_129, %c64_130], %129 {strides = array<i32>} : memref<18x8x128xf32, #tpu.memory_space<vmem>>, vector<1x8x32xf32>,
    %c56 = arith.constant 56 : index
    %c0_131 = arith.constant 0 : index
    %130 = vector.load %arg4[%c56, %c0_131] : memref<96x192xf32, #tpu.memory_space<vmem>>, vector<8x32xf32>
    %c6_132 = arith.constant 6 : index
    %c0_133 = arith.constant 0 : index
    %c96_134 = arith.constant 96 : index
    %131 = vector.load %arg6[%c6_132, %c0_133, %c96_134] : memref<18x8x128xf32, #tpu.memory_space<vmem>>, vector<1x8x32xf32>
    %132 = vector.shape_cast %131 : vector<1x8x32xf32> to vector<8x32xf32>
    %133 = vector.shape_cast %130 : vector<8x32xf32> to vector<1x8x32xf32>
    tpu.vector_store %arg6[%c6_132, %c0_133, %c96_134], %133 {strides = array<i32>} : memref<18x8x128xf32, #tpu.memory_space<vmem>>, vector<1x8x32xf32>,
    %c32_135 = arith.constant 32 : index
    %c32_136 = arith.constant 32 : index
    %134 = vector.load %arg4[%c32_135, %c32_136] : memref<96x192xf32, #tpu.memory_space<vmem>>, vector<8x32xf32>
    %c7 = arith.constant 7 : index
    %c0_137 = arith.constant 0 : index
    %c0_138 = arith.constant 0 : index
    %135 = vector.load %arg6[%c7, %c0_137, %c0_138] : memref<18x8x128xf32, #tpu.memory_space<vmem>>, vector<1x8x32xf32>
    %136 = vector.shape_cast %135 : vector<1x8x32xf32> to vector<8x32xf32>
    %137 = vector.shape_cast %134 : vector<8x32xf32> to vector<1x8x32xf32>
    tpu.vector_store %arg6[%c7, %c0_137, %c0_138], %137 {strides = array<i32>} : memref<18x8x128xf32, #tpu.memory_space<vmem>>, vector<1x8x32xf32>,
    %c40_139 = arith.constant 40 : index
    %c32_140 = arith.constant 32 : index
    %138 = vector.load %arg4[%c40_139, %c32_140] : memref<96x192xf32, #tpu.memory_space<vmem>>, vector<8x32xf32>
    %c7_141 = arith.constant 7 : index
    %c0_142 = arith.constant 0 : index
    %c32_143 = arith.constant 32 : index
    %139 = vector.load %arg6[%c7_141, %c0_142, %c32_143] : memref<18x8x128xf32, #tpu.memory_space<vmem>>, vector<1x8x32xf32>
    %140 = vector.shape_cast %139 : vector<1x8x32xf32> to vector<8x32xf32>
    %141 = vector.shape_cast %138 : vector<8x32xf32> to vector<1x8x32xf32>
    tpu.vector_store %arg6[%c7_141, %c0_142, %c32_143], %141 {strides = array<i32>} : memref<18x8x128xf32, #tpu.memory_space<vmem>>, vector<1x8x32xf32>,
    %c48_144 = arith.constant 48 : index
    %c32_145 = arith.constant 32 : index
    %142 = vector.load %arg4[%c48_144, %c32_145] : memref<96x192xf32, #tpu.memory_space<vmem>>, vector<8x32xf32>
    %c7_146 = arith.constant 7 : index
    %c0_147 = arith.constant 0 : index
    %c64_148 = arith.constant 64 : index
    %143 = vector.load %arg6[%c7_146, %c0_147, %c64_148] : memref<18x8x128xf32, #tpu.memory_space<vmem>>, vector<1x8x32xf32>
    %144 = vector.shape_cast %143 : vector<1x8x32xf32> to vector<8x32xf32>
    %145 = vector.shape_cast %142 : vector<8x32xf32> to vector<1x8x32xf32>
    tpu.vector_store %arg6[%c7_146, %c0_147, %c64_148], %145 {strides = array<i32>} : memref<18x8x128xf32, #tpu.memory_space<vmem>>, vector<1x8x32xf32>,
    %c56_149 = arith.constant 56 : index
    %c32_150 = arith.constant 32 : index
    %146 = vector.load %arg4[%c56_149, %c32_150] : memref<96x192xf32, #tpu.memory_space<vmem>>, vector<8x32xf32>
    %c7_151 = arith.constant 7 : index
    %c0_152 = arith.constant 0 : index
    %c96_153 = arith.constant 96 : index
    %147 = vector.load %arg6[%c7_151, %c0_152, %c96_153] : memref<18x8x128xf32, #tpu.memory_space<vmem>>, vector<1x8x32xf32>
    %148 = vector.shape_cast %147 : vector<1x8x32xf32> to vector<8x32xf32>
    %149 = vector.shape_cast %146 : vector<8x32xf32> to vector<1x8x32xf32>
    tpu.vector_store %arg6[%c7_151, %c0_152, %c96_153], %149 {strides = array<i32>} : memref<18x8x128xf32, #tpu.memory_space<vmem>>, vector<1x8x32xf32>,
    %c32_154 = arith.constant 32 : index
    %c64_155 = arith.constant 64 : index
    %150 = vector.load %arg5[%c32_154, %c64_155] : memref<96x192xf32, #tpu.memory_space<vmem>>, vector<8x32xf32>
    %c8_156 = arith.constant 8 : index
    %c0_157 = arith.constant 0 : index
    %c0_158 = arith.constant 0 : index
    %151 = vector.load %arg6[%c8_156, %c0_157, %c0_158] : memref<18x8x128xf32, #tpu.memory_space<vmem>>, vector<1x8x32xf32>
    %152 = vector.shape_cast %151 : vector<1x8x32xf32> to vector<8x32xf32>
    %153 = vector.shape_cast %150 : vector<8x32xf32> to vector<1x8x32xf32>
    tpu.vector_store %arg6[%c8_156, %c0_157, %c0_158], %153 {strides = array<i32>} : memref<18x8x128xf32, #tpu.memory_space<vmem>>, vector<1x8x32xf32>,
    %c40_159 = arith.constant 40 : index
    %c64_160 = arith.constant 64 : index
    %154 = vector.load %arg5[%c40_159, %c64_160] : memref<96x192xf32, #tpu.memory_space<vmem>>, vector<8x32xf32>
    %c8_161 = arith.constant 8 : index
    %c0_162 = arith.constant 0 : index
    %c32_163 = arith.constant 32 : index
    %155 = vector.load %arg6[%c8_161, %c0_162, %c32_163] : memref<18x8x128xf32, #tpu.memory_space<vmem>>, vector<1x8x32xf32>
    %156 = vector.shape_cast %155 : vector<1x8x32xf32> to vector<8x32xf32>
    %157 = vector.shape_cast %154 : vector<8x32xf32> to vector<1x8x32xf32>
    tpu.vector_store %arg6[%c8_161, %c0_162, %c32_163], %157 {strides = array<i32>} : memref<18x8x128xf32, #tpu.memory_space<vmem>>, vector<1x8x32xf32>,
    %c48_164 = arith.constant 48 : index
    %c64_165 = arith.constant 64 : index
    %158 = vector.load %arg5[%c48_164, %c64_165] : memref<96x192xf32, #tpu.memory_space<vmem>>, vector<8x32xf32>
    %c8_166 = arith.constant 8 : index
    %c0_167 = arith.constant 0 : index
    %c64_168 = arith.constant 64 : index
    %159 = vector.load %arg6[%c8_166, %c0_167, %c64_168] : memref<18x8x128xf32, #tpu.memory_space<vmem>>, vector<1x8x32xf32>
    %160 = vector.shape_cast %159 : vector<1x8x32xf32> to vector<8x32xf32>
    %161 = vector.shape_cast %158 : vector<8x32xf32> to vector<1x8x32xf32>
    tpu.vector_store %arg6[%c8_166, %c0_167, %c64_168], %161 {strides = array<i32>} : memref<18x8x128xf32, #tpu.memory_space<vmem>>, vector<1x8x32xf32>,
    %c56_169 = arith.constant 56 : index
    %c64_170 = arith.constant 64 : index
    %162 = vector.load %arg5[%c56_169, %c64_170] : memref<96x192xf32, #tpu.memory_space<vmem>>, vector<8x32xf32>
    %c8_171 = arith.constant 8 : index
    %c0_172 = arith.constant 0 : index
    %c96_173 = arith.constant 96 : index
    %163 = vector.load %arg6[%c8_171, %c0_172, %c96_173] : memref<18x8x128xf32, #tpu.memory_space<vmem>>, vector<1x8x32xf32>
    %164 = vector.shape_cast %163 : vector<1x8x32xf32> to vector<8x32xf32>
    %165 = vector.shape_cast %162 : vector<8x32xf32> to vector<1x8x32xf32>
    tpu.vector_store %arg6[%c8_171, %c0_172, %c96_173], %165 {strides = array<i32>} : memref<18x8x128xf32, #tpu.memory_space<vmem>>, vector<1x8x32xf32>,
    %c32_174 = arith.constant 32 : index
    %c96_175 = arith.constant 96 : index
    %166 = vector.load %arg5[%c32_174, %c96_175] : memref<96x192xf32, #tpu.memory_space<vmem>>, vector<8x32xf32>
    %c9 = arith.constant 9 : index
    %c0_176 = arith.constant 0 : index
    %c0_177 = arith.constant 0 : index
    %167 = vector.load %arg6[%c9, %c0_176, %c0_177] : memref<18x8x128xf32, #tpu.memory_space<vmem>>, vector<1x8x32xf32>
    %168 = vector.shape_cast %167 : vector<1x8x32xf32> to vector<8x32xf32>
    %169 = vector.shape_cast %166 : vector<8x32xf32> to vector<1x8x32xf32>
    tpu.vector_store %arg6[%c9, %c0_176, %c0_177], %169 {strides = array<i32>} : memref<18x8x128xf32, #tpu.memory_space<vmem>>, vector<1x8x32xf32>,
    %c40_178 = arith.constant 40 : index
    %c96_179 = arith.constant 96 : index
    %170 = vector.load %arg5[%c40_178, %c96_179] : memref<96x192xf32, #tpu.memory_space<vmem>>, vector<8x32xf32>
    %c9_180 = arith.constant 9 : index
    %c0_181 = arith.constant 0 : index
    %c32_182 = arith.constant 32 : index
    %171 = vector.load %arg6[%c9_180, %c0_181, %c32_182] : memref<18x8x128xf32, #tpu.memory_space<vmem>>, vector<1x8x32xf32>
    %172 = vector.shape_cast %171 : vector<1x8x32xf32> to vector<8x32xf32>
    %173 = vector.shape_cast %170 : vector<8x32xf32> to vector<1x8x32xf32>
    tpu.vector_store %arg6[%c9_180, %c0_181, %c32_182], %173 {strides = array<i32>} : memref<18x8x128xf32, #tpu.memory_space<vmem>>, vector<1x8x32xf32>,
    %c48_183 = arith.constant 48 : index
    %c96_184 = arith.constant 96 : index
    %174 = vector.load %arg5[%c48_183, %c96_184] : memref<96x192xf32, #tpu.memory_space<vmem>>, vector<8x32xf32>
    %c9_185 = arith.constant 9 : index
    %c0_186 = arith.constant 0 : index
    %c64_187 = arith.constant 64 : index
    %175 = vector.load %arg6[%c9_185, %c0_186, %c64_187] : memref<18x8x128xf32, #tpu.memory_space<vmem>>, vector<1x8x32xf32>
    %176 = vector.shape_cast %175 : vector<1x8x32xf32> to vector<8x32xf32>
    %177 = vector.shape_cast %174 : vector<8x32xf32> to vector<1x8x32xf32>
    tpu.vector_store %arg6[%c9_185, %c0_186, %c64_187], %177 {strides = array<i32>} : memref<18x8x128xf32, #tpu.memory_space<vmem>>, vector<1x8x32xf32>,
    %c56_188 = arith.constant 56 : index
    %c96_189 = arith.constant 96 : index
    %178 = vector.load %arg5[%c56_188, %c96_189] : memref<96x192xf32, #tpu.memory_space<vmem>>, vector<8x32xf32>
    %c9_190 = arith.constant 9 : index
    %c0_191 = arith.constant 0 : index
    %c96_192 = arith.constant 96 : index
    %179 = vector.load %arg6[%c9_190, %c0_191, %c96_192] : memref<18x8x128xf32, #tpu.memory_space<vmem>>, vector<1x8x32xf32>
    %180 = vector.shape_cast %179 : vector<1x8x32xf32> to vector<8x32xf32>
    %181 = vector.shape_cast %178 : vector<8x32xf32> to vector<1x8x32xf32>
    tpu.vector_store %arg6[%c9_190, %c0_191, %c96_192], %181 {strides = array<i32>} : memref<18x8x128xf32, #tpu.memory_space<vmem>>, vector<1x8x32xf32>,
    %c32_193 = arith.constant 32 : index
    %c128_194 = arith.constant 128 : index
    %182 = vector.load %arg5[%c32_193, %c128_194] : memref<96x192xf32, #tpu.memory_space<vmem>>, vector<8x32xf32>
    %c10 = arith.constant 10 : index
    %c0_195 = arith.constant 0 : index
    %c0_196 = arith.constant 0 : index
    %183 = vector.load %arg6[%c10, %c0_195, %c0_196] : memref<18x8x128xf32, #tpu.memory_space<vmem>>, vector<1x8x32xf32>
    %184 = vector.shape_cast %183 : vector<1x8x32xf32> to vector<8x32xf32>
    %185 = vector.shape_cast %182 : vector<8x32xf32> to vector<1x8x32xf32>
    tpu.vector_store %arg6[%c10, %c0_195, %c0_196], %185 {strides = array<i32>} : memref<18x8x128xf32, #tpu.memory_space<vmem>>, vector<1x8x32xf32>,
    %c40_197 = arith.constant 40 : index
    %c128_198 = arith.constant 128 : index
    %186 = vector.load %arg5[%c40_197, %c128_198] : memref<96x192xf32, #tpu.memory_space<vmem>>, vector<8x32xf32>
    %c10_199 = arith.constant 10 : index
    %c0_200 = arith.constant 0 : index
    %c32_201 = arith.constant 32 : index
    %187 = vector.load %arg6[%c10_199, %c0_200, %c32_201] : memref<18x8x128xf32, #tpu.memory_space<vmem>>, vector<1x8x32xf32>
    %188 = vector.shape_cast %187 : vector<1x8x32xf32> to vector<8x32xf32>
    %189 = vector.shape_cast %186 : vector<8x32xf32> to vector<1x8x32xf32>
    tpu.vector_store %arg6[%c10_199, %c0_200, %c32_201], %189 {strides = array<i32>} : memref<18x8x128xf32, #tpu.memory_space<vmem>>, vector<1x8x32xf32>,
    %c48_202 = arith.constant 48 : index
    %c128_203 = arith.constant 128 : index
    %190 = vector.load %arg5[%c48_202, %c128_203] : memref<96x192xf32, #tpu.memory_space<vmem>>, vector<8x32xf32>
    %c10_204 = arith.constant 10 : index
    %c0_205 = arith.constant 0 : index
    %c64_206 = arith.constant 64 : index
    %191 = vector.load %arg6[%c10_204, %c0_205, %c64_206] : memref<18x8x128xf32, #tpu.memory_space<vmem>>, vector<1x8x32xf32>
    %192 = vector.shape_cast %191 : vector<1x8x32xf32> to vector<8x32xf32>
    %193 = vector.shape_cast %190 : vector<8x32xf32> to vector<1x8x32xf32>
    tpu.vector_store %arg6[%c10_204, %c0_205, %c64_206], %193 {strides = array<i32>} : memref<18x8x128xf32, #tpu.memory_space<vmem>>, vector<1x8x32xf32>,
    %c56_207 = arith.constant 56 : index
    %c128_208 = arith.constant 128 : index
    %194 = vector.load %arg5[%c56_207, %c128_208] : memref<96x192xf32, #tpu.memory_space<vmem>>, vector<8x32xf32>
    %c10_209 = arith.constant 10 : index
    %c0_210 = arith.constant 0 : index
    %c96_211 = arith.constant 96 : index
    %195 = vector.load %arg6[%c10_209, %c0_210, %c96_211] : memref<18x8x128xf32, #tpu.memory_space<vmem>>, vector<1x8x32xf32>
    %196 = vector.shape_cast %195 : vector<1x8x32xf32> to vector<8x32xf32>
    %197 = vector.shape_cast %194 : vector<8x32xf32> to vector<1x8x32xf32>
    tpu.vector_store %arg6[%c10_209, %c0_210, %c96_211], %197 {strides = array<i32>} : memref<18x8x128xf32, #tpu.memory_space<vmem>>, vector<1x8x32xf32>,
    %c32_212 = arith.constant 32 : index
    %c160_213 = arith.constant 160 : index
    %198 = vector.load %arg5[%c32_212, %c160_213] : memref<96x192xf32, #tpu.memory_space<vmem>>, vector<8x32xf32>
    %c11 = arith.constant 11 : index
    %c0_214 = arith.constant 0 : index
    %c0_215 = arith.constant 0 : index
    %199 = vector.load %arg6[%c11, %c0_214, %c0_215] : memref<18x8x128xf32, #tpu.memory_space<vmem>>, vector<1x8x32xf32>
    %200 = vector.shape_cast %199 : vector<1x8x32xf32> to vector<8x32xf32>
    %201 = vector.shape_cast %198 : vector<8x32xf32> to vector<1x8x32xf32>
    tpu.vector_store %arg6[%c11, %c0_214, %c0_215], %201 {strides = array<i32>} : memref<18x8x128xf32, #tpu.memory_space<vmem>>, vector<1x8x32xf32>,
    %c40_216 = arith.constant 40 : index
    %c160_217 = arith.constant 160 : index
    %202 = vector.load %arg5[%c40_216, %c160_217] : memref<96x192xf32, #tpu.memory_space<vmem>>, vector<8x32xf32>
    %c11_218 = arith.constant 11 : index
    %c0_219 = arith.constant 0 : index
    %c32_220 = arith.constant 32 : index
    %203 = vector.load %arg6[%c11_218, %c0_219, %c32_220] : memref<18x8x128xf32, #tpu.memory_space<vmem>>, vector<1x8x32xf32>
    %204 = vector.shape_cast %203 : vector<1x8x32xf32> to vector<8x32xf32>
    %205 = vector.shape_cast %202 : vector<8x32xf32> to vector<1x8x32xf32>
    tpu.vector_store %arg6[%c11_218, %c0_219, %c32_220], %205 {strides = array<i32>} : memref<18x8x128xf32, #tpu.memory_space<vmem>>, vector<1x8x32xf32>,
    %c48_221 = arith.constant 48 : index
    %c160_222 = arith.constant 160 : index
    %206 = vector.load %arg5[%c48_221, %c160_222] : memref<96x192xf32, #tpu.memory_space<vmem>>, vector<8x32xf32>
    %c11_223 = arith.constant 11 : index
    %c0_224 = arith.constant 0 : index
    %c64_225 = arith.constant 64 : index
    %207 = vector.load %arg6[%c11_223, %c0_224, %c64_225] : memref<18x8x128xf32, #tpu.memory_space<vmem>>, vector<1x8x32xf32>
    %208 = vector.shape_cast %207 : vector<1x8x32xf32> to vector<8x32xf32>
    %209 = vector.shape_cast %206 : vector<8x32xf32> to vector<1x8x32xf32>
    tpu.vector_store %arg6[%c11_223, %c0_224, %c64_225], %209 {strides = array<i32>} : memref<18x8x128xf32, #tpu.memory_space<vmem>>, vector<1x8x32xf32>,
    %c56_226 = arith.constant 56 : index
    %c160_227 = arith.constant 160 : index
    %210 = vector.load %arg5[%c56_226, %c160_227] : memref<96x192xf32, #tpu.memory_space<vmem>>, vector<8x32xf32>
    %c11_228 = arith.constant 11 : index
    %c0_229 = arith.constant 0 : index
    %c96_230 = arith.constant 96 : index
    %211 = vector.load %arg6[%c11_228, %c0_229, %c96_230] : memref<18x8x128xf32, #tpu.memory_space<vmem>>, vector<1x8x32xf32>
    %212 = vector.shape_cast %211 : vector<1x8x32xf32> to vector<8x32xf32>
    %213 = vector.shape_cast %210 : vector<8x32xf32> to vector<1x8x32xf32>
    tpu.vector_store %arg6[%c11_228, %c0_229, %c96_230], %213 {strides = array<i32>} : memref<18x8x128xf32, #tpu.memory_space<vmem>>, vector<1x8x32xf32>,
    %c64_231 = arith.constant 64 : index
    %c0_232 = arith.constant 0 : index
    %214 = vector.load %arg4[%c64_231, %c0_232] : memref<96x192xf32, #tpu.memory_space<vmem>>, vector<8x32xf32>
    %c12 = arith.constant 12 : index
    %c0_233 = arith.constant 0 : index
    %c0_234 = arith.constant 0 : index
    %215 = vector.load %arg6[%c12, %c0_233, %c0_234] : memref<18x8x128xf32, #tpu.memory_space<vmem>>, vector<1x8x32xf32>
    %216 = vector.shape_cast %215 : vector<1x8x32xf32> to vector<8x32xf32>
    %217 = vector.shape_cast %214 : vector<8x32xf32> to vector<1x8x32xf32>
    tpu.vector_store %arg6[%c12, %c0_233, %c0_234], %217 {strides = array<i32>} : memref<18x8x128xf32, #tpu.memory_space<vmem>>, vector<1x8x32xf32>,
    %c72 = arith.constant 72 : index
    %c0_235 = arith.constant 0 : index
    %218 = vector.load %arg4[%c72, %c0_235] : memref<96x192xf32, #tpu.memory_space<vmem>>, vector<8x32xf32>
    %c12_236 = arith.constant 12 : index
    %c0_237 = arith.constant 0 : index
    %c32_238 = arith.constant 32 : index
    %219 = vector.load %arg6[%c12_236, %c0_237, %c32_238] : memref<18x8x128xf32, #tpu.memory_space<vmem>>, vector<1x8x32xf32>
    %220 = vector.shape_cast %219 : vector<1x8x32xf32> to vector<8x32xf32>
    %221 = vector.shape_cast %218 : vector<8x32xf32> to vector<1x8x32xf32>
    tpu.vector_store %arg6[%c12_236, %c0_237, %c32_238], %221 {strides = array<i32>} : memref<18x8x128xf32, #tpu.memory_space<vmem>>, vector<1x8x32xf32>,
    %c80 = arith.constant 80 : index
    %c0_239 = arith.constant 0 : index
    %222 = vector.load %arg4[%c80, %c0_239] : memref<96x192xf32, #tpu.memory_space<vmem>>, vector<8x32xf32>
    %c12_240 = arith.constant 12 : index
    %c0_241 = arith.constant 0 : index
    %c64_242 = arith.constant 64 : index
    %223 = vector.load %arg6[%c12_240, %c0_241, %c64_242] : memref<18x8x128xf32, #tpu.memory_space<vmem>>, vector<1x8x32xf32>
    %224 = vector.shape_cast %223 : vector<1x8x32xf32> to vector<8x32xf32>
    %225 = vector.shape_cast %222 : vector<8x32xf32> to vector<1x8x32xf32>
    tpu.vector_store %arg6[%c12_240, %c0_241, %c64_242], %225 {strides = array<i32>} : memref<18x8x128xf32, #tpu.memory_space<vmem>>, vector<1x8x32xf32>,
    %c88 = arith.constant 88 : index
    %c0_243 = arith.constant 0 : index
    %226 = vector.load %arg4[%c88, %c0_243] : memref<96x192xf32, #tpu.memory_space<vmem>>, vector<8x32xf32>
    %c12_244 = arith.constant 12 : index
    %c0_245 = arith.constant 0 : index
    %c96_246 = arith.constant 96 : index
    %227 = vector.load %arg6[%c12_244, %c0_245, %c96_246] : memref<18x8x128xf32, #tpu.memory_space<vmem>>, vector<1x8x32xf32>
    %228 = vector.shape_cast %227 : vector<1x8x32xf32> to vector<8x32xf32>
    %229 = vector.shape_cast %226 : vector<8x32xf32> to vector<1x8x32xf32>
    tpu.vector_store %arg6[%c12_244, %c0_245, %c96_246], %229 {strides = array<i32>} : memref<18x8x128xf32, #tpu.memory_space<vmem>>, vector<1x8x32xf32>,
    %c64_247 = arith.constant 64 : index
    %c32_248 = arith.constant 32 : index
    %230 = vector.load %arg4[%c64_247, %c32_248] : memref<96x192xf32, #tpu.memory_space<vmem>>, vector<8x32xf32>
    %c13 = arith.constant 13 : index
    %c0_249 = arith.constant 0 : index
    %c0_250 = arith.constant 0 : index
    %231 = vector.load %arg6[%c13, %c0_249, %c0_250] : memref<18x8x128xf32, #tpu.memory_space<vmem>>, vector<1x8x32xf32>
    %232 = vector.shape_cast %231 : vector<1x8x32xf32> to vector<8x32xf32>
    %233 = vector.shape_cast %230 : vector<8x32xf32> to vector<1x8x32xf32>
    tpu.vector_store %arg6[%c13, %c0_249, %c0_250], %233 {strides = array<i32>} : memref<18x8x128xf32, #tpu.memory_space<vmem>>, vector<1x8x32xf32>,
    %c72_251 = arith.constant 72 : index
    %c32_252 = arith.constant 32 : index
    %234 = vector.load %arg4[%c72_251, %c32_252] : memref<96x192xf32, #tpu.memory_space<vmem>>, vector<8x32xf32>
    %c13_253 = arith.constant 13 : index
    %c0_254 = arith.constant 0 : index
    %c32_255 = arith.constant 32 : index
    %235 = vector.load %arg6[%c13_253, %c0_254, %c32_255] : memref<18x8x128xf32, #tpu.memory_space<vmem>>, vector<1x8x32xf32>
    %236 = vector.shape_cast %235 : vector<1x8x32xf32> to vector<8x32xf32>
    %237 = vector.shape_cast %234 : vector<8x32xf32> to vector<1x8x32xf32>
    tpu.vector_store %arg6[%c13_253, %c0_254, %c32_255], %237 {strides = array<i32>} : memref<18x8x128xf32, #tpu.memory_space<vmem>>, vector<1x8x32xf32>,
    %c80_256 = arith.constant 80 : index
    %c32_257 = arith.constant 32 : index
    %238 = vector.load %arg4[%c80_256, %c32_257] : memref<96x192xf32, #tpu.memory_space<vmem>>, vector<8x32xf32>
    %c13_258 = arith.constant 13 : index
    %c0_259 = arith.constant 0 : index
    %c64_260 = arith.constant 64 : index
    %239 = vector.load %arg6[%c13_258, %c0_259, %c64_260] : memref<18x8x128xf32, #tpu.memory_space<vmem>>, vector<1x8x32xf32>
    %240 = vector.shape_cast %239 : vector<1x8x32xf32> to vector<8x32xf32>
    %241 = vector.shape_cast %238 : vector<8x32xf32> to vector<1x8x32xf32>
    tpu.vector_store %arg6[%c13_258, %c0_259, %c64_260], %241 {strides = array<i32>} : memref<18x8x128xf32, #tpu.memory_space<vmem>>, vector<1x8x32xf32>,
    %c88_261 = arith.constant 88 : index
    %c32_262 = arith.constant 32 : index
    %242 = vector.load %arg4[%c88_261, %c32_262] : memref<96x192xf32, #tpu.memory_space<vmem>>, vector<8x32xf32>
    %c13_263 = arith.constant 13 : index
    %c0_264 = arith.constant 0 : index
    %c96_265 = arith.constant 96 : index
    %243 = vector.load %arg6[%c13_263, %c0_264, %c96_265] : memref<18x8x128xf32, #tpu.memory_space<vmem>>, vector<1x8x32xf32>
    %244 = vector.shape_cast %243 : vector<1x8x32xf32> to vector<8x32xf32>
    %245 = vector.shape_cast %242 : vector<8x32xf32> to vector<1x8x32xf32>
    tpu.vector_store %arg6[%c13_263, %c0_264, %c96_265], %245 {strides = array<i32>} : memref<18x8x128xf32, #tpu.memory_space<vmem>>, vector<1x8x32xf32>,
    %c64_266 = arith.constant 64 : index
    %c64_267 = arith.constant 64 : index
    %246 = vector.load %arg4[%c64_266, %c64_267] : memref<96x192xf32, #tpu.memory_space<vmem>>, vector<8x32xf32>
    %c14 = arith.constant 14 : index
    %c0_268 = arith.constant 0 : index
    %c0_269 = arith.constant 0 : index
    %247 = vector.load %arg6[%c14, %c0_268, %c0_269] : memref<18x8x128xf32, #tpu.memory_space<vmem>>, vector<1x8x32xf32>
    %248 = vector.shape_cast %247 : vector<1x8x32xf32> to vector<8x32xf32>
    %249 = vector.shape_cast %246 : vector<8x32xf32> to vector<1x8x32xf32>
    tpu.vector_store %arg6[%c14, %c0_268, %c0_269], %249 {strides = array<i32>} : memref<18x8x128xf32, #tpu.memory_space<vmem>>, vector<1x8x32xf32>,
    %c72_270 = arith.constant 72 : index
    %c64_271 = arith.constant 64 : index
    %250 = vector.load %arg4[%c72_270, %c64_271] : memref<96x192xf32, #tpu.memory_space<vmem>>, vector<8x32xf32>
    %c14_272 = arith.constant 14 : index
    %c0_273 = arith.constant 0 : index
    %c32_274 = arith.constant 32 : index
    %251 = vector.load %arg6[%c14_272, %c0_273, %c32_274] : memref<18x8x128xf32, #tpu.memory_space<vmem>>, vector<1x8x32xf32>
    %252 = vector.shape_cast %251 : vector<1x8x32xf32> to vector<8x32xf32>
    %253 = vector.shape_cast %250 : vector<8x32xf32> to vector<1x8x32xf32>
    tpu.vector_store %arg6[%c14_272, %c0_273, %c32_274], %253 {strides = array<i32>} : memref<18x8x128xf32, #tpu.memory_space<vmem>>, vector<1x8x32xf32>,
    %c80_275 = arith.constant 80 : index
    %c64_276 = arith.constant 64 : index
    %254 = vector.load %arg4[%c80_275, %c64_276] : memref<96x192xf32, #tpu.memory_space<vmem>>, vector<8x32xf32>
    %c14_277 = arith.constant 14 : index
    %c0_278 = arith.constant 0 : index
    %c64_279 = arith.constant 64 : index
    %255 = vector.load %arg6[%c14_277, %c0_278, %c64_279] : memref<18x8x128xf32, #tpu.memory_space<vmem>>, vector<1x8x32xf32>
    %256 = vector.shape_cast %255 : vector<1x8x32xf32> to vector<8x32xf32>
    %257 = vector.shape_cast %254 : vector<8x32xf32> to vector<1x8x32xf32>
    tpu.vector_store %arg6[%c14_277, %c0_278, %c64_279], %257 {strides = array<i32>} : memref<18x8x128xf32, #tpu.memory_space<vmem>>, vector<1x8x32xf32>,
    %c88_280 = arith.constant 88 : index
    %c64_281 = arith.constant 64 : index
    %258 = vector.load %arg4[%c88_280, %c64_281] : memref<96x192xf32, #tpu.memory_space<vmem>>, vector<8x32xf32>
    %c14_282 = arith.constant 14 : index
    %c0_283 = arith.constant 0 : index
    %c96_284 = arith.constant 96 : index
    %259 = vector.load %arg6[%c14_282, %c0_283, %c96_284] : memref<18x8x128xf32, #tpu.memory_space<vmem>>, vector<1x8x32xf32>
    %260 = vector.shape_cast %259 : vector<1x8x32xf32> to vector<8x32xf32>
    %261 = vector.shape_cast %258 : vector<8x32xf32> to vector<1x8x32xf32>
    tpu.vector_store %arg6[%c14_282, %c0_283, %c96_284], %261 {strides = array<i32>} : memref<18x8x128xf32, #tpu.memory_space<vmem>>, vector<1x8x32xf32>,
    %c64_285 = arith.constant 64 : index
    %c96_286 = arith.constant 96 : index
    %262 = vector.load %arg5[%c64_285, %c96_286] : memref<96x192xf32, #tpu.memory_space<vmem>>, vector<8x32xf32>
    %c15 = arith.constant 15 : index
    %c0_287 = arith.constant 0 : index
    %c0_288 = arith.constant 0 : index
    %263 = vector.load %arg6[%c15, %c0_287, %c0_288] : memref<18x8x128xf32, #tpu.memory_space<vmem>>, vector<1x8x32xf32>
    %264 = vector.shape_cast %263 : vector<1x8x32xf32> to vector<8x32xf32>
    %265 = vector.shape_cast %262 : vector<8x32xf32> to vector<1x8x32xf32>
    tpu.vector_store %arg6[%c15, %c0_287, %c0_288], %265 {strides = array<i32>} : memref<18x8x128xf32, #tpu.memory_space<vmem>>, vector<1x8x32xf32>,
    %c72_289 = arith.constant 72 : index
    %c96_290 = arith.constant 96 : index
    %266 = vector.load %arg5[%c72_289, %c96_290] : memref<96x192xf32, #tpu.memory_space<vmem>>, vector<8x32xf32>
    %c15_291 = arith.constant 15 : index
    %c0_292 = arith.constant 0 : index
    %c32_293 = arith.constant 32 : index
    %267 = vector.load %arg6[%c15_291, %c0_292, %c32_293] : memref<18x8x128xf32, #tpu.memory_space<vmem>>, vector<1x8x32xf32>
    %268 = vector.shape_cast %267 : vector<1x8x32xf32> to vector<8x32xf32>
    %269 = vector.shape_cast %266 : vector<8x32xf32> to vector<1x8x32xf32>
    tpu.vector_store %arg6[%c15_291, %c0_292, %c32_293], %269 {strides = array<i32>} : memref<18x8x128xf32, #tpu.memory_space<vmem>>, vector<1x8x32xf32>,
    %c80_294 = arith.constant 80 : index
    %c96_295 = arith.constant 96 : index
    %270 = vector.load %arg5[%c80_294, %c96_295] : memref<96x192xf32, #tpu.memory_space<vmem>>, vector<8x32xf32>
    %c15_296 = arith.constant 15 : index
    %c0_297 = arith.constant 0 : index
    %c64_298 = arith.constant 64 : index
    %271 = vector.load %arg6[%c15_296, %c0_297, %c64_298] : memref<18x8x128xf32, #tpu.memory_space<vmem>>, vector<1x8x32xf32>
    %272 = vector.shape_cast %271 : vector<1x8x32xf32> to vector<8x32xf32>
    %273 = vector.shape_cast %270 : vector<8x32xf32> to vector<1x8x32xf32>
    tpu.vector_store %arg6[%c15_296, %c0_297, %c64_298], %273 {strides = array<i32>} : memref<18x8x128xf32, #tpu.memory_space<vmem>>, vector<1x8x32xf32>,
    %c88_299 = arith.constant 88 : index
    %c96_300 = arith.constant 96 : index
    %274 = vector.load %arg5[%c88_299, %c96_300] : memref<96x192xf32, #tpu.memory_space<vmem>>, vector<8x32xf32>
    %c15_301 = arith.constant 15 : index
    %c0_302 = arith.constant 0 : index
    %c96_303 = arith.constant 96 : index
    %275 = vector.load %arg6[%c15_301, %c0_302, %c96_303] : memref<18x8x128xf32, #tpu.memory_space<vmem>>, vector<1x8x32xf32>
    %276 = vector.shape_cast %275 : vector<1x8x32xf32> to vector<8x32xf32>
    %277 = vector.shape_cast %274 : vector<8x32xf32> to vector<1x8x32xf32>
    tpu.vector_store %arg6[%c15_301, %c0_302, %c96_303], %277 {strides = array<i32>} : memref<18x8x128xf32, #tpu.memory_space<vmem>>, vector<1x8x32xf32>,
    %c64_304 = arith.constant 64 : index
    %c128_305 = arith.constant 128 : index
    %278 = vector.load %arg5[%c64_304, %c128_305] : memref<96x192xf32, #tpu.memory_space<vmem>>, vector<8x32xf32>
    %c16_306 = arith.constant 16 : index
    %c0_307 = arith.constant 0 : index
    %c0_308 = arith.constant 0 : index
    %279 = vector.load %arg6[%c16_306, %c0_307, %c0_308] : memref<18x8x128xf32, #tpu.memory_space<vmem>>, vector<1x8x32xf32>
    %280 = vector.shape_cast %279 : vector<1x8x32xf32> to vector<8x32xf32>
    %281 = vector.shape_cast %278 : vector<8x32xf32> to vector<1x8x32xf32>
    tpu.vector_store %arg6[%c16_306, %c0_307, %c0_308], %281 {strides = array<i32>} : memref<18x8x128xf32, #tpu.memory_space<vmem>>, vector<1x8x32xf32>,
    %c72_309 = arith.constant 72 : index
    %c128_310 = arith.constant 128 : index
    %282 = vector.load %arg5[%c72_309, %c128_310] : memref<96x192xf32, #tpu.memory_space<vmem>>, vector<8x32xf32>
    %c16_311 = arith.constant 16 : index
    %c0_312 = arith.constant 0 : index
    %c32_313 = arith.constant 32 : index
    %283 = vector.load %arg6[%c16_311, %c0_312, %c32_313] : memref<18x8x128xf32, #tpu.memory_space<vmem>>, vector<1x8x32xf32>
    %284 = vector.shape_cast %283 : vector<1x8x32xf32> to vector<8x32xf32>
    %285 = vector.shape_cast %282 : vector<8x32xf32> to vector<1x8x32xf32>
    tpu.vector_store %arg6[%c16_311, %c0_312, %c32_313], %285 {strides = array<i32>} : memref<18x8x128xf32, #tpu.memory_space<vmem>>, vector<1x8x32xf32>,
    %c80_314 = arith.constant 80 : index
    %c128_315 = arith.constant 128 : index
    %286 = vector.load %arg5[%c80_314, %c128_315] : memref<96x192xf32, #tpu.memory_space<vmem>>, vector<8x32xf32>
    %c16_316 = arith.constant 16 : index
    %c0_317 = arith.constant 0 : index
    %c64_318 = arith.constant 64 : index
    %287 = vector.load %arg6[%c16_316, %c0_317, %c64_318] : memref<18x8x128xf32, #tpu.memory_space<vmem>>, vector<1x8x32xf32>
    %288 = vector.shape_cast %287 : vector<1x8x32xf32> to vector<8x32xf32>
    %289 = vector.shape_cast %286 : vector<8x32xf32> to vector<1x8x32xf32>
    tpu.vector_store %arg6[%c16_316, %c0_317, %c64_318], %289 {strides = array<i32>} : memref<18x8x128xf32, #tpu.memory_space<vmem>>, vector<1x8x32xf32>,
    %c88_319 = arith.constant 88 : index
    %c128_320 = arith.constant 128 : index
    %290 = vector.load %arg5[%c88_319, %c128_320] : memref<96x192xf32, #tpu.memory_space<vmem>>, vector<8x32xf32>
    %c16_321 = arith.constant 16 : index
    %c0_322 = arith.constant 0 : index
    %c96_323 = arith.constant 96 : index
    %291 = vector.load %arg6[%c16_321, %c0_322, %c96_323] : memref<18x8x128xf32, #tpu.memory_space<vmem>>, vector<1x8x32xf32>
    %292 = vector.shape_cast %291 : vector<1x8x32xf32> to vector<8x32xf32>
    %293 = vector.shape_cast %290 : vector<8x32xf32> to vector<1x8x32xf32>
    tpu.vector_store %arg6[%c16_321, %c0_322, %c96_323], %293 {strides = array<i32>} : memref<18x8x128xf32, #tpu.memory_space<vmem>>, vector<1x8x32xf32>,
    %c64_324 = arith.constant 64 : index
    %c160_325 = arith.constant 160 : index
    %294 = vector.load %arg5[%c64_324, %c160_325] : memref<96x192xf32, #tpu.memory_space<vmem>>, vector<8x32xf32>
    %c17 = arith.constant 17 : index
    %c0_326 = arith.constant 0 : index
    %c0_327 = arith.constant 0 : index
    %295 = vector.load %arg6[%c17, %c0_326, %c0_327] : memref<18x8x128xf32, #tpu.memory_space<vmem>>, vector<1x8x32xf32>
    %296 = vector.shape_cast %295 : vector<1x8x32xf32> to vector<8x32xf32>
    %297 = vector.shape_cast %294 : vector<8x32xf32> to vector<1x8x32xf32>
    tpu.vector_store %arg6[%c17, %c0_326, %c0_327], %297 {strides = array<i32>} : memref<18x8x128xf32, #tpu.memory_space<vmem>>, vector<1x8x32xf32>,
    %c72_328 = arith.constant 72 : index
    %c160_329 = arith.constant 160 : index
    %298 = vector.load %arg5[%c72_328, %c160_329] : memref<96x192xf32, #tpu.memory_space<vmem>>, vector<8x32xf32>
    %c17_330 = arith.constant 17 : index
    %c0_331 = arith.constant 0 : index
    %c32_332 = arith.constant 32 : index
    %299 = vector.load %arg6[%c17_330, %c0_331, %c32_332] : memref<18x8x128xf32, #tpu.memory_space<vmem>>, vector<1x8x32xf32>
    %300 = vector.shape_cast %299 : vector<1x8x32xf32> to vector<8x32xf32>
    %301 = vector.shape_cast %298 : vector<8x32xf32> to vector<1x8x32xf32>
    tpu.vector_store %arg6[%c17_330, %c0_331, %c32_332], %301 {strides = array<i32>} : memref<18x8x128xf32, #tpu.memory_space<vmem>>, vector<1x8x32xf32>,
    %c80_333 = arith.constant 80 : index
    %c160_334 = arith.constant 160 : index
    %302 = vector.load %arg5[%c80_333, %c160_334] : memref<96x192xf32, #tpu.memory_space<vmem>>, vector<8x32xf32>
    %c17_335 = arith.constant 17 : index
    %c0_336 = arith.constant 0 : index
    %c64_337 = arith.constant 64 : index
    %303 = vector.load %arg6[%c17_335, %c0_336, %c64_337] : memref<18x8x128xf32, #tpu.memory_space<vmem>>, vector<1x8x32xf32>
    %304 = vector.shape_cast %303 : vector<1x8x32xf32> to vector<8x32xf32>
    %305 = vector.shape_cast %302 : vector<8x32xf32> to vector<1x8x32xf32>
    tpu.vector_store %arg6[%c17_335, %c0_336, %c64_337], %305 {strides = array<i32>} : memref<18x8x128xf32, #tpu.memory_space<vmem>>, vector<1x8x32xf32>,
    %c88_338 = arith.constant 88 : index
    %c160_339 = arith.constant 160 : index
    %306 = vector.load %arg5[%c88_338, %c160_339] : memref<96x192xf32, #tpu.memory_space<vmem>>, vector<8x32xf32>
    %c17_340 = arith.constant 17 : index
    %c0_341 = arith.constant 0 : index
    %c96_342 = arith.constant 96 : index
    %307 = vector.load %arg6[%c17_340, %c0_341, %c96_342] : memref<18x8x128xf32, #tpu.memory_space<vmem>>, vector<1x8x32xf32>
    %308 = vector.shape_cast %307 : vector<1x8x32xf32> to vector<8x32xf32>
    %309 = vector.shape_cast %306 : vector<8x32xf32> to vector<1x8x32xf32>
    tpu.vector_store %arg6[%c17_340, %c0_341, %c96_342], %309 {strides = array<i32>} : memref<18x8x128xf32, #tpu.memory_space<vmem>>, vector<1x8x32xf32>,
    %cst_343 = arith.constant 0xFF800000 : f32
    %310 = vector.broadcast %cst_343 : f32 to vector<8x128xf32>
    %cst_344 = arith.constant 0.000000e+00 : f32
    %311 = vector.broadcast %cst_344 : f32 to vector<8x128xf32>
    %c0_345 = arith.constant 0 : index
    %c0_346 = arith.constant 0 : index
    %c0_347 = arith.constant 0 : index
    %312 = vector.load %arg6[%c0_345, %c0_346, %c0_347] : memref<18x8x128xf32, #tpu.memory_space<vmem>>, vector<1x8x128xf32>
    %313 = vector.shape_cast %312 : vector<1x8x128xf32> to vector<8x128xf32>
    %314 = arith.cmpf oge, %310, %310 : vector<8x128xf32>
    %315 = arith.select %314, %310, %310 : vector<8x128xi1>, vector<8x128xf32>
    %cst_348 = arith.constant 0.000000e+00 : f32
    %cst_349 = arith.constant 1.000000e+00 : f32
    %316 = vector.broadcast %cst_348 : f32 to vector<8x128xf32>
    %317 = vector.broadcast %cst_349 : f32 to vector<8x128xf32>
    %318 = arith.select %314, %316, %317 : vector<8x128xi1>, vector<8x128xf32>
    %319 = arith.cmpf oge, %315, %311 : vector<8x128xf32>
    %320 = arith.select %319, %315, %311 : vector<8x128xi1>, vector<8x128xf32>
    %321 = arith.addf %320, %313 : vector<8x128xf32>
    %cst_350 = arith.constant 2.000000e+00 : f32
    %322 = vector.broadcast %cst_350 : f32 to vector<8x128xf32>
    %323 = arith.select %319, %318, %322 : vector<8x128xi1>, vector<8x128xf32>
    %c0_351 = arith.constant 0 : index
    %c0_352 = arith.constant 0 : index
    %c0_353 = arith.constant 0 : index
    %324 = vector.load %arg7[%c0_351, %c0_352, %c0_353] : memref<18x8x128xf32, #tpu.memory_space<vmem>>, vector<1x8x128xf32>
    %325 = vector.shape_cast %324 : vector<1x8x128xf32> to vector<8x128xf32>
    %326 = vector.shape_cast %323 : vector<8x128xf32> to vector<1x8x128xf32>
    tpu.vector_store %arg7[%c0_351, %c0_352, %c0_353], %326 {strides = array<i32>} : memref<18x8x128xf32, #tpu.memory_space<vmem>>, vector<1x8x128xf32>,
    %c1_354 = arith.constant 1 : index
    %c0_355 = arith.constant 0 : index
    %c0_356 = arith.constant 0 : index
    %327 = vector.load %arg6[%c1_354, %c0_355, %c0_356] : memref<18x8x128xf32, #tpu.memory_space<vmem>>, vector<1x8x128xf32>
    %328 = vector.shape_cast %327 : vector<1x8x128xf32> to vector<8x128xf32>
    %329 = arith.cmpf oge, %310, %321 : vector<8x128xf32>
    %330 = arith.select %329, %310, %321 : vector<8x128xi1>, vector<8x128xf32>
    %cst_357 = arith.constant 0.000000e+00 : f32
    %cst_358 = arith.constant 1.000000e+00 : f32
    %331 = vector.broadcast %cst_357 : f32 to vector<8x128xf32>
    %332 = vector.broadcast %cst_358 : f32 to vector<8x128xf32>
    %333 = arith.select %329, %331, %332 : vector<8x128xi1>, vector<8x128xf32>
    %334 = arith.cmpf oge, %330, %310 : vector<8x128xf32>
    %335 = arith.select %334, %330, %310 : vector<8x128xi1>, vector<8x128xf32>
    %336 = arith.addf %335, %328 : vector<8x128xf32>
    %cst_359 = arith.constant 2.000000e+00 : f32
    %337 = vector.broadcast %cst_359 : f32 to vector<8x128xf32>
    %338 = arith.select %334, %333, %337 : vector<8x128xi1>, vector<8x128xf32>
    %c1_360 = arith.constant 1 : index
    %c0_361 = arith.constant 0 : index
    %c0_362 = arith.constant 0 : index
    %339 = vector.load %arg7[%c1_360, %c0_361, %c0_362] : memref<18x8x128xf32, #tpu.memory_space<vmem>>, vector<1x8x128xf32>
    %340 = vector.shape_cast %339 : vector<1x8x128xf32> to vector<8x128xf32>
    %341 = vector.shape_cast %338 : vector<8x128xf32> to vector<1x8x128xf32>
    tpu.vector_store %arg7[%c1_360, %c0_361, %c0_362], %341 {strides = array<i32>} : memref<18x8x128xf32, #tpu.memory_space<vmem>>, vector<1x8x128xf32>,
    %c2_363 = arith.constant 2 : index
    %c0_364 = arith.constant 0 : index
    %c0_365 = arith.constant 0 : index
    %342 = vector.load %arg6[%c2_363, %c0_364, %c0_365] : memref<18x8x128xf32, #tpu.memory_space<vmem>>, vector<1x8x128xf32>
    %343 = vector.shape_cast %342 : vector<1x8x128xf32> to vector<8x128xf32>
    %344 = arith.cmpf oge, %310, %336 : vector<8x128xf32>
    %345 = arith.select %344, %310, %336 : vector<8x128xi1>, vector<8x128xf32>
    %cst_366 = arith.constant 0.000000e+00 : f32
    %cst_367 = arith.constant 1.000000e+00 : f32
    %346 = vector.broadcast %cst_366 : f32 to vector<8x128xf32>
    %347 = vector.broadcast %cst_367 : f32 to vector<8x128xf32>
    %348 = arith.select %344, %346, %347 : vector<8x128xi1>, vector<8x128xf32>
    %349 = arith.cmpf oge, %345, %310 : vector<8x128xf32>
    %350 = arith.select %349, %345, %310 : vector<8x128xi1>, vector<8x128xf32>
    %351 = arith.addf %350, %343 : vector<8x128xf32>
    %cst_368 = arith.constant 2.000000e+00 : f32
    %352 = vector.broadcast %cst_368 : f32 to vector<8x128xf32>
    %353 = arith.select %349, %348, %352 : vector<8x128xi1>, vector<8x128xf32>
    %c2_369 = arith.constant 2 : index
    %c0_370 = arith.constant 0 : index
    %c0_371 = arith.constant 0 : index
    %354 = vector.load %arg7[%c2_369, %c0_370, %c0_371] : memref<18x8x128xf32, #tpu.memory_space<vmem>>, vector<1x8x128xf32>
    %355 = vector.shape_cast %354 : vector<1x8x128xf32> to vector<8x128xf32>
    %356 = vector.shape_cast %353 : vector<8x128xf32> to vector<1x8x128xf32>
    tpu.vector_store %arg7[%c2_369, %c0_370, %c0_371], %356 {strides = array<i32>} : memref<18x8x128xf32, #tpu.memory_space<vmem>>, vector<1x8x128xf32>,
    %c3_372 = arith.constant 3 : index
    %c0_373 = arith.constant 0 : index
    %c0_374 = arith.constant 0 : index
    %357 = vector.load %arg6[%c3_372, %c0_373, %c0_374] : memref<18x8x128xf32, #tpu.memory_space<vmem>>, vector<1x8x128xf32>
    %358 = vector.shape_cast %357 : vector<1x8x128xf32> to vector<8x128xf32>
    %359 = arith.cmpf oge, %310, %351 : vector<8x128xf32>
    %360 = arith.select %359, %310, %351 : vector<8x128xi1>, vector<8x128xf32>
    %cst_375 = arith.constant 0.000000e+00 : f32
    %cst_376 = arith.constant 1.000000e+00 : f32
    %361 = vector.broadcast %cst_375 : f32 to vector<8x128xf32>
    %362 = vector.broadcast %cst_376 : f32 to vector<8x128xf32>
    %363 = arith.select %359, %361, %362 : vector<8x128xi1>, vector<8x128xf32>
    %364 = arith.cmpf oge, %360, %310 : vector<8x128xf32>
    %365 = arith.select %364, %360, %310 : vector<8x128xi1>, vector<8x128xf32>
    %366 = arith.addf %365, %358 : vector<8x128xf32>
    %cst_377 = arith.constant 2.000000e+00 : f32
    %367 = vector.broadcast %cst_377 : f32 to vector<8x128xf32>
    %368 = arith.select %364, %363, %367 : vector<8x128xi1>, vector<8x128xf32>
    %c3_378 = arith.constant 3 : index
    %c0_379 = arith.constant 0 : index
    %c0_380 = arith.constant 0 : index
    %369 = vector.load %arg7[%c3_378, %c0_379, %c0_380] : memref<18x8x128xf32, #tpu.memory_space<vmem>>, vector<1x8x128xf32>
    %370 = vector.shape_cast %369 : vector<1x8x128xf32> to vector<8x128xf32>
    %371 = vector.shape_cast %368 : vector<8x128xf32> to vector<1x8x128xf32>
    tpu.vector_store %arg7[%c3_378, %c0_379, %c0_380], %371 {strides = array<i32>} : memref<18x8x128xf32, #tpu.memory_space<vmem>>, vector<1x8x128xf32>,
    %c4_381 = arith.constant 4 : index
    %c0_382 = arith.constant 0 : index
    %c0_383 = arith.constant 0 : index
    %372 = vector.load %arg6[%c4_381, %c0_382, %c0_383] : memref<18x8x128xf32, #tpu.memory_space<vmem>>, vector<1x8x128xf32>
    %373 = vector.shape_cast %372 : vector<1x8x128xf32> to vector<8x128xf32>
    %374 = arith.cmpf oge, %310, %366 : vector<8x128xf32>
    %375 = arith.select %374, %310, %366 : vector<8x128xi1>, vector<8x128xf32>
    %cst_384 = arith.constant 0.000000e+00 : f32
    %cst_385 = arith.constant 1.000000e+00 : f32
    %376 = vector.broadcast %cst_384 : f32 to vector<8x128xf32>
    %377 = vector.broadcast %cst_385 : f32 to vector<8x128xf32>
    %378 = arith.select %374, %376, %377 : vector<8x128xi1>, vector<8x128xf32>
    %379 = arith.cmpf oge, %375, %310 : vector<8x128xf32>
    %380 = arith.select %379, %375, %310 : vector<8x128xi1>, vector<8x128xf32>
    %381 = arith.addf %380, %373 : vector<8x128xf32>
    %cst_386 = arith.constant 2.000000e+00 : f32
    %382 = vector.broadcast %cst_386 : f32 to vector<8x128xf32>
    %383 = arith.select %379, %378, %382 : vector<8x128xi1>, vector<8x128xf32>
    %c4_387 = arith.constant 4 : index
    %c0_388 = arith.constant 0 : index
    %c0_389 = arith.constant 0 : index
    %384 = vector.load %arg7[%c4_387, %c0_388, %c0_389] : memref<18x8x128xf32, #tpu.memory_space<vmem>>, vector<1x8x128xf32>
    %385 = vector.shape_cast %384 : vector<1x8x128xf32> to vector<8x128xf32>
    %386 = vector.shape_cast %383 : vector<8x128xf32> to vector<1x8x128xf32>
    tpu.vector_store %arg7[%c4_387, %c0_388, %c0_389], %386 {strides = array<i32>} : memref<18x8x128xf32, #tpu.memory_space<vmem>>, vector<1x8x128xf32>,
    %c5_390 = arith.constant 5 : index
    %c0_391 = arith.constant 0 : index
    %c0_392 = arith.constant 0 : index
    %387 = vector.load %arg6[%c5_390, %c0_391, %c0_392] : memref<18x8x128xf32, #tpu.memory_space<vmem>>, vector<1x8x128xf32>
    %388 = vector.shape_cast %387 : vector<1x8x128xf32> to vector<8x128xf32>
    %389 = arith.cmpf oge, %310, %381 : vector<8x128xf32>
    %390 = arith.select %389, %310, %381 : vector<8x128xi1>, vector<8x128xf32>
    %cst_393 = arith.constant 0.000000e+00 : f32
    %cst_394 = arith.constant 1.000000e+00 : f32
    %391 = vector.broadcast %cst_393 : f32 to vector<8x128xf32>
    %392 = vector.broadcast %cst_394 : f32 to vector<8x128xf32>
    %393 = arith.select %389, %391, %392 : vector<8x128xi1>, vector<8x128xf32>
    %394 = arith.cmpf oge, %390, %310 : vector<8x128xf32>
    %395 = arith.select %394, %390, %310 : vector<8x128xi1>, vector<8x128xf32>
    %396 = arith.addf %395, %388 : vector<8x128xf32>
    %cst_395 = arith.constant 2.000000e+00 : f32
    %397 = vector.broadcast %cst_395 : f32 to vector<8x128xf32>
    %398 = arith.select %394, %393, %397 : vector<8x128xi1>, vector<8x128xf32>
    %c5_396 = arith.constant 5 : index
    %c0_397 = arith.constant 0 : index
    %c0_398 = arith.constant 0 : index
    %399 = vector.load %arg7[%c5_396, %c0_397, %c0_398] : memref<18x8x128xf32, #tpu.memory_space<vmem>>, vector<1x8x128xf32>
    %400 = vector.shape_cast %399 : vector<1x8x128xf32> to vector<8x128xf32>
    %401 = vector.shape_cast %398 : vector<8x128xf32> to vector<1x8x128xf32>
    tpu.vector_store %arg7[%c5_396, %c0_397, %c0_398], %401 {strides = array<i32>} : memref<18x8x128xf32, #tpu.memory_space<vmem>>, vector<1x8x128xf32>,
    %c6_399 = arith.constant 6 : index
    %c0_400 = arith.constant 0 : index
    %c0_401 = arith.constant 0 : index
    %402 = vector.load %arg6[%c6_399, %c0_400, %c0_401] : memref<18x8x128xf32, #tpu.memory_space<vmem>>, vector<1x8x128xf32>
    %403 = vector.shape_cast %402 : vector<1x8x128xf32> to vector<8x128xf32>
    %404 = arith.cmpf oge, %321, %310 : vector<8x128xf32>
    %405 = arith.select %404, %321, %310 : vector<8x128xi1>, vector<8x128xf32>
    %cst_402 = arith.constant 0.000000e+00 : f32
    %cst_403 = arith.constant 1.000000e+00 : f32
    %406 = vector.broadcast %cst_402 : f32 to vector<8x128xf32>
    %407 = vector.broadcast %cst_403 : f32 to vector<8x128xf32>
    %408 = arith.select %404, %406, %407 : vector<8x128xi1>, vector<8x128xf32>
    %409 = arith.cmpf oge, %405, %310 : vector<8x128xf32>
    %410 = arith.select %409, %405, %310 : vector<8x128xi1>, vector<8x128xf32>
    %411 = arith.addf %410, %403 : vector<8x128xf32>
    %cst_404 = arith.constant 2.000000e+00 : f32
    %412 = vector.broadcast %cst_404 : f32 to vector<8x128xf32>
    %413 = arith.select %409, %408, %412 : vector<8x128xi1>, vector<8x128xf32>
    %c6_405 = arith.constant 6 : index
    %c0_406 = arith.constant 0 : index
    %c0_407 = arith.constant 0 : index
    %414 = vector.load %arg7[%c6_405, %c0_406, %c0_407] : memref<18x8x128xf32, #tpu.memory_space<vmem>>, vector<1x8x128xf32>
    %415 = vector.shape_cast %414 : vector<1x8x128xf32> to vector<8x128xf32>
    %416 = vector.shape_cast %413 : vector<8x128xf32> to vector<1x8x128xf32>
    tpu.vector_store %arg7[%c6_405, %c0_406, %c0_407], %416 {strides = array<i32>} : memref<18x8x128xf32, #tpu.memory_space<vmem>>, vector<1x8x128xf32>,
    %c7_408 = arith.constant 7 : index
    %c0_409 = arith.constant 0 : index
    %c0_410 = arith.constant 0 : index
    %417 = vector.load %arg6[%c7_408, %c0_409, %c0_410] : memref<18x8x128xf32, #tpu.memory_space<vmem>>, vector<1x8x128xf32>
    %418 = vector.shape_cast %417 : vector<1x8x128xf32> to vector<8x128xf32>
    %419 = arith.cmpf oge, %336, %411 : vector<8x128xf32>
    %420 = arith.select %419, %336, %411 : vector<8x128xi1>, vector<8x128xf32>
    %cst_411 = arith.constant 0.000000e+00 : f32
    %cst_412 = arith.constant 1.000000e+00 : f32
    %421 = vector.broadcast %cst_411 : f32 to vector<8x128xf32>
    %422 = vector.broadcast %cst_412 : f32 to vector<8x128xf32>
    %423 = arith.select %419, %421, %422 : vector<8x128xi1>, vector<8x128xf32>
    %424 = arith.cmpf oge, %420, %321 : vector<8x128xf32>
    %425 = arith.select %424, %420, %321 : vector<8x128xi1>, vector<8x128xf32>
    %426 = arith.addf %425, %418 : vector<8x128xf32>
    %cst_413 = arith.constant 2.000000e+00 : f32
    %427 = vector.broadcast %cst_413 : f32 to vector<8x128xf32>
    %428 = arith.select %424, %423, %427 : vector<8x128xi1>, vector<8x128xf32>
    %c7_414 = arith.constant 7 : index
    %c0_415 = arith.constant 0 : index
    %c0_416 = arith.constant 0 : index
    %429 = vector.load %arg7[%c7_414, %c0_415, %c0_416] : memref<18x8x128xf32, #tpu.memory_space<vmem>>, vector<1x8x128xf32>
    %430 = vector.shape_cast %429 : vector<1x8x128xf32> to vector<8x128xf32>
    %431 = vector.shape_cast %428 : vector<8x128xf32> to vector<1x8x128xf32>
    tpu.vector_store %arg7[%c7_414, %c0_415, %c0_416], %431 {strides = array<i32>} : memref<18x8x128xf32, #tpu.memory_space<vmem>>, vector<1x8x128xf32>,
    %c8_417 = arith.constant 8 : index
    %c0_418 = arith.constant 0 : index
    %c0_419 = arith.constant 0 : index
    %432 = vector.load %arg6[%c8_417, %c0_418, %c0_419] : memref<18x8x128xf32, #tpu.memory_space<vmem>>, vector<1x8x128xf32>
    %433 = vector.shape_cast %432 : vector<1x8x128xf32> to vector<8x128xf32>
    %434 = arith.cmpf oge, %351, %426 : vector<8x128xf32>
    %435 = arith.select %434, %351, %426 : vector<8x128xi1>, vector<8x128xf32>
    %cst_420 = arith.constant 0.000000e+00 : f32
    %cst_421 = arith.constant 1.000000e+00 : f32
    %436 = vector.broadcast %cst_420 : f32 to vector<8x128xf32>
    %437 = vector.broadcast %cst_421 : f32 to vector<8x128xf32>
    %438 = arith.select %434, %436, %437 : vector<8x128xi1>, vector<8x128xf32>
    %439 = arith.cmpf oge, %435, %336 : vector<8x128xf32>
    %440 = arith.select %439, %435, %336 : vector<8x128xi1>, vector<8x128xf32>
    %441 = arith.addf %440, %433 : vector<8x128xf32>
    %cst_422 = arith.constant 2.000000e+00 : f32
    %442 = vector.broadcast %cst_422 : f32 to vector<8x128xf32>
    %443 = arith.select %439, %438, %442 : vector<8x128xi1>, vector<8x128xf32>
    %c8_423 = arith.constant 8 : index
    %c0_424 = arith.constant 0 : index
    %c0_425 = arith.constant 0 : index
    %444 = vector.load %arg7[%c8_423, %c0_424, %c0_425] : memref<18x8x128xf32, #tpu.memory_space<vmem>>, vector<1x8x128xf32>
    %445 = vector.shape_cast %444 : vector<1x8x128xf32> to vector<8x128xf32>
    %446 = vector.shape_cast %443 : vector<8x128xf32> to vector<1x8x128xf32>
    tpu.vector_store %arg7[%c8_423, %c0_424, %c0_425], %446 {strides = array<i32>} : memref<18x8x128xf32, #tpu.memory_space<vmem>>, vector<1x8x128xf32>,
    %c9_426 = arith.constant 9 : index
    %c0_427 = arith.constant 0 : index
    %c0_428 = arith.constant 0 : index
    %447 = vector.load %arg6[%c9_426, %c0_427, %c0_428] : memref<18x8x128xf32, #tpu.memory_space<vmem>>, vector<1x8x128xf32>
    %448 = vector.shape_cast %447 : vector<1x8x128xf32> to vector<8x128xf32>
    %449 = arith.cmpf oge, %366, %441 : vector<8x128xf32>
    %450 = arith.select %449, %366, %441 : vector<8x128xi1>, vector<8x128xf32>
    %cst_429 = arith.constant 0.000000e+00 : f32
    %cst_430 = arith.constant 1.000000e+00 : f32
    %451 = vector.broadcast %cst_429 : f32 to vector<8x128xf32>
    %452 = vector.broadcast %cst_430 : f32 to vector<8x128xf32>
    %453 = arith.select %449, %451, %452 : vector<8x128xi1>, vector<8x128xf32>
    %454 = arith.cmpf oge, %450, %351 : vector<8x128xf32>
    %455 = arith.select %454, %450, %351 : vector<8x128xi1>, vector<8x128xf32>
    %456 = arith.addf %455, %448 : vector<8x128xf32>
    %cst_431 = arith.constant 2.000000e+00 : f32
    %457 = vector.broadcast %cst_431 : f32 to vector<8x128xf32>
    %458 = arith.select %454, %453, %457 : vector<8x128xi1>, vector<8x128xf32>
    %c9_432 = arith.constant 9 : index
    %c0_433 = arith.constant 0 : index
    %c0_434 = arith.constant 0 : index
    %459 = vector.load %arg7[%c9_432, %c0_433, %c0_434] : memref<18x8x128xf32, #tpu.memory_space<vmem>>, vector<1x8x128xf32>
    %460 = vector.shape_cast %459 : vector<1x8x128xf32> to vector<8x128xf32>
    %461 = vector.shape_cast %458 : vector<8x128xf32> to vector<1x8x128xf32>
    tpu.vector_store %arg7[%c9_432, %c0_433, %c0_434], %461 {strides = array<i32>} : memref<18x8x128xf32, #tpu.memory_space<vmem>>, vector<1x8x128xf32>,
    %c10_435 = arith.constant 10 : index
    %c0_436 = arith.constant 0 : index
    %c0_437 = arith.constant 0 : index
    %462 = vector.load %arg6[%c10_435, %c0_436, %c0_437] : memref<18x8x128xf32, #tpu.memory_space<vmem>>, vector<1x8x128xf32>
    %463 = vector.shape_cast %462 : vector<1x8x128xf32> to vector<8x128xf32>
    %464 = arith.cmpf oge, %381, %456 : vector<8x128xf32>
    %465 = arith.select %464, %381, %456 : vector<8x128xi1>, vector<8x128xf32>
    %cst_438 = arith.constant 0.000000e+00 : f32
    %cst_439 = arith.constant 1.000000e+00 : f32
    %466 = vector.broadcast %cst_438 : f32 to vector<8x128xf32>
    %467 = vector.broadcast %cst_439 : f32 to vector<8x128xf32>
    %468 = arith.select %464, %466, %467 : vector<8x128xi1>, vector<8x128xf32>
    %469 = arith.cmpf oge, %465, %366 : vector<8x128xf32>
    %470 = arith.select %469, %465, %366 : vector<8x128xi1>, vector<8x128xf32>
    %471 = arith.addf %470, %463 : vector<8x128xf32>
    %cst_440 = arith.constant 2.000000e+00 : f32
    %472 = vector.broadcast %cst_440 : f32 to vector<8x128xf32>
    %473 = arith.select %469, %468, %472 : vector<8x128xi1>, vector<8x128xf32>
    %c10_441 = arith.constant 10 : index
    %c0_442 = arith.constant 0 : index
    %c0_443 = arith.constant 0 : index
    %474 = vector.load %arg7[%c10_441, %c0_442, %c0_443] : memref<18x8x128xf32, #tpu.memory_space<vmem>>, vector<1x8x128xf32>
    %475 = vector.shape_cast %474 : vector<1x8x128xf32> to vector<8x128xf32>
    %476 = vector.shape_cast %473 : vector<8x128xf32> to vector<1x8x128xf32>
    tpu.vector_store %arg7[%c10_441, %c0_442, %c0_443], %476 {strides = array<i32>} : memref<18x8x128xf32, #tpu.memory_space<vmem>>, vector<1x8x128xf32>,
    %c11_444 = arith.constant 11 : index
    %c0_445 = arith.constant 0 : index
    %c0_446 = arith.constant 0 : index
    %477 = vector.load %arg6[%c11_444, %c0_445, %c0_446] : memref<18x8x128xf32, #tpu.memory_space<vmem>>, vector<1x8x128xf32>
    %478 = vector.shape_cast %477 : vector<1x8x128xf32> to vector<8x128xf32>
    %479 = arith.cmpf oge, %396, %471 : vector<8x128xf32>
    %480 = arith.select %479, %396, %471 : vector<8x128xi1>, vector<8x128xf32>
    %cst_447 = arith.constant 0.000000e+00 : f32
    %cst_448 = arith.constant 1.000000e+00 : f32
    %481 = vector.broadcast %cst_447 : f32 to vector<8x128xf32>
    %482 = vector.broadcast %cst_448 : f32 to vector<8x128xf32>
    %483 = arith.select %479, %481, %482 : vector<8x128xi1>, vector<8x128xf32>
    %484 = arith.cmpf oge, %480, %381 : vector<8x128xf32>
    %485 = arith.select %484, %480, %381 : vector<8x128xi1>, vector<8x128xf32>
    %486 = arith.addf %485, %478 : vector<8x128xf32>
    %cst_449 = arith.constant 2.000000e+00 : f32
    %487 = vector.broadcast %cst_449 : f32 to vector<8x128xf32>
    %488 = arith.select %484, %483, %487 : vector<8x128xi1>, vector<8x128xf32>
    %c11_450 = arith.constant 11 : index
    %c0_451 = arith.constant 0 : index
    %c0_452 = arith.constant 0 : index
    %489 = vector.load %arg7[%c11_450, %c0_451, %c0_452] : memref<18x8x128xf32, #tpu.memory_space<vmem>>, vector<1x8x128xf32>
    %490 = vector.shape_cast %489 : vector<1x8x128xf32> to vector<8x128xf32>
    %491 = vector.shape_cast %488 : vector<8x128xf32> to vector<1x8x128xf32>
    tpu.vector_store %arg7[%c11_450, %c0_451, %c0_452], %491 {strides = array<i32>} : memref<18x8x128xf32, #tpu.memory_space<vmem>>, vector<1x8x128xf32>,
    %c12_453 = arith.constant 12 : index
    %c0_454 = arith.constant 0 : index
    %c0_455 = arith.constant 0 : index
    %492 = vector.load %arg6[%c12_453, %c0_454, %c0_455] : memref<18x8x128xf32, #tpu.memory_space<vmem>>, vector<1x8x128xf32>
    %493 = vector.shape_cast %492 : vector<1x8x128xf32> to vector<8x128xf32>
    %494 = arith.cmpf oge, %411, %310 : vector<8x128xf32>
    %495 = arith.select %494, %411, %310 : vector<8x128xi1>, vector<8x128xf32>
    %cst_456 = arith.constant 0.000000e+00 : f32
    %cst_457 = arith.constant 1.000000e+00 : f32
    %496 = vector.broadcast %cst_456 : f32 to vector<8x128xf32>
    %497 = vector.broadcast %cst_457 : f32 to vector<8x128xf32>
    %498 = arith.select %494, %496, %497 : vector<8x128xi1>, vector<8x128xf32>
    %499 = arith.cmpf oge, %495, %310 : vector<8x128xf32>
    %500 = arith.select %499, %495, %310 : vector<8x128xi1>, vector<8x128xf32>
    %501 = arith.addf %500, %493 : vector<8x128xf32>
    %cst_458 = arith.constant 2.000000e+00 : f32
    %502 = vector.broadcast %cst_458 : f32 to vector<8x128xf32>
    %503 = arith.select %499, %498, %502 : vector<8x128xi1>, vector<8x128xf32>
    %c12_459 = arith.constant 12 : index
    %c0_460 = arith.constant 0 : index
    %c0_461 = arith.constant 0 : index
    %504 = vector.load %arg7[%c12_459, %c0_460, %c0_461] : memref<18x8x128xf32, #tpu.memory_space<vmem>>, vector<1x8x128xf32>
    %505 = vector.shape_cast %504 : vector<1x8x128xf32> to vector<8x128xf32>
    %506 = vector.shape_cast %503 : vector<8x128xf32> to vector<1x8x128xf32>
    tpu.vector_store %arg7[%c12_459, %c0_460, %c0_461], %506 {strides = array<i32>} : memref<18x8x128xf32, #tpu.memory_space<vmem>>, vector<1x8x128xf32>,
    %c13_462 = arith.constant 13 : index
    %c0_463 = arith.constant 0 : index
    %c0_464 = arith.constant 0 : index
    %507 = vector.load %arg6[%c13_462, %c0_463, %c0_464] : memref<18x8x128xf32, #tpu.memory_space<vmem>>, vector<1x8x128xf32>
    %508 = vector.shape_cast %507 : vector<1x8x128xf32> to vector<8x128xf32>
    %509 = arith.cmpf oge, %426, %501 : vector<8x128xf32>
    %510 = arith.select %509, %426, %501 : vector<8x128xi1>, vector<8x128xf32>
    %cst_465 = arith.constant 0.000000e+00 : f32
    %cst_466 = arith.constant 1.000000e+00 : f32
    %511 = vector.broadcast %cst_465 : f32 to vector<8x128xf32>
    %512 = vector.broadcast %cst_466 : f32 to vector<8x128xf32>
    %513 = arith.select %509, %511, %512 : vector<8x128xi1>, vector<8x128xf32>
    %514 = arith.cmpf oge, %510, %411 : vector<8x128xf32>
    %515 = arith.select %514, %510, %411 : vector<8x128xi1>, vector<8x128xf32>
    %516 = arith.addf %515, %508 : vector<8x128xf32>
    %cst_467 = arith.constant 2.000000e+00 : f32
    %517 = vector.broadcast %cst_467 : f32 to vector<8x128xf32>
    %518 = arith.select %514, %513, %517 : vector<8x128xi1>, vector<8x128xf32>
    %c13_468 = arith.constant 13 : index
    %c0_469 = arith.constant 0 : index
    %c0_470 = arith.constant 0 : index
    %519 = vector.load %arg7[%c13_468, %c0_469, %c0_470] : memref<18x8x128xf32, #tpu.memory_space<vmem>>, vector<1x8x128xf32>
    %520 = vector.shape_cast %519 : vector<1x8x128xf32> to vector<8x128xf32>
    %521 = vector.shape_cast %518 : vector<8x128xf32> to vector<1x8x128xf32>
    tpu.vector_store %arg7[%c13_468, %c0_469, %c0_470], %521 {strides = array<i32>} : memref<18x8x128xf32, #tpu.memory_space<vmem>>, vector<1x8x128xf32>,
    %c14_471 = arith.constant 14 : index
    %c0_472 = arith.constant 0 : index
    %c0_473 = arith.constant 0 : index
    %522 = vector.load %arg6[%c14_471, %c0_472, %c0_473] : memref<18x8x128xf32, #tpu.memory_space<vmem>>, vector<1x8x128xf32>
    %523 = vector.shape_cast %522 : vector<1x8x128xf32> to vector<8x128xf32>
    %524 = arith.cmpf oge, %441, %516 : vector<8x128xf32>
    %525 = arith.select %524, %441, %516 : vector<8x128xi1>, vector<8x128xf32>
    %cst_474 = arith.constant 0.000000e+00 : f32
    %cst_475 = arith.constant 1.000000e+00 : f32
    %526 = vector.broadcast %cst_474 : f32 to vector<8x128xf32>
    %527 = vector.broadcast %cst_475 : f32 to vector<8x128xf32>
    %528 = arith.select %524, %526, %527 : vector<8x128xi1>, vector<8x128xf32>
    %529 = arith.cmpf oge, %525, %426 : vector<8x128xf32>
    %530 = arith.select %529, %525, %426 : vector<8x128xi1>, vector<8x128xf32>
    %531 = arith.addf %530, %523 : vector<8x128xf32>
    %cst_476 = arith.constant 2.000000e+00 : f32
    %532 = vector.broadcast %cst_476 : f32 to vector<8x128xf32>
    %533 = arith.select %529, %528, %532 : vector<8x128xi1>, vector<8x128xf32>
    %c14_477 = arith.constant 14 : index
    %c0_478 = arith.constant 0 : index
    %c0_479 = arith.constant 0 : index
    %534 = vector.load %arg7[%c14_477, %c0_478, %c0_479] : memref<18x8x128xf32, #tpu.memory_space<vmem>>, vector<1x8x128xf32>
    %535 = vector.shape_cast %534 : vector<1x8x128xf32> to vector<8x128xf32>
    %536 = vector.shape_cast %533 : vector<8x128xf32> to vector<1x8x128xf32>
    tpu.vector_store %arg7[%c14_477, %c0_478, %c0_479], %536 {strides = array<i32>} : memref<18x8x128xf32, #tpu.memory_space<vmem>>, vector<1x8x128xf32>,
    %c15_480 = arith.constant 15 : index
    %c0_481 = arith.constant 0 : index
    %c0_482 = arith.constant 0 : index
    %537 = vector.load %arg6[%c15_480, %c0_481, %c0_482] : memref<18x8x128xf32, #tpu.memory_space<vmem>>, vector<1x8x128xf32>
    %538 = vector.shape_cast %537 : vector<1x8x128xf32> to vector<8x128xf32>
    %539 = arith.cmpf oge, %456, %531 : vector<8x128xf32>
    %540 = arith.select %539, %456, %531 : vector<8x128xi1>, vector<8x128xf32>
    %cst_483 = arith.constant 0.000000e+00 : f32
    %cst_484 = arith.constant 1.000000e+00 : f32
    %541 = vector.broadcast %cst_483 : f32 to vector<8x128xf32>
    %542 = vector.broadcast %cst_484 : f32 to vector<8x128xf32>
    %543 = arith.select %539, %541, %542 : vector<8x128xi1>, vector<8x128xf32>
    %544 = arith.cmpf oge, %540, %441 : vector<8x128xf32>
    %545 = arith.select %544, %540, %441 : vector<8x128xi1>, vector<8x128xf32>
    %546 = arith.addf %545, %538 : vector<8x128xf32>
    %cst_485 = arith.constant 2.000000e+00 : f32
    %547 = vector.broadcast %cst_485 : f32 to vector<8x128xf32>
    %548 = arith.select %544, %543, %547 : vector<8x128xi1>, vector<8x128xf32>
    %c15_486 = arith.constant 15 : index
    %c0_487 = arith.constant 0 : index
    %c0_488 = arith.constant 0 : index
    %549 = vector.load %arg7[%c15_486, %c0_487, %c0_488] : memref<18x8x128xf32, #tpu.memory_space<vmem>>, vector<1x8x128xf32>
    %550 = vector.shape_cast %549 : vector<1x8x128xf32> to vector<8x128xf32>
    %551 = vector.shape_cast %548 : vector<8x128xf32> to vector<1x8x128xf32>
    tpu.vector_store %arg7[%c15_486, %c0_487, %c0_488], %551 {strides = array<i32>} : memref<18x8x128xf32, #tpu.memory_space<vmem>>, vector<1x8x128xf32>,
    %c16_489 = arith.constant 16 : index
    %c0_490 = arith.constant 0 : index
    %c0_491 = arith.constant 0 : index
    %552 = vector.load %arg6[%c16_489, %c0_490, %c0_491] : memref<18x8x128xf32, #tpu.memory_space<vmem>>, vector<1x8x128xf32>
    %553 = vector.shape_cast %552 : vector<1x8x128xf32> to vector<8x128xf32>
    %554 = arith.cmpf oge, %471, %546 : vector<8x128xf32>
    %555 = arith.select %554, %471, %546 : vector<8x128xi1>, vector<8x128xf32>
    %cst_492 = arith.constant 0.000000e+00 : f32
    %cst_493 = arith.constant 1.000000e+00 : f32
    %556 = vector.broadcast %cst_492 : f32 to vector<8x128xf32>
    %557 = vector.broadcast %cst_493 : f32 to vector<8x128xf32>
    %558 = arith.select %554, %556, %557 : vector<8x128xi1>, vector<8x128xf32>
    %559 = arith.cmpf oge, %555, %456 : vector<8x128xf32>
    %560 = arith.select %559, %555, %456 : vector<8x128xi1>, vector<8x128xf32>
    %561 = arith.addf %560, %553 : vector<8x128xf32>
    %cst_494 = arith.constant 2.000000e+00 : f32
    %562 = vector.broadcast %cst_494 : f32 to vector<8x128xf32>
    %563 = arith.select %559, %558, %562 : vector<8x128xi1>, vector<8x128xf32>
    %c16_495 = arith.constant 16 : index
    %c0_496 = arith.constant 0 : index
    %c0_497 = arith.constant 0 : index
    %564 = vector.load %arg7[%c16_495, %c0_496, %c0_497] : memref<18x8x128xf32, #tpu.memory_space<vmem>>, vector<1x8x128xf32>
    %565 = vector.shape_cast %564 : vector<1x8x128xf32> to vector<8x128xf32>
    %566 = vector.shape_cast %563 : vector<8x128xf32> to vector<1x8x128xf32>
    tpu.vector_store %arg7[%c16_495, %c0_496, %c0_497], %566 {strides = array<i32>} : memref<18x8x128xf32, #tpu.memory_space<vmem>>, vector<1x8x128xf32>,
    %567 = arith.cmpf oge, %486, %561 : vector<8x128xf32>
    %568 = arith.select %567, %486, %561 : vector<8x128xi1>, vector<8x128xf32>
    %cst_498 = arith.constant 0.000000e+00 : f32
    %cst_499 = arith.constant 1.000000e+00 : f32
    %569 = vector.broadcast %cst_498 : f32 to vector<8x128xf32>
    %570 = vector.broadcast %cst_499 : f32 to vector<8x128xf32>
    %571 = arith.select %567, %569, %570 : vector<8x128xi1>, vector<8x128xf32>
    %572 = arith.cmpf oge, %568, %471 : vector<8x128xf32>
    %cst_500 = arith.constant 2.000000e+00 : f32
    %573 = vector.broadcast %cst_500 : f32 to vector<8x128xf32>
    %574 = arith.select %572, %571, %573 : vector<8x128xi1>, vector<8x128xf32>
    %c17_501 = arith.constant 17 : index
    %c0_502 = arith.constant 0 : index
    %c0_503 = arith.constant 0 : index
    %575 = vector.load %arg7[%c17_501, %c0_502, %c0_503] : memref<18x8x128xf32, #tpu.memory_space<vmem>>, vector<1x8x128xf32>
    %576 = vector.shape_cast %575 : vector<1x8x128xf32> to vector<8x128xf32>
    %577 = vector.shape_cast %574 : vector<8x128xf32> to vector<1x8x128xf32>
    tpu.vector_store %arg7[%c17_501, %c0_502, %c0_503], %577 {strides = array<i32>} : memref<18x8x128xf32, #tpu.memory_space<vmem>>, vector<1x8x128xf32>,
    %c17_504 = arith.constant 17 : index
    %c0_505 = arith.constant 0 : index
    %c0_506 = arith.constant 0 : index
    %578 = vector.load %arg7[%c17_504, %c0_505, %c0_506] : memref<18x8x128xf32, #tpu.memory_space<vmem>>, vector<1x8x128xf32>
    %579 = vector.shape_cast %578 : vector<1x8x128xf32> to vector<8x128xf32>
    %cst_507 = arith.constant 1.000000e+00 : f32
    %580 = vector.broadcast %cst_507 : f32 to vector<8x128xf32>
    %c17_508 = arith.constant 17 : index
    %c0_509 = arith.constant 0 : index
    %c0_510 = arith.constant 0 : index
    %581 = vector.load %arg3[%c17_508, %c0_509, %c0_510] : memref<18x8x128xf32, #tpu.memory_space<vmem>>, vector<1x8x128xf32>
    %582 = vector.shape_cast %581 : vector<1x8x128xf32> to vector<8x128xf32>
    %583 = vector.shape_cast %580 : vector<8x128xf32> to vector<1x8x128xf32>
    tpu.vector_store %arg3[%c17_508, %c0_509, %c0_510], %583 {strides = array<i32>} : memref<18x8x128xf32, #tpu.memory_space<vmem>>, vector<1x8x128xf32>,
    %c16_511 = arith.constant 16 : index
    %c0_512 = arith.constant 0 : index
    %c0_513 = arith.constant 0 : index
    %584 = vector.load %arg7[%c16_511, %c0_512, %c0_513] : memref<18x8x128xf32, #tpu.memory_space<vmem>>, vector<1x8x128xf32>
    %585 = vector.shape_cast %584 : vector<1x8x128xf32> to vector<8x128xf32>
    %cst_514 = arith.constant 1.000000e+00 : f32
    %586 = vector.broadcast %cst_514 : f32 to vector<8x128xf32>
    %587 = arith.cmpf oeq, %579, %586 : vector<8x128xf32>
    %cst_515 = arith.constant 0.000000e+00 : f32
    %588 = vector.broadcast %cst_515 : f32 to vector<8x128xf32>
    %589 = arith.select %587, %580, %588 : vector<8x128xi1>, vector<8x128xf32>
    %590 = arith.maximumf %311, %589 : vector<8x128xf32>
    %c16_516 = arith.constant 16 : index
    %c0_517 = arith.constant 0 : index
    %c0_518 = arith.constant 0 : index
    %591 = vector.load %arg3[%c16_516, %c0_517, %c0_518] : memref<18x8x128xf32, #tpu.memory_space<vmem>>, vector<1x8x128xf32>
    %592 = vector.shape_cast %591 : vector<1x8x128xf32> to vector<8x128xf32>
    %593 = vector.shape_cast %590 : vector<8x128xf32> to vector<1x8x128xf32>
    tpu.vector_store %arg3[%c16_516, %c0_517, %c0_518], %593 {strides = array<i32>} : memref<18x8x128xf32, #tpu.memory_space<vmem>>, vector<1x8x128xf32>,
    %c15_519 = arith.constant 15 : index
    %c0_520 = arith.constant 0 : index
    %c0_521 = arith.constant 0 : index
    %594 = vector.load %arg7[%c15_519, %c0_520, %c0_521] : memref<18x8x128xf32, #tpu.memory_space<vmem>>, vector<1x8x128xf32>
    %595 = vector.shape_cast %594 : vector<1x8x128xf32> to vector<8x128xf32>
    %cst_522 = arith.constant 1.000000e+00 : f32
    %596 = vector.broadcast %cst_522 : f32 to vector<8x128xf32>
    %597 = arith.cmpf oeq, %585, %596 : vector<8x128xf32>
    %cst_523 = arith.constant 0.000000e+00 : f32
    %598 = vector.broadcast %cst_523 : f32 to vector<8x128xf32>
    %599 = arith.select %597, %590, %598 : vector<8x128xi1>, vector<8x128xf32>
    %600 = arith.maximumf %311, %599 : vector<8x128xf32>
    %c15_524 = arith.constant 15 : index
    %c0_525 = arith.constant 0 : index
    %c0_526 = arith.constant 0 : index
    %601 = vector.load %arg3[%c15_524, %c0_525, %c0_526] : memref<18x8x128xf32, #tpu.memory_space<vmem>>, vector<1x8x128xf32>
    %602 = vector.shape_cast %601 : vector<1x8x128xf32> to vector<8x128xf32>
    %603 = vector.shape_cast %600 : vector<8x128xf32> to vector<1x8x128xf32>
    tpu.vector_store %arg3[%c15_524, %c0_525, %c0_526], %603 {strides = array<i32>} : memref<18x8x128xf32, #tpu.memory_space<vmem>>, vector<1x8x128xf32>,
    %c14_527 = arith.constant 14 : index
    %c0_528 = arith.constant 0 : index
    %c0_529 = arith.constant 0 : index
    %604 = vector.load %arg7[%c14_527, %c0_528, %c0_529] : memref<18x8x128xf32, #tpu.memory_space<vmem>>, vector<1x8x128xf32>
    %605 = vector.shape_cast %604 : vector<1x8x128xf32> to vector<8x128xf32>
    %cst_530 = arith.constant 1.000000e+00 : f32
    %606 = vector.broadcast %cst_530 : f32 to vector<8x128xf32>
    %607 = arith.cmpf oeq, %595, %606 : vector<8x128xf32>
    %cst_531 = arith.constant 0.000000e+00 : f32
    %608 = vector.broadcast %cst_531 : f32 to vector<8x128xf32>
    %609 = arith.select %607, %600, %608 : vector<8x128xi1>, vector<8x128xf32>
    %610 = arith.maximumf %311, %609 : vector<8x128xf32>
    %c14_532 = arith.constant 14 : index
    %c0_533 = arith.constant 0 : index
    %c0_534 = arith.constant 0 : index
    %611 = vector.load %arg3[%c14_532, %c0_533, %c0_534] : memref<18x8x128xf32, #tpu.memory_space<vmem>>, vector<1x8x128xf32>
    %612 = vector.shape_cast %611 : vector<1x8x128xf32> to vector<8x128xf32>
    %613 = vector.shape_cast %610 : vector<8x128xf32> to vector<1x8x128xf32>
    tpu.vector_store %arg3[%c14_532, %c0_533, %c0_534], %613 {strides = array<i32>} : memref<18x8x128xf32, #tpu.memory_space<vmem>>, vector<1x8x128xf32>,
    %c13_535 = arith.constant 13 : index
    %c0_536 = arith.constant 0 : index
    %c0_537 = arith.constant 0 : index
    %614 = vector.load %arg7[%c13_535, %c0_536, %c0_537] : memref<18x8x128xf32, #tpu.memory_space<vmem>>, vector<1x8x128xf32>
    %615 = vector.shape_cast %614 : vector<1x8x128xf32> to vector<8x128xf32>
    %cst_538 = arith.constant 1.000000e+00 : f32
    %616 = vector.broadcast %cst_538 : f32 to vector<8x128xf32>
    %617 = arith.cmpf oeq, %605, %616 : vector<8x128xf32>
    %cst_539 = arith.constant 0.000000e+00 : f32
    %618 = vector.broadcast %cst_539 : f32 to vector<8x128xf32>
    %619 = arith.select %617, %610, %618 : vector<8x128xi1>, vector<8x128xf32>
    %620 = arith.maximumf %311, %619 : vector<8x128xf32>
    %c13_540 = arith.constant 13 : index
    %c0_541 = arith.constant 0 : index
    %c0_542 = arith.constant 0 : index
    %621 = vector.load %arg3[%c13_540, %c0_541, %c0_542] : memref<18x8x128xf32, #tpu.memory_space<vmem>>, vector<1x8x128xf32>
    %622 = vector.shape_cast %621 : vector<1x8x128xf32> to vector<8x128xf32>
    %623 = vector.shape_cast %620 : vector<8x128xf32> to vector<1x8x128xf32>
    tpu.vector_store %arg3[%c13_540, %c0_541, %c0_542], %623 {strides = array<i32>} : memref<18x8x128xf32, #tpu.memory_space<vmem>>, vector<1x8x128xf32>,
    %c12_543 = arith.constant 12 : index
    %c0_544 = arith.constant 0 : index
    %c0_545 = arith.constant 0 : index
    %624 = vector.load %arg7[%c12_543, %c0_544, %c0_545] : memref<18x8x128xf32, #tpu.memory_space<vmem>>, vector<1x8x128xf32>
    %625 = vector.shape_cast %624 : vector<1x8x128xf32> to vector<8x128xf32>
    %cst_546 = arith.constant 1.000000e+00 : f32
    %626 = vector.broadcast %cst_546 : f32 to vector<8x128xf32>
    %627 = arith.cmpf oeq, %615, %626 : vector<8x128xf32>
    %cst_547 = arith.constant 0.000000e+00 : f32
    %628 = vector.broadcast %cst_547 : f32 to vector<8x128xf32>
    %629 = arith.select %627, %620, %628 : vector<8x128xi1>, vector<8x128xf32>
    %630 = arith.maximumf %311, %629 : vector<8x128xf32>
    %c12_548 = arith.constant 12 : index
    %c0_549 = arith.constant 0 : index
    %c0_550 = arith.constant 0 : index
    %631 = vector.load %arg3[%c12_548, %c0_549, %c0_550] : memref<18x8x128xf32, #tpu.memory_space<vmem>>, vector<1x8x128xf32>
    %632 = vector.shape_cast %631 : vector<1x8x128xf32> to vector<8x128xf32>
    %633 = vector.shape_cast %630 : vector<8x128xf32> to vector<1x8x128xf32>
    tpu.vector_store %arg3[%c12_548, %c0_549, %c0_550], %633 {strides = array<i32>} : memref<18x8x128xf32, #tpu.memory_space<vmem>>, vector<1x8x128xf32>,
    %c11_551 = arith.constant 11 : index
    %c0_552 = arith.constant 0 : index
    %c0_553 = arith.constant 0 : index
    %634 = vector.load %arg7[%c11_551, %c0_552, %c0_553] : memref<18x8x128xf32, #tpu.memory_space<vmem>>, vector<1x8x128xf32>
    %635 = vector.shape_cast %634 : vector<1x8x128xf32> to vector<8x128xf32>
    %cst_554 = arith.constant 0.000000e+00 : f32
    %636 = vector.broadcast %cst_554 : f32 to vector<8x128xf32>
    %637 = arith.cmpf oeq, %579, %636 : vector<8x128xf32>
    %cst_555 = arith.constant 0.000000e+00 : f32
    %638 = vector.broadcast %cst_555 : f32 to vector<8x128xf32>
    %639 = arith.select %637, %580, %638 : vector<8x128xi1>, vector<8x128xf32>
    %640 = arith.maximumf %311, %639 : vector<8x128xf32>
    %c11_556 = arith.constant 11 : index
    %c0_557 = arith.constant 0 : index
    %c0_558 = arith.constant 0 : index
    %641 = vector.load %arg3[%c11_556, %c0_557, %c0_558] : memref<18x8x128xf32, #tpu.memory_space<vmem>>, vector<1x8x128xf32>
    %642 = vector.shape_cast %641 : vector<1x8x128xf32> to vector<8x128xf32>
    %643 = vector.shape_cast %640 : vector<8x128xf32> to vector<1x8x128xf32>
    tpu.vector_store %arg3[%c11_556, %c0_557, %c0_558], %643 {strides = array<i32>} : memref<18x8x128xf32, #tpu.memory_space<vmem>>, vector<1x8x128xf32>,
    %c10_559 = arith.constant 10 : index
    %c0_560 = arith.constant 0 : index
    %c0_561 = arith.constant 0 : index
    %644 = vector.load %arg7[%c10_559, %c0_560, %c0_561] : memref<18x8x128xf32, #tpu.memory_space<vmem>>, vector<1x8x128xf32>
    %645 = vector.shape_cast %644 : vector<1x8x128xf32> to vector<8x128xf32>
    %cst_562 = arith.constant 0.000000e+00 : f32
    %646 = vector.broadcast %cst_562 : f32 to vector<8x128xf32>
    %647 = arith.cmpf oeq, %585, %646 : vector<8x128xf32>
    %cst_563 = arith.constant 0.000000e+00 : f32
    %648 = vector.broadcast %cst_563 : f32 to vector<8x128xf32>
    %649 = arith.select %647, %590, %648 : vector<8x128xi1>, vector<8x128xf32>
    %650 = arith.maximumf %311, %649 : vector<8x128xf32>
    %cst_564 = arith.constant 1.000000e+00 : f32
    %651 = vector.broadcast %cst_564 : f32 to vector<8x128xf32>
    %652 = arith.cmpf oeq, %635, %651 : vector<8x128xf32>
    %cst_565 = arith.constant 0.000000e+00 : f32
    %653 = vector.broadcast %cst_565 : f32 to vector<8x128xf32>
    %654 = arith.select %652, %640, %653 : vector<8x128xi1>, vector<8x128xf32>
    %655 = arith.maximumf %650, %654 : vector<8x128xf32>
    %cst_566 = arith.constant 2.000000e+00 : f32
    %656 = vector.broadcast %cst_566 : f32 to vector<8x128xf32>
    %657 = arith.cmpf oeq, %579, %656 : vector<8x128xf32>
    %cst_567 = arith.constant 0.000000e+00 : f32
    %658 = vector.broadcast %cst_567 : f32 to vector<8x128xf32>
    %659 = arith.select %657, %580, %658 : vector<8x128xi1>, vector<8x128xf32>
    %660 = arith.maximumf %655, %659 : vector<8x128xf32>
    %c10_568 = arith.constant 10 : index
    %c0_569 = arith.constant 0 : index
    %c0_570 = arith.constant 0 : index
    %661 = vector.load %arg3[%c10_568, %c0_569, %c0_570] : memref<18x8x128xf32, #tpu.memory_space<vmem>>, vector<1x8x128xf32>
    %662 = vector.shape_cast %661 : vector<1x8x128xf32> to vector<8x128xf32>
    %663 = vector.shape_cast %660 : vector<8x128xf32> to vector<1x8x128xf32>
    tpu.vector_store %arg3[%c10_568, %c0_569, %c0_570], %663 {strides = array<i32>} : memref<18x8x128xf32, #tpu.memory_space<vmem>>, vector<1x8x128xf32>,
    %c9_571 = arith.constant 9 : index
    %c0_572 = arith.constant 0 : index
    %c0_573 = arith.constant 0 : index
    %664 = vector.load %arg7[%c9_571, %c0_572, %c0_573] : memref<18x8x128xf32, #tpu.memory_space<vmem>>, vector<1x8x128xf32>
    %665 = vector.shape_cast %664 : vector<1x8x128xf32> to vector<8x128xf32>
    %cst_574 = arith.constant 0.000000e+00 : f32
    %666 = vector.broadcast %cst_574 : f32 to vector<8x128xf32>
    %667 = arith.cmpf oeq, %595, %666 : vector<8x128xf32>
    %cst_575 = arith.constant 0.000000e+00 : f32
    %668 = vector.broadcast %cst_575 : f32 to vector<8x128xf32>
    %669 = arith.select %667, %600, %668 : vector<8x128xi1>, vector<8x128xf32>
    %670 = arith.maximumf %311, %669 : vector<8x128xf32>
    %cst_576 = arith.constant 1.000000e+00 : f32
    %671 = vector.broadcast %cst_576 : f32 to vector<8x128xf32>
    %672 = arith.cmpf oeq, %645, %671 : vector<8x128xf32>
    %cst_577 = arith.constant 0.000000e+00 : f32
    %673 = vector.broadcast %cst_577 : f32 to vector<8x128xf32>
    %674 = arith.select %672, %660, %673 : vector<8x128xi1>, vector<8x128xf32>
    %675 = arith.maximumf %670, %674 : vector<8x128xf32>
    %cst_578 = arith.constant 2.000000e+00 : f32
    %676 = vector.broadcast %cst_578 : f32 to vector<8x128xf32>
    %677 = arith.cmpf oeq, %585, %676 : vector<8x128xf32>
    %cst_579 = arith.constant 0.000000e+00 : f32
    %678 = vector.broadcast %cst_579 : f32 to vector<8x128xf32>
    %679 = arith.select %677, %590, %678 : vector<8x128xi1>, vector<8x128xf32>
    %680 = arith.maximumf %675, %679 : vector<8x128xf32>
    %c9_580 = arith.constant 9 : index
    %c0_581 = arith.constant 0 : index
    %c0_582 = arith.constant 0 : index
    %681 = vector.load %arg3[%c9_580, %c0_581, %c0_582] : memref<18x8x128xf32, #tpu.memory_space<vmem>>, vector<1x8x128xf32>
    %682 = vector.shape_cast %681 : vector<1x8x128xf32> to vector<8x128xf32>
    %683 = vector.shape_cast %680 : vector<8x128xf32> to vector<1x8x128xf32>
    tpu.vector_store %arg3[%c9_580, %c0_581, %c0_582], %683 {strides = array<i32>} : memref<18x8x128xf32, #tpu.memory_space<vmem>>, vector<1x8x128xf32>,
    %c8_583 = arith.constant 8 : index
    %c0_584 = arith.constant 0 : index
    %c0_585 = arith.constant 0 : index
    %684 = vector.load %arg7[%c8_583, %c0_584, %c0_585] : memref<18x8x128xf32, #tpu.memory_space<vmem>>, vector<1x8x128xf32>
    %685 = vector.shape_cast %684 : vector<1x8x128xf32> to vector<8x128xf32>
    %cst_586 = arith.constant 0.000000e+00 : f32
    %686 = vector.broadcast %cst_586 : f32 to vector<8x128xf32>
    %687 = arith.cmpf oeq, %605, %686 : vector<8x128xf32>
    %cst_587 = arith.constant 0.000000e+00 : f32
    %688 = vector.broadcast %cst_587 : f32 to vector<8x128xf32>
    %689 = arith.select %687, %610, %688 : vector<8x128xi1>, vector<8x128xf32>
    %690 = arith.maximumf %311, %689 : vector<8x128xf32>
    %cst_588 = arith.constant 1.000000e+00 : f32
    %691 = vector.broadcast %cst_588 : f32 to vector<8x128xf32>
    %692 = arith.cmpf oeq, %665, %691 : vector<8x128xf32>
    %cst_589 = arith.constant 0.000000e+00 : f32
    %693 = vector.broadcast %cst_589 : f32 to vector<8x128xf32>
    %694 = arith.select %692, %680, %693 : vector<8x128xi1>, vector<8x128xf32>
    %695 = arith.maximumf %690, %694 : vector<8x128xf32>
    %cst_590 = arith.constant 2.000000e+00 : f32
    %696 = vector.broadcast %cst_590 : f32 to vector<8x128xf32>
    %697 = arith.cmpf oeq, %595, %696 : vector<8x128xf32>
    %cst_591 = arith.constant 0.000000e+00 : f32
    %698 = vector.broadcast %cst_591 : f32 to vector<8x128xf32>
    %699 = arith.select %697, %600, %698 : vector<8x128xi1>, vector<8x128xf32>
    %700 = arith.maximumf %695, %699 : vector<8x128xf32>
    %c8_592 = arith.constant 8 : index
    %c0_593 = arith.constant 0 : index
    %c0_594 = arith.constant 0 : index
    %701 = vector.load %arg3[%c8_592, %c0_593, %c0_594] : memref<18x8x128xf32, #tpu.memory_space<vmem>>, vector<1x8x128xf32>
    %702 = vector.shape_cast %701 : vector<1x8x128xf32> to vector<8x128xf32>
    %703 = vector.shape_cast %700 : vector<8x128xf32> to vector<1x8x128xf32>
    tpu.vector_store %arg3[%c8_592, %c0_593, %c0_594], %703 {strides = array<i32>} : memref<18x8x128xf32, #tpu.memory_space<vmem>>, vector<1x8x128xf32>,
    %c7_595 = arith.constant 7 : index
    %c0_596 = arith.constant 0 : index
    %c0_597 = arith.constant 0 : index
    %704 = vector.load %arg7[%c7_595, %c0_596, %c0_597] : memref<18x8x128xf32, #tpu.memory_space<vmem>>, vector<1x8x128xf32>
    %705 = vector.shape_cast %704 : vector<1x8x128xf32> to vector<8x128xf32>
    %cst_598 = arith.constant 0.000000e+00 : f32
    %706 = vector.broadcast %cst_598 : f32 to vector<8x128xf32>
    %707 = arith.cmpf oeq, %615, %706 : vector<8x128xf32>
    %cst_599 = arith.constant 0.000000e+00 : f32
    %708 = vector.broadcast %cst_599 : f32 to vector<8x128xf32>
    %709 = arith.select %707, %620, %708 : vector<8x128xi1>, vector<8x128xf32>
    %710 = arith.maximumf %311, %709 : vector<8x128xf32>
    %cst_600 = arith.constant 1.000000e+00 : f32
    %711 = vector.broadcast %cst_600 : f32 to vector<8x128xf32>
    %712 = arith.cmpf oeq, %685, %711 : vector<8x128xf32>
    %cst_601 = arith.constant 0.000000e+00 : f32
    %713 = vector.broadcast %cst_601 : f32 to vector<8x128xf32>
    %714 = arith.select %712, %700, %713 : vector<8x128xi1>, vector<8x128xf32>
    %715 = arith.maximumf %710, %714 : vector<8x128xf32>
    %cst_602 = arith.constant 2.000000e+00 : f32
    %716 = vector.broadcast %cst_602 : f32 to vector<8x128xf32>
    %717 = arith.cmpf oeq, %605, %716 : vector<8x128xf32>
    %cst_603 = arith.constant 0.000000e+00 : f32
    %718 = vector.broadcast %cst_603 : f32 to vector<8x128xf32>
    %719 = arith.select %717, %610, %718 : vector<8x128xi1>, vector<8x128xf32>
    %720 = arith.maximumf %715, %719 : vector<8x128xf32>
    %c7_604 = arith.constant 7 : index
    %c0_605 = arith.constant 0 : index
    %c0_606 = arith.constant 0 : index
    %721 = vector.load %arg3[%c7_604, %c0_605, %c0_606] : memref<18x8x128xf32, #tpu.memory_space<vmem>>, vector<1x8x128xf32>
    %722 = vector.shape_cast %721 : vector<1x8x128xf32> to vector<8x128xf32>
    %723 = vector.shape_cast %720 : vector<8x128xf32> to vector<1x8x128xf32>
    tpu.vector_store %arg3[%c7_604, %c0_605, %c0_606], %723 {strides = array<i32>} : memref<18x8x128xf32, #tpu.memory_space<vmem>>, vector<1x8x128xf32>,
    %c6_607 = arith.constant 6 : index
    %c0_608 = arith.constant 0 : index
    %c0_609 = arith.constant 0 : index
    %724 = vector.load %arg7[%c6_607, %c0_608, %c0_609] : memref<18x8x128xf32, #tpu.memory_space<vmem>>, vector<1x8x128xf32>
    %725 = vector.shape_cast %724 : vector<1x8x128xf32> to vector<8x128xf32>
    %cst_610 = arith.constant 0.000000e+00 : f32
    %726 = vector.broadcast %cst_610 : f32 to vector<8x128xf32>
    %727 = arith.cmpf oeq, %625, %726 : vector<8x128xf32>
    %cst_611 = arith.constant 0.000000e+00 : f32
    %728 = vector.broadcast %cst_611 : f32 to vector<8x128xf32>
    %729 = arith.select %727, %630, %728 : vector<8x128xi1>, vector<8x128xf32>
    %730 = arith.maximumf %311, %729 : vector<8x128xf32>
    %cst_612 = arith.constant 1.000000e+00 : f32
    %731 = vector.broadcast %cst_612 : f32 to vector<8x128xf32>
    %732 = arith.cmpf oeq, %705, %731 : vector<8x128xf32>
    %cst_613 = arith.constant 0.000000e+00 : f32
    %733 = vector.broadcast %cst_613 : f32 to vector<8x128xf32>
    %734 = arith.select %732, %720, %733 : vector<8x128xi1>, vector<8x128xf32>
    %735 = arith.maximumf %730, %734 : vector<8x128xf32>
    %cst_614 = arith.constant 2.000000e+00 : f32
    %736 = vector.broadcast %cst_614 : f32 to vector<8x128xf32>
    %737 = arith.cmpf oeq, %615, %736 : vector<8x128xf32>
    %cst_615 = arith.constant 0.000000e+00 : f32
    %738 = vector.broadcast %cst_615 : f32 to vector<8x128xf32>
    %739 = arith.select %737, %620, %738 : vector<8x128xi1>, vector<8x128xf32>
    %740 = arith.maximumf %735, %739 : vector<8x128xf32>
    %c6_616 = arith.constant 6 : index
    %c0_617 = arith.constant 0 : index
    %c0_618 = arith.constant 0 : index
    %741 = vector.load %arg3[%c6_616, %c0_617, %c0_618] : memref<18x8x128xf32, #tpu.memory_space<vmem>>, vector<1x8x128xf32>
    %742 = vector.shape_cast %741 : vector<1x8x128xf32> to vector<8x128xf32>
    %743 = vector.shape_cast %740 : vector<8x128xf32> to vector<1x8x128xf32>
    tpu.vector_store %arg3[%c6_616, %c0_617, %c0_618], %743 {strides = array<i32>} : memref<18x8x128xf32, #tpu.memory_space<vmem>>, vector<1x8x128xf32>,
    %c5_619 = arith.constant 5 : index
    %c0_620 = arith.constant 0 : index
    %c0_621 = arith.constant 0 : index
    %744 = vector.load %arg7[%c5_619, %c0_620, %c0_621] : memref<18x8x128xf32, #tpu.memory_space<vmem>>, vector<1x8x128xf32>
    %745 = vector.shape_cast %744 : vector<1x8x128xf32> to vector<8x128xf32>
    %cst_622 = arith.constant 0.000000e+00 : f32
    %746 = vector.broadcast %cst_622 : f32 to vector<8x128xf32>
    %747 = arith.cmpf oeq, %635, %746 : vector<8x128xf32>
    %cst_623 = arith.constant 0.000000e+00 : f32
    %748 = vector.broadcast %cst_623 : f32 to vector<8x128xf32>
    %749 = arith.select %747, %640, %748 : vector<8x128xi1>, vector<8x128xf32>
    %750 = arith.maximumf %311, %749 : vector<8x128xf32>
    %c5_624 = arith.constant 5 : index
    %c0_625 = arith.constant 0 : index
    %c0_626 = arith.constant 0 : index
    %751 = vector.load %arg3[%c5_624, %c0_625, %c0_626] : memref<18x8x128xf32, #tpu.memory_space<vmem>>, vector<1x8x128xf32>
    %752 = vector.shape_cast %751 : vector<1x8x128xf32> to vector<8x128xf32>
    %753 = vector.shape_cast %750 : vector<8x128xf32> to vector<1x8x128xf32>
    tpu.vector_store %arg3[%c5_624, %c0_625, %c0_626], %753 {strides = array<i32>} : memref<18x8x128xf32, #tpu.memory_space<vmem>>, vector<1x8x128xf32>,
    %c4_627 = arith.constant 4 : index
    %c0_628 = arith.constant 0 : index
    %c0_629 = arith.constant 0 : index
    %754 = vector.load %arg7[%c4_627, %c0_628, %c0_629] : memref<18x8x128xf32, #tpu.memory_space<vmem>>, vector<1x8x128xf32>
    %755 = vector.shape_cast %754 : vector<1x8x128xf32> to vector<8x128xf32>
    %cst_630 = arith.constant 0.000000e+00 : f32
    %756 = vector.broadcast %cst_630 : f32 to vector<8x128xf32>
    %757 = arith.cmpf oeq, %645, %756 : vector<8x128xf32>
    %cst_631 = arith.constant 0.000000e+00 : f32
    %758 = vector.broadcast %cst_631 : f32 to vector<8x128xf32>
    %759 = arith.select %757, %660, %758 : vector<8x128xi1>, vector<8x128xf32>
    %760 = arith.maximumf %311, %759 : vector<8x128xf32>
    %cst_632 = arith.constant 1.000000e+00 : f32
    %761 = vector.broadcast %cst_632 : f32 to vector<8x128xf32>
    %762 = arith.cmpf oeq, %745, %761 : vector<8x128xf32>
    %cst_633 = arith.constant 0.000000e+00 : f32
    %763 = vector.broadcast %cst_633 : f32 to vector<8x128xf32>
    %764 = arith.select %762, %750, %763 : vector<8x128xi1>, vector<8x128xf32>
    %765 = arith.maximumf %760, %764 : vector<8x128xf32>
    %cst_634 = arith.constant 2.000000e+00 : f32
    %766 = vector.broadcast %cst_634 : f32 to vector<8x128xf32>
    %767 = arith.cmpf oeq, %635, %766 : vector<8x128xf32>
    %cst_635 = arith.constant 0.000000e+00 : f32
    %768 = vector.broadcast %cst_635 : f32 to vector<8x128xf32>
    %769 = arith.select %767, %640, %768 : vector<8x128xi1>, vector<8x128xf32>
    %770 = arith.maximumf %765, %769 : vector<8x128xf32>
    %c4_636 = arith.constant 4 : index
    %c0_637 = arith.constant 0 : index
    %c0_638 = arith.constant 0 : index
    %771 = vector.load %arg3[%c4_636, %c0_637, %c0_638] : memref<18x8x128xf32, #tpu.memory_space<vmem>>, vector<1x8x128xf32>
    %772 = vector.shape_cast %771 : vector<1x8x128xf32> to vector<8x128xf32>
    %773 = vector.shape_cast %770 : vector<8x128xf32> to vector<1x8x128xf32>
    tpu.vector_store %arg3[%c4_636, %c0_637, %c0_638], %773 {strides = array<i32>} : memref<18x8x128xf32, #tpu.memory_space<vmem>>, vector<1x8x128xf32>,
    %c3_639 = arith.constant 3 : index
    %c0_640 = arith.constant 0 : index
    %c0_641 = arith.constant 0 : index
    %774 = vector.load %arg7[%c3_639, %c0_640, %c0_641] : memref<18x8x128xf32, #tpu.memory_space<vmem>>, vector<1x8x128xf32>
    %775 = vector.shape_cast %774 : vector<1x8x128xf32> to vector<8x128xf32>
    %cst_642 = arith.constant 0.000000e+00 : f32
    %776 = vector.broadcast %cst_642 : f32 to vector<8x128xf32>
    %777 = arith.cmpf oeq, %665, %776 : vector<8x128xf32>
    %cst_643 = arith.constant 0.000000e+00 : f32
    %778 = vector.broadcast %cst_643 : f32 to vector<8x128xf32>
    %779 = arith.select %777, %680, %778 : vector<8x128xi1>, vector<8x128xf32>
    %780 = arith.maximumf %311, %779 : vector<8x128xf32>
    %cst_644 = arith.constant 1.000000e+00 : f32
    %781 = vector.broadcast %cst_644 : f32 to vector<8x128xf32>
    %782 = arith.cmpf oeq, %755, %781 : vector<8x128xf32>
    %cst_645 = arith.constant 0.000000e+00 : f32
    %783 = vector.broadcast %cst_645 : f32 to vector<8x128xf32>
    %784 = arith.select %782, %770, %783 : vector<8x128xi1>, vector<8x128xf32>
    %785 = arith.maximumf %780, %784 : vector<8x128xf32>
    %cst_646 = arith.constant 2.000000e+00 : f32
    %786 = vector.broadcast %cst_646 : f32 to vector<8x128xf32>
    %787 = arith.cmpf oeq, %645, %786 : vector<8x128xf32>
    %cst_647 = arith.constant 0.000000e+00 : f32
    %788 = vector.broadcast %cst_647 : f32 to vector<8x128xf32>
    %789 = arith.select %787, %660, %788 : vector<8x128xi1>, vector<8x128xf32>
    %790 = arith.maximumf %785, %789 : vector<8x128xf32>
    %c3_648 = arith.constant 3 : index
    %c0_649 = arith.constant 0 : index
    %c0_650 = arith.constant 0 : index
    %791 = vector.load %arg3[%c3_648, %c0_649, %c0_650] : memref<18x8x128xf32, #tpu.memory_space<vmem>>, vector<1x8x128xf32>
    %792 = vector.shape_cast %791 : vector<1x8x128xf32> to vector<8x128xf32>
    %793 = vector.shape_cast %790 : vector<8x128xf32> to vector<1x8x128xf32>
    tpu.vector_store %arg3[%c3_648, %c0_649, %c0_650], %793 {strides = array<i32>} : memref<18x8x128xf32, #tpu.memory_space<vmem>>, vector<1x8x128xf32>,
    %c2_651 = arith.constant 2 : index
    %c0_652 = arith.constant 0 : index
    %c0_653 = arith.constant 0 : index
    %794 = vector.load %arg7[%c2_651, %c0_652, %c0_653] : memref<18x8x128xf32, #tpu.memory_space<vmem>>, vector<1x8x128xf32>
    %795 = vector.shape_cast %794 : vector<1x8x128xf32> to vector<8x128xf32>
    %cst_654 = arith.constant 0.000000e+00 : f32
    %796 = vector.broadcast %cst_654 : f32 to vector<8x128xf32>
    %797 = arith.cmpf oeq, %685, %796 : vector<8x128xf32>
    %cst_655 = arith.constant 0.000000e+00 : f32
    %798 = vector.broadcast %cst_655 : f32 to vector<8x128xf32>
    %799 = arith.select %797, %700, %798 : vector<8x128xi1>, vector<8x128xf32>
    %800 = arith.maximumf %311, %799 : vector<8x128xf32>
    %cst_656 = arith.constant 1.000000e+00 : f32
    %801 = vector.broadcast %cst_656 : f32 to vector<8x128xf32>
    %802 = arith.cmpf oeq, %775, %801 : vector<8x128xf32>
    %cst_657 = arith.constant 0.000000e+00 : f32
    %803 = vector.broadcast %cst_657 : f32 to vector<8x128xf32>
    %804 = arith.select %802, %790, %803 : vector<8x128xi1>, vector<8x128xf32>
    %805 = arith.maximumf %800, %804 : vector<8x128xf32>
    %cst_658 = arith.constant 2.000000e+00 : f32
    %806 = vector.broadcast %cst_658 : f32 to vector<8x128xf32>
    %807 = arith.cmpf oeq, %665, %806 : vector<8x128xf32>
    %cst_659 = arith.constant 0.000000e+00 : f32
    %808 = vector.broadcast %cst_659 : f32 to vector<8x128xf32>
    %809 = arith.select %807, %680, %808 : vector<8x128xi1>, vector<8x128xf32>
    %810 = arith.maximumf %805, %809 : vector<8x128xf32>
    %c2_660 = arith.constant 2 : index
    %c0_661 = arith.constant 0 : index
    %c0_662 = arith.constant 0 : index
    %811 = vector.load %arg3[%c2_660, %c0_661, %c0_662] : memref<18x8x128xf32, #tpu.memory_space<vmem>>, vector<1x8x128xf32>
    %812 = vector.shape_cast %811 : vector<1x8x128xf32> to vector<8x128xf32>
    %813 = vector.shape_cast %810 : vector<8x128xf32> to vector<1x8x128xf32>
    tpu.vector_store %arg3[%c2_660, %c0_661, %c0_662], %813 {strides = array<i32>} : memref<18x8x128xf32, #tpu.memory_space<vmem>>, vector<1x8x128xf32>,
    %c1_663 = arith.constant 1 : index
    %c0_664 = arith.constant 0 : index
    %c0_665 = arith.constant 0 : index
    %814 = vector.load %arg7[%c1_663, %c0_664, %c0_665] : memref<18x8x128xf32, #tpu.memory_space<vmem>>, vector<1x8x128xf32>
    %815 = vector.shape_cast %814 : vector<1x8x128xf32> to vector<8x128xf32>
    %cst_666 = arith.constant 0.000000e+00 : f32
    %816 = vector.broadcast %cst_666 : f32 to vector<8x128xf32>
    %817 = arith.cmpf oeq, %705, %816 : vector<8x128xf32>
    %cst_667 = arith.constant 0.000000e+00 : f32
    %818 = vector.broadcast %cst_667 : f32 to vector<8x128xf32>
    %819 = arith.select %817, %720, %818 : vector<8x128xi1>, vector<8x128xf32>
    %820 = arith.maximumf %311, %819 : vector<8x128xf32>
    %cst_668 = arith.constant 1.000000e+00 : f32
    %821 = vector.broadcast %cst_668 : f32 to vector<8x128xf32>
    %822 = arith.cmpf oeq, %795, %821 : vector<8x128xf32>
    %cst_669 = arith.constant 0.000000e+00 : f32
    %823 = vector.broadcast %cst_669 : f32 to vector<8x128xf32>
    %824 = arith.select %822, %810, %823 : vector<8x128xi1>, vector<8x128xf32>
    %825 = arith.maximumf %820, %824 : vector<8x128xf32>
    %cst_670 = arith.constant 2.000000e+00 : f32
    %826 = vector.broadcast %cst_670 : f32 to vector<8x128xf32>
    %827 = arith.cmpf oeq, %685, %826 : vector<8x128xf32>
    %cst_671 = arith.constant 0.000000e+00 : f32
    %828 = vector.broadcast %cst_671 : f32 to vector<8x128xf32>
    %829 = arith.select %827, %700, %828 : vector<8x128xi1>, vector<8x128xf32>
    %830 = arith.maximumf %825, %829 : vector<8x128xf32>
    %c1_672 = arith.constant 1 : index
    %c0_673 = arith.constant 0 : index
    %c0_674 = arith.constant 0 : index
    %831 = vector.load %arg3[%c1_672, %c0_673, %c0_674] : memref<18x8x128xf32, #tpu.memory_space<vmem>>, vector<1x8x128xf32>
    %832 = vector.shape_cast %831 : vector<1x8x128xf32> to vector<8x128xf32>
    %833 = vector.shape_cast %830 : vector<8x128xf32> to vector<1x8x128xf32>
    tpu.vector_store %arg3[%c1_672, %c0_673, %c0_674], %833 {strides = array<i32>} : memref<18x8x128xf32, #tpu.memory_space<vmem>>, vector<1x8x128xf32>,
    %cst_675 = arith.constant 0.000000e+00 : f32
    %834 = vector.broadcast %cst_675 : f32 to vector<8x128xf32>
    %835 = arith.cmpf oeq, %725, %834 : vector<8x128xf32>
    %cst_676 = arith.constant 0.000000e+00 : f32
    %836 = vector.broadcast %cst_676 : f32 to vector<8x128xf32>
    %837 = arith.select %835, %740, %836 : vector<8x128xi1>, vector<8x128xf32>
    %838 = arith.maximumf %311, %837 : vector<8x128xf32>
    %cst_677 = arith.constant 1.000000e+00 : f32
    %839 = vector.broadcast %cst_677 : f32 to vector<8x128xf32>
    %840 = arith.cmpf oeq, %815, %839 : vector<8x128xf32>
    %cst_678 = arith.constant 0.000000e+00 : f32
    %841 = vector.broadcast %cst_678 : f32 to vector<8x128xf32>
    %842 = arith.select %840, %830, %841 : vector<8x128xi1>, vector<8x128xf32>
    %843 = arith.maximumf %838, %842 : vector<8x128xf32>
    %cst_679 = arith.constant 2.000000e+00 : f32
    %844 = vector.broadcast %cst_679 : f32 to vector<8x128xf32>
    %845 = arith.cmpf oeq, %705, %844 : vector<8x128xf32>
    %cst_680 = arith.constant 0.000000e+00 : f32
    %846 = vector.broadcast %cst_680 : f32 to vector<8x128xf32>
    %847 = arith.select %845, %720, %846 : vector<8x128xi1>, vector<8x128xf32>
    %848 = arith.maximumf %843, %847 : vector<8x128xf32>
    %c0_681 = arith.constant 0 : index
    %c0_682 = arith.constant 0 : index
    %c0_683 = arith.constant 0 : index
    %849 = vector.load %arg3[%c0_681, %c0_682, %c0_683] : memref<18x8x128xf32, #tpu.memory_space<vmem>>, vector<1x8x128xf32>
    %850 = vector.shape_cast %849 : vector<1x8x128xf32> to vector<8x128xf32>
    %851 = vector.shape_cast %848 : vector<8x128xf32> to vector<1x8x128xf32>
    tpu.vector_store %arg3[%c0_681, %c0_682, %c0_683], %851 {strides = array<i32>} : memref<18x8x128xf32, #tpu.memory_space<vmem>>, vector<1x8x128xf32>,
    return
  }
  func.func @transform_0(%arg0: i32) -> (i32, i32) {
    %c0_i32 = arith.constant 0 : i32
    %c0_i32_0 = arith.constant 0 : i32
    %c0_i32_1 = arith.constant 0 : i32
    return %c0_i32, %c0_i32_0 : i32, i32
  }
  func.func @transform_1(%arg0: i32) -> (i32, i32) {
    %c0_i32 = arith.constant 0 : i32
    %c0_i32_0 = arith.constant 0 : i32
    %c0_i32_1 = arith.constant 0 : i32
    return %c0_i32, %c0_i32_0 : i32, i32
  }
  func.func @transform_2(%arg0: i32) -> (i32, i32, i32) {
    %c0_i32 = arith.constant 0 : i32
    %c0_i32_0 = arith.constant 0 : i32
    %c0_i32_1 = arith.constant 0 : i32
    %c0_i32_2 = arith.constant 0 : i32
    return %c0_i32, %c0_i32_0, %c0_i32_1 : i32, i32, i32
  }
}

</mosaic_0001>

<bundles_post_ra>
// kernel: fast_dtw_forward.1
= control target key start
LH: loop header
LB: loop body
LE: loop exit
PB: predicated region body
PF: predicated region fallthrough
CT: control target
= control target key end

     0   :  { %7 = vsyncpa [#allocation7], 0  ;;  %s2516_s0 = inlined_call_operand.hbm [shape: f32[96,128], index: 0, kind: input, shape index: {}]   ;;  %s2517_s1 = inlined_call_operand.hbm [shape: f32[192,128], index: 1, kind: input, shape index: {}]   ;;  %s2518_s2 = inlined_call_operand.vmem [shape: f32[18,8,128], index: 2, kind: output, shape index: {}]  }
   0x1   :  { %8 = vsyncpa [#allocation9], 0  ;;  %s1563_s9 = smov [#allocation6]   ;;  %s1515_s13 = scalar_lea.hbm %s2516_s0, 1536 }
   0x2   :  { %s14_s10 = sshll.u32 %s1563_s9, 4  ;;  %p1516_p0 = scmp.ne.s32.totalorder %s2516_s0, %s1515_s13  ;;  %s15_s10 = int_to_ptr.vmem [resolvable:$true] %s14_s10 }
   0x3   :  { %p1519_p1 = scmp.lt.u32.totalorder %s1515_s13, %s2516_s0 }
   0x5   :  { %p1521_p2 = pnand %p1519_p1, %p1516_p0 }
   0x7   :  { %1524 = shalt.err (!%p1521_p2)
}
   0x8   :  { %s1525_s18 = scalar_lea.vmem %s15_s10, 1536  ;;  %p1530_p4 = scmp.lt.s32.totalorder %s15_s10, %s15_s10 }
   0x9   :  { %p1526_p3 = scmp.ne.s32.totalorder %s15_s10, %s1525_s18  ;;  %p1531_p5 = scmp.lt.s32.totalorder %s1525_s18, %s1525_s18 }
   0xb   :  { %p1532_p6 = por %p1531_p5, %p1530_p4 }
   0xd   :  { %p1533_p7 = pnand %p1532_p6, %p1526_p3 }
   0xf   :  { %1536 = shalt.err (!%p1533_p7)
}
  0x10   :  { %s1564_s19 = smov 128   ;;  %s1565_s20 = smov 8  }
  0x11   :  { %20 = dma.hbm_to_vmem [thread:$0]  %s2516_s0, 1536, %s15_s10, [#allocation7], %s1564_s19, %s1564_s19, %s1565_s20  }
  0x12   :  { %s1566_s23 = smov [#allocation8]   ;;  %s1537_s27 = scalar_lea.hbm %s2517_s1, 3072 }
  0x13   :  { %s26_s24 = sshll.u32 %s1566_s23, 4  ;;  %p1538_p8 = scmp.ne.s32.totalorder %s2517_s1, %s1537_s27  ;;  %s27_s24 = int_to_ptr.vmem [resolvable:$true] %s26_s24 }
  0x14   :  { %p1541_p9 = scmp.lt.u32.totalorder %s1537_s27, %s2517_s1 }
  0x16   :  { %p1543_p10 = pnand %p1541_p9, %p1538_p8 }
  0x18   :  { %1546 = shalt.err (!%p1543_p10)
}
  0x19   :  { %s1547_s4 = scalar_lea.vmem %s27_s24, 3072  ;;  %p1552_p12 = scmp.lt.s32.totalorder %s27_s24, %s27_s24 }
  0x1a   :  { %p1548_p11 = scmp.ne.s32.totalorder %s27_s24, %s1547_s4  ;;  %p1553_p13 = scmp.lt.s32.totalorder %s1547_s4, %s1547_s4 }
  0x1c   :  { %p1554_p0 = por %p1553_p13, %p1552_p12 }
  0x1e   :  { %p1555_p1 = pnand %p1554_p0, %p1548_p11 }
  0x20   :  { %1558 = shalt.err (!%p1555_p1)
}
  0x21   :  { %32 = dma.hbm_to_vmem [thread:$0]  %s2517_s1, 3072, %s27_s24, [#allocation9], %s1564_s19, %s1564_s19, %s1565_s20  }
  0x22   :  { %1559 = dma.done.wait [#allocation7], 1536  }
  0x23   :  { %1560 = vsyncadd [#allocation7], 4294965760 }
  0x24   :  { %1561 = dma.done.wait [#allocation9], 3072  }
  0x25   :  { %1562 = vsyncadd [#allocation9], 4294964224  ;;  %v1567_v0 = vmov 0.0|0.0   ;;  %v1614_v1 = vld [vmem:[#allocation8] sm:$0xff]  ;;  %v1616_v2 = vld [vmem:[#allocation8 + $0x10] sm:$0xff]  ;;  %vm429_vm0 = vcmask 523264  }
  0x26   :  { %1397 = vmatprep.subr.bf16.mxu1 %v1567_v0  ;;  %1361 = vmatprep.subr.bf16.mxu0 %v1567_v0  ;;  %v1618_v3 = vld [vmem:[#allocation8 + $0x8] sm:$0xff]  ;;  %v147_v4 = vmul.f32 %v1614_v1, %v1614_v1  ;;  %v149_v5 = vmul.f32 %v1616_v2, %v1616_v2  ;;  %v1624_v6 = vld [vmem:[#allocation8 + $0x18] sm:$0xff]  ;;  %v1632_v10 = vld [vmem:[#allocation8 + $0x20] sm:$0xff]  ;;  %s1569_s1 = smov 32   ;;  %s1570_s6 = smov 96   ;;  %vm615_vm1 = vcmask 261120  }
  0x27   :  { %v1398_v7 = vpack.c.bf16 %v1618_v3, %v1614_v1  ;;  %v148_v8 = vmul.f32 %v1618_v3, %v1618_v3  ;;  %v150_v9 = vmul.f32 %v1624_v6, %v1624_v6  ;;  %v1634_v11 = vld [vmem:[#allocation8 + $0x28] sm:$0xff]  ;;  %v151_v12 = vmul.f32 %v1632_v10, %v1632_v10  ;;  %v1641_v14 = vld [vmem:[#allocation8 + $0x30] sm:$0xff]  ;;  %v1643_v15 = vld [vmem:[#allocation8 + $0x38] sm:$0xff]  ;;  %s1571_s7 = smov 64  }
  0x28   :  { %171 = vadd.xlane.f32.xlu0 %v147_v4  ;;  %175 = vadd.xlane.f32.xlu1 %v149_v5  ;;  %v152_v13 = vmul.f32 %v1634_v11, %v1634_v11  ;;  %v1401_v16 = vpack.c.bf16 %v1624_v6, %v1616_v2  ;;  %v153_v17 = vmul.f32 %v1641_v14, %v1641_v14  ;;  %v1651_v19 = vld [vmem:[#allocation8 + $0x40] sm:$0xff]  ;;  %v1653_v20 = vld [vmem:[#allocation8 + $0x48] sm:$0xff]  ;;  %v1660_v23 = vld [vmem:[#allocation8 + $0x50] sm:$0xff]  ;;  %vm622_vm2 = vcmask 523520  }
  0x29   :  { %1399 = vmatpush1.bf16.xpose.msra.mxu1 %v1398_v7  ;;  %v154_v18 = vmul.f32 %v1643_v15, %v1643_v15  ;;  %v155_v21 = vmul.f32 %v1651_v19, %v1651_v19  ;;  %v156_v22 = vmul.f32 %v1653_v20, %v1653_v20  ;;  %v1662_v24 = vld [vmem:[#allocation8 + $0x58] sm:$0xff]  ;;  %v1404_v25 = vpack.c.bf16 %v1634_v11, %v1632_v10  ;;  %v1670_v28 = vld [vmem:[#allocation8 + $0x60] sm:$0xff]  ;;  %v1672_v29 = vld [vmem:[#allocation8 + $0x68] sm:$0xff] }
  0x2a   :  { %1400 = vmatprep.subr.bf16.mxu1 %v1567_v0  ;;  %v157_v26 = vmul.f32 %v1660_v23, %v1660_v23  ;;  %v158_v27 = vmul.f32 %v1662_v24, %v1662_v24  ;;  %v159_v30 = vmul.f32 %v1670_v28, %v1670_v28  ;;  %v160_v31 = vmul.f32 %v1672_v29, %v1672_v29  ;;  %v1679_v32 = vld [vmem:[#allocation8 + $0x70] sm:$0xff]  ;;  %v1681_v33 = vld [vmem:[#allocation8 + $0x78] sm:$0xff]  ;;  %v1689_v37 = vld [vmem:[#allocation8 + $0x80] sm:$0xff] }
  0x2b   :  { %v1407_v34 = vpack.c.bf16 %v1643_v15, %v1641_v14  ;;  %v161_v35 = vmul.f32 %v1679_v32, %v1679_v32  ;;  %v162_v36 = vmul.f32 %v1681_v33, %v1681_v33  ;;  %v1691_v38 = vld [vmem:[#allocation8 + $0x88] sm:$0xff]  ;;  %v163_v39 = vmul.f32 %v1689_v37, %v1689_v37  ;;  %v1698_v41 = vld [vmem:[#allocation8 + $0x90] sm:$0xff]  ;;  %v1700_v42 = vld [vmem:[#allocation8 + $0x98] sm:$0xff] }
  0x2c   :  { %173 = vadd.xlane.f32.xlu0 %v148_v8  ;;  %177 = vadd.xlane.f32.xlu1 %v150_v9  ;;  %v164_v40 = vmul.f32 %v1691_v38, %v1691_v38  ;;  %v1410_v43 = vpack.c.bf16 %v1653_v20, %v1651_v19  ;;  %v165_v44 = vmul.f32 %v1698_v41, %v1698_v41  ;;  %v1708_v46 = vld [vmem:[#allocation8 + $0xa0] sm:$0xff]  ;;  %v1710_v47 = vld [vmem:[#allocation8 + $0xa8] sm:$0xff]  ;;  %v1717_v50 = vld [vmem:[#allocation8 + $0xb0] sm:$0xff]  ;;  %vm629_vm3 = vcmask 785920  }
  0x2d   :  { %v166_v45 = vmul.f32 %v1700_v42, %v1700_v42  ;;  %v167_v48 = vmul.f32 %v1708_v46, %v1708_v46  ;;  %v168_v49 = vmul.f32 %v1710_v47, %v1710_v47  ;;  %v1719_v51 = vld [vmem:[#allocation8 + $0xb8] sm:$0xff]  ;;  %v1413_v52 = vpack.c.bf16 %v1662_v24, %v1660_v23  ;;  %v1727_v55 = vld [vmem:[#allocation6] sm:$0xff]  ;;  %v1729_v56 = vld [vmem:[#allocation6 + $0x8] sm:$0xff] }
  0x2e   :  { %v169_v53 = vmul.f32 %v1717_v50, %v1717_v50  ;;  %v170_v54 = vmul.f32 %v1719_v51, %v1719_v51  ;;  %v75_v57 = vmul.f32 %v1727_v55, %v1727_v55  ;;  %v76_v58 = vmul.f32 %v1729_v56, %v1729_v56  ;;  %v1736_v59 = vld [vmem:[#allocation6 + $0x10] sm:$0xff]  ;;  %v1738_v60 = vld [vmem:[#allocation6 + $0x18] sm:$0xff]  ;;  %v1746_v4 = vld [vmem:[#allocation6 + $0x20] sm:$0xff] }
  0x2f   :  { %v1416_v61 = vpack.c.bf16 %v1672_v29, %v1670_v28  ;;  %v77_v62 = vmul.f32 %v1736_v59, %v1736_v59  ;;  %v78_v63 = vmul.f32 %v1738_v60, %v1738_v60  ;;  %v1748_v5 = vld [vmem:[#allocation6 + $0x28] sm:$0xff]  ;;  %v79_v7 = vmul.f32 %v1746_v4, %v1746_v4  ;;  %v1755_v9 = vld [vmem:[#allocation6 + $0x30] sm:$0xff] }
  0x30   :  { %179 = vadd.xlane.f32.xlu0 %v151_v12  ;;  %181 = vadd.xlane.f32.xlu1 %v152_v13  ;;  %v80_v8 = vmul.f32 %v1748_v5, %v1748_v5  ;;  %v1757_v12 = vld [vmem:[#allocation6 + $0x38] sm:$0xff]  ;;  %v1419_v13 = vpack.c.bf16 %v1681_v33, %v1679_v32  ;;  %vm636_vm4 = vcmask 1048320  }
  0x31   :  { %1402 = vmatpush1.bf16.xpose.msra.mxu1 %v1401_v16  ;;  %v81_v16 = vmul.f32 %v1755_v9, %v1755_v9 }
  0x32   :  { %1403 = vmatprep.subr.bf16.mxu1 %v1567_v0 }
  0x34   :  { %183 = vadd.xlane.f32.xlu0 %v153_v17  ;;  %185 = vadd.xlane.f32.xlu1 %v154_v18  ;;  %v82_v17 = vmul.f32 %v1757_v12, %v1757_v12  ;;  %v1765_v18 = vld [vmem:[#allocation6 + $0x40] sm:$0xff] }
  0x38   :  { %187 = vadd.xlane.f32.xlu0 %v155_v21  ;;  %189 = vadd.xlane.f32.xlu1 %v156_v22  ;;  %v1767_v21 = vld [vmem:[#allocation6 + $0x48] sm:$0xff]  ;;  %v83_v22 = vmul.f32 %v1765_v18, %v1765_v18 }
  0x39   :  { %1405 = vmatpush1.bf16.xpose.msra.mxu1 %v1404_v25  ;;  %v84_v25 = vmul.f32 %v1767_v21, %v1767_v21 }
  0x3a   :  { %1406 = vmatprep.subr.bf16.mxu1 %v1567_v0 }
  0x3c   :  { %191 = vadd.xlane.f32.xlu0 %v157_v26  ;;  %193 = vadd.xlane.f32.xlu1 %v158_v27  ;;  %v1774_v26 = vld [vmem:[#allocation6 + $0x50] sm:$0xff]  ;;  %v1776_v27 = vld [vmem:[#allocation6 + $0x58] sm:$0xff] }
  0x40   :  { %195 = vadd.xlane.f32.xlu0 %v159_v30  ;;  %197 = vadd.xlane.f32.xlu1 %v160_v31  ;;  %v1422_v30 = vpack.c.bf16 %v1691_v38, %v1689_v37  ;;  %v85_v31 = vmul.f32 %v1774_v26, %v1774_v26 }
  0x41   :  { %1408 = vmatpush1.bf16.xpose.msra.mxu1 %v1407_v34  ;;  %v86_v34 = vmul.f32 %v1776_v27, %v1776_v27 }
  0x42   :  { %1409 = vmatprep.subr.bf16.mxu1 %v1567_v0 }
  0x44   :  { %199 = vadd.xlane.f32.xlu0 %v161_v35  ;;  %201 = vadd.xlane.f32.xlu1 %v162_v36  ;;  %v1425_v35 = vpack.c.bf16 %v1700_v42, %v1698_v41  ;;  %v1568_v36 = vmov 0.0  }
  0x45   :  { %517 = vmatprep.mubr.f32.mxu1 %v1568_v36  ;;  %355 = vmatprep.mubr.f32.mxu0 %v1568_v36 }
  0x48   :  { %203 = vadd.xlane.f32.xlu0 %v163_v39  ;;  %205 = vadd.xlane.f32.xlu1 %v164_v40  ;;  %v1428_v39 = vpack.c.bf16 %v1710_v47, %v1708_v46  ;;  %v1431_v40 = vpack.c.bf16 %v1719_v51, %v1717_v50 }
  0x49   :  { %1411 = vmatpush1.bf16.xpose.msra.mxu1 %v1410_v43 }
  0x4a   :  { %1412 = vmatprep.subr.bf16.mxu1 %v1567_v0 }
  0x4c   :  { %207 = vadd.xlane.f32.xlu0 %v165_v44  ;;  %209 = vadd.xlane.f32.xlu1 %v166_v45 }
  0x50   :  { %211 = vadd.xlane.f32.xlu0 %v167_v48  ;;  %213 = vadd.xlane.f32.xlu1 %v168_v49 }
  0x51   :  { %1414 = vmatpush1.bf16.xpose.msra.mxu1 %v1413_v52 }
  0x52   :  { %1415 = vmatprep.subr.bf16.mxu1 %v1567_v0 }
  0x54   :  { %215 = vadd.xlane.f32.xlu0 %v169_v53  ;;  %217 = vadd.xlane.f32.xlu1 %v170_v54 }
  0x58   :  { %87 = vadd.xlane.f32.xlu0 %v75_v57  ;;  %89 = vadd.xlane.f32.xlu1 %v76_v58 }
  0x59   :  { %1417 = vmatpush1.bf16.xpose.msra.mxu1 %v1416_v61 }
  0x5a   :  { %1418 = vmatprep.subr.bf16.mxu1 %v1567_v0 }
  0x5c   :  { %91 = vadd.xlane.f32.xlu0 %v77_v62  ;;  %93 = vadd.xlane.f32.xlu1 %v78_v63 }
  0x60   :  { %95 = vadd.xlane.f32.xlu0 %v79_v7  ;;  %97 = vadd.xlane.f32.xlu1 %v80_v8 }
  0x61   :  { %1420 = vmatpush1.bf16.xpose.msra.mxu1 %v1419_v13 }
  0x62   :  { %1421 = vmatprep.subr.bf16.mxu1 %v1567_v0 }
  0x64   :  { %99 = vadd.xlane.f32.xlu0 %v81_v16  ;;  %101 = vadd.xlane.f32.xlu1 %v82_v17 }
  0x68   :  { %103 = vadd.xlane.f32.xlu0 %v83_v22  ;;  %105 = vadd.xlane.f32.xlu1 %v84_v25 }
  0x69   :  { %1423 = vmatpush1.bf16.xpose.msra.mxu1 %v1422_v30 }
  0x6a   :  { %1424 = vmatprep.subr.bf16.mxu1 %v1567_v0 }
  0x6c   :  { %107 = vadd.xlane.f32.xlu0 %v85_v31  ;;  %109 = vadd.xlane.f32.xlu1 %v86_v34 }
  0x71   :  { %1426 = vmatpush1.bf16.xpose.msra.mxu1 %v1425_v35 }
  0x72   :  { %1427 = vmatprep.subr.bf16.mxu1 %v1567_v0 }
  0x79   :  { %1429 = vmatpush1.bf16.xpose.msra.mxu1 %v1428_v39 }
  0x7a   :  { %1430 = vmatprep.subr.bf16.mxu1 %v1567_v0 }
  0x81   :  { %1432 = vmatpush1.bf16.xpose.msra.mxu1 %v1431_v40 }
  0xb5   :  { %v172_v43 = vpop.xlane.xlu0 %171  ;;  %v176_v44 = vpop.xlane.xlu1 %175 }
  0xb6   :  { %v219_v45 = vmax.f32 %v172_v43, 1e-30  ;;  %v221_v53 = vmax.f32 %v176_v44, 1e-30 }
  0xb8   :  { %1443 = vrsqrt.f32 %v219_v45 }
  0xb9   :  { %v174_v48 = vpop.xlane.xlu0 %173  ;;  %v178_v49 = vpop.xlane.xlu1 %177 }
  0xba   :  { %v220_v52 = vmax.f32 %v174_v48, 1e-30  ;;  %v222_v54 = vmax.f32 %v178_v49, 1e-30 }
  0xbc   :  { %1445 = vrsqrt.f32 %v220_v52 }
  0xbd   :  { %v180_v57 = vpop.xlane.xlu0 %179  ;;  %v182_v58 = vpop.xlane.xlu1 %181  ;;  %1447 = vrsqrt.f32 %v221_v53 }
  0xbe   :  { %1449 = vrsqrt.f32 %v222_v54  ;;  %v223_v61 = vmax.f32 %v180_v57, 1e-30  ;;  %v224_v7 = vmax.f32 %v182_v58, 1e-30 }
  0xc0   :  { %1451 = vrsqrt.f32 %v223_v61 }
  0xc1   :  { %v184_v62 = vpop.xlane.xlu0 %183  ;;  %v186_v63 = vpop.xlane.xlu1 %185  ;;  %1453 = vrsqrt.f32 %v224_v7 }
  0xc2   :  { %v1444_v8 = vpop.eup %1443  ;;  %v225_v31 = vmax.f32 %v184_v62, 1e-30  ;;  %v226_v43 = vmax.f32 %v186_v63, 1e-30 }
  0xc3   :  { %v267_v22 = vmul.f32 %v1444_v8, %v1614_v1 }
  0xc4   :  { %1455 = vrsqrt.f32 %v225_v31 }
  0xc5   :  { %v188_v13 = vpop.xlane.xlu0 %187  ;;  %v190_v16 = vpop.xlane.xlu1 %189  ;;  %1457 = vrsqrt.f32 %v226_v43 }
  0xc6   :  { %v1446_v17 = vpop.eup %1445  ;;  %v227_v52 = vmax.f32 %v188_v13, 1e-30  ;;  %v228_v58 = vmax.f32 %v190_v16, 1e-30 }
  0xc7   :  { %v268_v25 = vmul.f32 %v1446_v17, %v1618_v3  ;;  %v1448_v30 = vpop.eup %1447 }
  0xc8   :  { %v1450_v40 = vpop.eup %1449  ;;  %v269_v45 = vmul.f32 %v1448_v30, %v1616_v2  ;;  %1459 = vrsqrt.f32 %v227_v52 }
  0xc9   :  { %v192_v34 = vpop.xlane.xlu0 %191  ;;  %v1362_v35 = vpack.c.bf16 %v268_v25, %v267_v22  ;;  %v194_v39 = vpop.xlane.xlu1 %193  ;;  %v270_v48 = vmul.f32 %v1450_v40, %v1624_v6  ;;  %1461 = vrsqrt.f32 %v228_v58 }
  0xca   :  { %v1452_v1 = vpop.eup %1451  ;;  %v229_v13 = vmax.f32 %v192_v34, 1e-30  ;;  %v230_v22 = vmax.f32 %v194_v39, 1e-30 }
  0xcb   :  { %1363 = vmatpush1.bf16.xpose.msra.mxu0 %v1362_v35  ;;  %v1454_v3 = vpop.eup %1453  ;;  %v1365_v54 = vpack.c.bf16 %v270_v48, %v269_v45  ;;  %v271_v61 = vmul.f32 %v1452_v1, %v1632_v10 }
  0xcc   :  { %1364 = vmatprep.subr.bf16.mxu0 %v1567_v0  ;;  %v272_v62 = vmul.f32 %v1454_v3, %v1634_v11  ;;  %1463 = vrsqrt.f32 %v229_v13 }
  0xcd   :  { %v196_v44 = vpop.xlane.xlu0 %195  ;;  %v198_v49 = vpop.xlane.xlu1 %197  ;;  %1465 = vrsqrt.f32 %v230_v22 }
  0xce   :  { %v1456_v63 = vpop.eup %1455  ;;  %v1368_v7 = vpack.c.bf16 %v272_v62, %v271_v61  ;;  %v231_v39 = vmax.f32 %v196_v44, 1e-30  ;;  %v232_v45 = vmax.f32 %v198_v49, 1e-30 }
  0xcf   :  { %v1458_v8 = vpop.eup %1457  ;;  %v273_v10 = vmul.f32 %v1456_v63, %v1641_v14 }
  0xd0   :  { %v274_v11 = vmul.f32 %v1458_v8, %v1643_v15  ;;  %1467 = vrsqrt.f32 %v231_v39 }
  0xd1   :  { %v200_v53 = vpop.xlane.xlu0 %199  ;;  %v202_v57 = vpop.xlane.xlu1 %201  ;;  %1469 = vrsqrt.f32 %v232_v45 }
  0xd2   :  { %v1460_v31 = vpop.eup %1459  ;;  %v1371_v34 = vpack.c.bf16 %v274_v11, %v273_v10  ;;  %v233_v62 = vmax.f32 %v200_v53, 1e-30 }
  0xd3   :  { %1366 = vmatpush1.bf16.xpose.msra.mxu0 %v1365_v54  ;;  %v1462_v35 = vpop.eup %1461  ;;  %v275_v14 = vmul.f32 %v1460_v31, %v1651_v19  ;;  %v234_v19 = vmax.f32 %v202_v57, 1e-30 }
  0xd4   :  { %1367 = vmatprep.subr.bf16.mxu0 %v1567_v0  ;;  %v276_v15 = vmul.f32 %v1462_v35, %v1653_v20 }
  0xd5   :  { %v1803_v2 = vpop.xlane.xlu0 %203  ;;  %v1805_v6 = vpop.xlane.xlu1 %205 }
  0xd6   :  { %v1464_v54 = vpop.eup %1463  ;;  %v1374_v58 = vpack.c.bf16 %v276_v15, %v275_v14  ;;  %v235_v57 = vmax.f32 %v1803_v2, 1e-30 }
  0xd7   :  { %v1466_v61 = vpop.eup %1465  ;;  %v277_v20 = vmul.f32 %v1464_v54, %v1660_v23  ;;  %v236_v23 = vmax.f32 %v1805_v6, 1e-30 }
  0xd9   :  { %v1807_v17 = vpop.xlane.xlu0 %207  ;;  %v1809_v16 = vpop.xlane.xlu1 %209 }
  0xda   :  { %v1468_v10 = vpop.eup %1467  ;;  %v238_v54 = vmax.f32 %v1809_v16, 1e-30 }
  0xdb   :  { %1369 = vmatpush1.bf16.xpose.msra.mxu0 %v1368_v7  ;;  %v278_v7 = vmul.f32 %v1466_v61, %v1662_v24  ;;  %v1470_v31 = vpop.eup %1469  ;;  %v279_v45 = vmul.f32 %v1468_v10, %v1670_v28 }
  0xdc   :  { %1370 = vmatprep.subr.bf16.mxu0 %v1567_v0  ;;  %v280_v14 = vmul.f32 %v1470_v31, %v1672_v29 }
  0xdd   :  { %v1814_v25 = vpop.xlane.xlu0 %211  ;;  %v1816_v30 = vpop.xlane.xlu1 %213  ;;  %v1377_v22 = vpack.c.bf16 %v278_v7, %v277_v20 }
  0xde   :  { %v240_v7 = vmax.f32 %v1816_v30, 1e-30 }
  0xe1   :  { %v1818_v40 = vpop.xlane.xlu0 %215  ;;  %v1820_v43 = vpop.xlane.xlu1 %217 }
  0xe3   :  { %1372 = vmatpush1.bf16.xpose.msra.mxu0 %v1371_v34 }
  0xe4   :  { %1373 = vmatprep.subr.bf16.mxu0 %v1567_v0 }
  0xe5   :  { %v88_v48 = vpop.xlane.xlu0 %87  ;;  %v90_v1 = vpop.xlane.xlu1 %89 }
  0xe6   :  { %v111_v3 = vmax.f32 %v88_v48, 1e-30  ;;  %v112_v52 = vmax.f32 %v90_v1, 1e-30 }
  0xe8   :  { %1471 = vrsqrt.f32 %v111_v3  ;;  %v1380_v3 = vpack.c.bf16 %v280_v14, %v279_v45 }
  0xe9   :  { %1473 = vrsqrt.f32 %v112_v52  ;;  %v92_v44 = vpop.xlane.xlu0 %91  ;;  %v94_v49 = vpop.xlane.xlu1 %93 }
  0xea   :  { %v113_v63 = vmax.f32 %v92_v44, 1e-30  ;;  %v114_v8 = vmax.f32 %v94_v49, 1e-30 }
  0xeb   :  { %1375 = vmatpush1.bf16.xpose.msra.mxu0 %v1374_v58 }
  0xec   :  { %1376 = vmatprep.subr.bf16.mxu0 %v1567_v0  ;;  %1475 = vrsqrt.f32 %v113_v63 }
  0xed   :  { %v96_v13 = vpop.xlane.xlu0 %95  ;;  %1477 = vrsqrt.f32 %v233_v62  ;;  %v98_v53 = vpop.xlane.xlu1 %97 }
  0xee   :  { %1479 = vrsqrt.f32 %v234_v19  ;;  %v115_v11 = vmax.f32 %v96_v13, 1e-30  ;;  %v116_v39 = vmax.f32 %v98_v53, 1e-30  ;;  %v241_v53 = vmax.f32 %v1818_v40, 1e-30 }
  0xef   :  { %1481 = vrsqrt.f32 %v114_v8 }
  0xf0   :  { %1483 = vrsqrt.f32 %v115_v11 }
  0xf1   :  { %v100_v2 = vpop.xlane.xlu0 %99  ;;  %1485 = vrsqrt.f32 %v235_v57  ;;  %v102_v29 = vpop.xlane.xlu1 %101  ;;  %v242_v57 = vmax.f32 %v1820_v43, 1e-30 }
  0xf2   :  { %v1472_v34 = vpop.eup %1471  ;;  %1487 = vrsqrt.f32 %v236_v23  ;;  %v117_v6 = vmax.f32 %v100_v2, 1e-30  ;;  %v118_v58 = vmax.f32 %v102_v29, 1e-30 }
  0xf3   :  { %v1474_v35 = vpop.eup %1473  ;;  %1378 = vmatpush1.bf16.xpose.msra.mxu0 %v1377_v22  ;;  %v1831_v24 = vmul.f32 %v1472_v34, %v1727_v55  ;;  %1489 = vrsqrt.f32 %v116_v39 }
  0xf4   :  { %1379 = vmatprep.subr.bf16.mxu0 %v1567_v0  ;;  %v1838_v15 = vmul.f32 %v1474_v35, %v1729_v56  ;;  %v237_v56 = vmax.f32 %v1807_v17, 1e-30  ;;  %1491 = vrsqrt.f32 %v117_v6 }
  0xf5   :  { %518 = vmatmul.mubr.f32.vlgmr.msra.gmra.mrb[0].mxu1 %v1831_v24  ;;  %v104_v49 = vpop.xlane.xlu0 %103 }
  0xf6   :  { %v1476_v48 = vpop.eup %1475  ;;  %523 = vmatprep.mubr.f32.mxu1 %v1568_v36  ;;  %1493 = vrsqrt.f32 %v237_v56  ;;  %v119_v62 = vmax.f32 %v104_v49, 1e-30 }
  0xf7   :  { %v1478_v55 = vpop.eup %1477  ;;  %v1843_v28 = vmul.f32 %v1476_v48, %v1736_v59  ;;  %1495 = vrsqrt.f32 %v238_v54 }
  0xf8   :  { %v1480_v1 = vpop.eup %1479  ;;  %v281_v61 = vmul.f32 %v1478_v55, %v1679_v32  ;;  %1497 = vrsqrt.f32 %v118_v58 }
  0xf9   :  { %524 = vmatmul.mubr.f32.gmra.mrb[2].mxu1 %v1838_v15  ;;  %v1482_v52 = vpop.eup %1481  ;;  %v282_v44 = vmul.f32 %v1480_v1, %v1681_v33  ;;  %v106_v33 = vpop.xlane.xlu1 %105  ;;  %1499 = vrsqrt.f32 %v119_v62 }
  0xfa   :  { %529 = vmatprep.mubr.f32.mxu1 %v1568_v36  ;;  %v1853_v59 = vmul.f32 %v1482_v52, %v1738_v60  ;;  %v1484_v17 = vpop.eup %1483  ;;  %v239_v60 = vmax.f32 %v1814_v25, 1e-30  ;;  %v120_v8 = vmax.f32 %v106_v33, 1e-30  ;;  %v108_v25 = vpop.xlane.xlu0 %107 }
  0xfb   :  { %1381 = vmatpush1.bf16.xpose.msra.mxu0 %v1380_v3  ;;  %v1486_v16 = vpop.eup %1485  ;;  %v1383_v19 = vpack.c.bf16 %v282_v44, %v281_v61  ;;  %v1858_v32 = vmul.f32 %v1484_v17, %v1746_v4 }
  0xfc   :  { %1382 = vmatprep.subr.bf16.mxu0 %v1567_v0  ;;  %v1488_v63 = vpop.eup %1487  ;;  %v283_v13 = vmul.f32 %v1486_v16, %v1689_v37  ;;  %1501 = vrsqrt.f32 %v239_v60 }
  0xfd   :  { %530 = vmatmul.mubr.f32.gmra.mrb[4].mxu1 %v1843_v28  ;;  %v1490_v20 = vpop.eup %1489  ;;  %v284_v22 = vmul.f32 %v1488_v63, %v1691_v38  ;;  %1503 = vrsqrt.f32 %v240_v7  ;;  %v110_v34 = vpop.xlane.xlu1 %109 }
  0xfe   :  { %535 = vmatprep.mubr.f32.mxu1 %v1568_v36  ;;  %v1868_v4 = vmul.f32 %v1490_v20, %v1748_v5  ;;  %v1492_v10 = vpop.eup %1491  ;;  %1505 = vrsqrt.f32 %v120_v8  ;;  %v121_v5 = vmax.f32 %v108_v25, 1e-30  ;;  %v122_v45 = vmax.f32 %v110_v34, 1e-30 }
  0xff   :  { %v1386_v31 = vpack.c.bf16 %v284_v22, %v283_v13  ;;  %v1873_v37 = vmul.f32 %v1492_v10, %v1755_v9 }
 0x100   :  { %v1494_v30 = vpop.eup %1493  ;;  %1507 = vrsqrt.f32 %v121_v5 }
 0x101   :  { %536 = vmatmul.mubr.f32.gmra.mrb[6].mxu1 %v1853_v59  ;;  %v1496_v11 = vpop.eup %1495  ;;  %v285_v35 = vmul.f32 %v1494_v30, %v1698_v41  ;;  %1509 = vrsqrt.f32 %v241_v53  ;;  %v1572_v30 = vmov 1.0  }
 0x102   :  { %541 = vmatprep.mubr.f32.mxu1 %v1568_v36  ;;  %v1498_v38 = vpop.eup %1497  ;;  %v286_v23 = vmul.f32 %v1496_v11, %v1700_v42  ;;  %1511 = vrsqrt.f32 %v242_v57  ;;  %1344 = vst [vmem:[%s2518_s2 + $0x88] sm:$0xff] %v1572_v30 }
 0x103   :  { %1384 = vmatpush1.bf16.xpose.msra.mxu0 %v1383_v19  ;;  %v142_v9 = vmul.f32 %v1498_v38, %v1757_v12  ;;  %v1500_v39 = vpop.eup %1499  ;;  %1513 = vrsqrt.f32 %v122_v45 }
 0x104   :  { %1385 = vmatprep.subr.bf16.mxu0 %v1567_v0  ;;  %v1389_v43 = vpack.c.bf16 %v286_v23, %v285_v35  ;;  %v143_v2 = vmul.f32 %v1500_v39, %v1765_v18 }
 0x105   :  { %542 = vmatmul.mubr.f32.gmra.mrb[8].mxu1 %v1858_v32 }
 0x106   :  { %547 = vmatprep.mubr.f32.mxu1 %v1568_v36  ;;  %v1502_v40 = vpop.eup %1501 }
 0x107   :  { %v1504_v14 = vpop.eup %1503  ;;  %v287_v42 = vmul.f32 %v1502_v40, %v1708_v46 }
 0x108   :  { %v1506_v41 = vpop.eup %1505  ;;  %v288_v12 = vmul.f32 %v1504_v14, %v1710_v47 }
 0x109   :  { %548 = vmatmul.mubr.f32.gmra.mrb[10].mxu1 %v1868_v4  ;;  %v144_v48 = vmul.f32 %v1506_v41, %v1767_v21 }
 0x10a   :  { %553 = vmatprep.mubr.f32.mxu1 %v1568_v36  ;;  %v1508_v55 = vpop.eup %1507  ;;  %v1392_v1 = vpack.c.bf16 %v288_v12, %v287_v42 }
 0x10b   :  { %1387 = vmatpush1.bf16.xpose.msra.mxu0 %v1386_v31  ;;  %v1510_v6 = vpop.eup %1509  ;;  %v145_v3 = vmul.f32 %v1508_v55, %v1774_v26 }
 0x10c   :  { %1388 = vmatprep.subr.bf16.mxu0 %v1567_v0  ;;  %v1512_v18 = vpop.eup %1511  ;;  %v289_v46 = vmul.f32 %v1510_v6, %v1717_v50 }
 0x10d   :  { %554 = vmatmul.mubr.f32.gmra.mrb[12].mxu1 %v1873_v37  ;;  %v1514_v29 = vpop.eup %1513  ;;  %v290_v47 = vmul.f32 %v1512_v18, %v1719_v51 }
 0x10e   :  { %559 = vmatprep.mubr.f32.mxu1 %v1568_v36  ;;  %v146_v21 = vmul.f32 %v1514_v29, %v1776_v27 }
 0x10f   :  { %v1395_v52 = vpack.c.bf16 %v290_v47, %v289_v46 }
 0x111   :  { %560 = vmatmul.mubr.f32.gmra.mrb[14].mxu1 %v142_v9 }
 0x112   :  { %565 = vmatprep.mubr.f32.mxu1 %v1568_v36 }
 0x113   :  { %1390 = vmatpush1.bf16.xpose.msra.mxu0 %v1389_v43 }
 0x114   :  { %1391 = vmatprep.subr.bf16.mxu0 %v1567_v0 }
 0x115   :  { %566 = vmatmul.mubr.f32.gmra.mrb[16].mxu1 %v143_v2 }
 0x116   :  { %571 = vmatprep.mubr.f32.mxu1 %v1568_v36 }
 0x119   :  { %572 = vmatmul.mubr.f32.gmra.mrb[18].mxu1 %v144_v48 }
 0x11a   :  { %577 = vmatprep.mubr.f32.mxu1 %v1568_v36 }
 0x11b   :  { %1393 = vmatpush1.bf16.xpose.msra.mxu0 %v1392_v1 }
 0x11c   :  { %1394 = vmatprep.subr.bf16.mxu0 %v1567_v0 }
 0x11d   :  { %578 = vmatmul.mubr.f32.gmra.mrb[20].mxu1 %v145_v3 }
 0x11e   :  { %583 = vmatprep.mubr.f32.mxu1 %v1568_v36 }
 0x121   :  { %584 = vmatmul.mubr.f32.gmra.mrb[22].mxu1 %v146_v21 }
 0x123   :  { %1396 = vmatpush1.bf16.xpose.msra.mxu0 %v1395_v52 }
 0x12a   :  { %356 = vmatmul.mubr.f32.vlgmr.msra.gmra.mrb[0].mxu0 %v1831_v24 }
 0x12b   :  { %361 = vmatprep.mubr.f32.mxu0 %v1568_v36 }
 0x12e   :  { %362 = vmatmul.mubr.f32.gmra.mrb[2].mxu0 %v1838_v15 }
 0x12f   :  { %367 = vmatprep.mubr.f32.mxu0 %v1568_v36 }
 0x132   :  { %368 = vmatmul.mubr.f32.gmra.mrb[4].mxu0 %v1843_v28 }
 0x133   :  { %373 = vmatprep.mubr.f32.mxu0 %v1568_v36 }
 0x136   :  { %374 = vmatmul.mubr.f32.gmra.mrb[6].mxu0 %v1853_v59 }
 0x137   :  { %379 = vmatprep.mubr.f32.mxu0 %v1568_v36 }
 0x13a   :  { %380 = vmatmul.mubr.f32.gmra.mrb[8].mxu0 %v1858_v32 }
 0x13b   :  { %385 = vmatprep.mubr.f32.mxu0 %v1568_v36 }
 0x13e   :  { %386 = vmatmul.mubr.f32.gmra.mrb[10].mxu0 %v1868_v4 }
 0x13f   :  { %391 = vmatprep.mubr.f32.mxu0 %v1568_v36 }
 0x142   :  { %392 = vmatmul.mubr.f32.gmra.mrb[12].mxu0 %v1873_v37 }
 0x143   :  { %397 = vmatprep.mubr.f32.mxu0 %v1568_v36 }
 0x146   :  { %398 = vmatmul.mubr.f32.gmra.mrb[14].mxu0 %v142_v9 }
 0x147   :  { %403 = vmatprep.mubr.f32.mxu0 %v1568_v36 }
 0x14a   :  { %404 = vmatmul.mubr.f32.gmra.mrb[16].mxu0 %v143_v2 }
 0x14b   :  { %409 = vmatprep.mubr.f32.mxu0 %v1568_v36 }
 0x14e   :  { %410 = vmatmul.mubr.f32.gmra.mrb[18].mxu0 %v144_v48 }
 0x14f   :  { %415 = vmatprep.mubr.f32.mxu0 %v1568_v36 }
 0x152   :  { %416 = vmatmul.mubr.f32.gmra.mrb[20].mxu0 %v145_v3 }
 0x153   :  { %421 = vmatprep.mubr.f32.mxu0 %v1568_v36 }
 0x156   :  { %422 = vmatmul.mubr.f32.gmra.mrb[22].mxu0 %v146_v21 }
 0x1c8   :  { %v519_v0 = vpop.f32.mrb[0].mxu1 }
 0x1c9   :  { %v521_v50 = vpop.f32.mrb[1].mxu1  ;;  %682 = vrot.lane.b32.xlu0 %v519_v0, %s1569_s1  ;;  %640 = vrot.lane.b32.xlu1 %v519_v0, %s1570_s6 }
 0x1ca   :  { %591 = vst.msk [vmem:[#allocation3 + $0x8] sm:$0xff] %vm429_vm0, %v521_v50 }
 0x1cc   :  { %v1919_v51 = vpop.f32.mrb[2].mxu1 }
 0x1cd   :  { %661 = vrot.lane.b32.xlu1 %v519_v0, %s1571_s7  ;;  %v527_v26 = vpop.f32.mrb[3].mxu1 }
 0x1ce   :  { %593 = vst.msk [vmem:[#allocation3 + $0x18] sm:$0xff] %vm429_vm0, %v527_v26 }
 0x1d0   :  { %v1923_v27 = vpop.f32.mrb[4].mxu1 }
 0x1d1   :  { %v722_v24 = vld [vmem:[#allocation3 + $0x8] sm:$0xff]  ;;  %668 = vrot.lane.b32.xlu1 %v1919_v51, %s1570_s6  ;;  %v533_v15 = vpop.f32.mrb[5].mxu1 }
 0x1d2   :  { %724 = vrot.lane.b32.xlu0 %v722_v24, %s1570_s6  ;;  %595 = vst.msk [vmem:[#allocation3 + $0x28] sm:$0xff] %vm429_vm0, %v533_v15 }
 0x1d3   :  { %703 = vst.msk [vmem:[#allocation4 + $0x20] sm:$0xff] %vm615_vm1, %v722_v24 }
 0x1d4   :  { %v1930_v28 = vpop.f32.mrb[6].mxu1 }
 0x1d5   :  { %689 = vrot.lane.b32.xlu1 %v1919_v51, %s1571_s7  ;;  %v539_v56 = vpop.f32.mrb[7].mxu1  ;;  %v1934_v54 = vld [vmem:[#allocation3 + $0x18] sm:$0xff] }
 0x1d6   :  { %597 = vst.msk [vmem:[#allocation3 + $0x38] sm:$0xff] %vm429_vm0, %v539_v56 }
 0x1d8   :  { %v543_v58 = vpop.f32.mrb[8].mxu1 }
 0x1d9   :  { %706 = vrot.lane.b32.xlu1 %v1934_v54, %s1569_s1  ;;  %v710_v61 = vld [vmem:[#allocation3 + $0x28] sm:$0xff]  ;;  %v545_v44 = vpop.f32.mrb[9].mxu1 }
 0x1da   :  { %712 = vrot.lane.b32.xlu0 %v710_v61, %s1571_s7  ;;  %599 = vst.msk [vmem:[#allocation3 + $0x48] sm:$0xff] %vm429_vm0, %v545_v44 }
 0x1dc   :  { %v549_v59 = vpop.f32.mrb[10].mxu1 }
 0x1dd   :  { %649 = vrot.lane.b32.xlu1 %v1923_v27, %s1569_s1  ;;  %v551_v49 = vpop.f32.mrb[11].mxu1  ;;  %v1945_v17 = vld [vmem:[#allocation3 + $0x38] sm:$0xff] }
 0x1de   :  { %733 = vrot.lane.b32.xlu0 %v710_v61, %s1569_s1  ;;  %601 = vst.msk [vmem:[#allocation3 + $0x58] sm:$0xff] %vm429_vm0, %v551_v49 }
 0x1e0   :  { %v1947_v16 = vpop.f32.mrb[12].mxu1 }
 0x1e1   :  { %695 = vrot.lane.b32.xlu1 %v1923_v27, %s1570_s6  ;;  %v557_v62 = vpop.f32.mrb[13].mxu1  ;;  %v1951_v63 = vld [vmem:[#allocation3 + $0x48] sm:$0xff] }
 0x1e2   :  { %718 = vrot.lane.b32.xlu0 %v1945_v17, %s1570_s6  ;;  %603 = vst.msk [vmem:[#allocation3 + $0x68] sm:$0xff] %vm429_vm0, %v557_v62 }
 0x1e3   :  { %829 = vst.msk [vmem:[#allocation4 + $0x50] sm:$0xff] %vm615_vm1, %v1951_v63 }
 0x1e4   :  { %v1958_v19 = vpop.f32.mrb[14].mxu1 }
 0x1e5   :  { %655 = vrot.lane.b32.xlu1 %v1930_v28, %s1571_s7  ;;  %v563_v32 = vpop.f32.mrb[15].mxu1  ;;  %v1968_v60 = vld [vmem:[#allocation3 + $0x58] sm:$0xff] }
 0x1e6   :  { %794 = vrot.lane.b32.xlu0 %v549_v59, %s1570_s6  ;;  %605 = vst.msk [vmem:[#allocation3 + $0x78] sm:$0xff] %vm429_vm0, %v563_v32 }
 0x1e8   :  { %v567_v33 = vpop.f32.mrb[16].mxu1 }
 0x1e9   :  { %676 = vrot.lane.b32.xlu1 %v1930_v28, %s1569_s1  ;;  %v569_v20 = vpop.f32.mrb[17].mxu1  ;;  %v836_v18 = vld [vmem:[#allocation3 + $0x68] sm:$0xff] }
 0x1ea   :  { %815 = vrot.lane.b32.xlu0 %v549_v59, %s1571_s7  ;;  %607 = vst.msk [vmem:[#allocation3 + $0x88] sm:$0xff] %vm429_vm0, %v569_v20 }
 0x1ec   :  { %v573_v7 = vpop.f32.mrb[18].mxu1 }
 0x1ed   :  { %787 = vrot.lane.b32.xlu1 %v543_v58, %s1571_s7  ;;  %v575_v8 = vpop.f32.mrb[19].mxu1  ;;  %v842_v46 = vld [vmem:[#allocation3 + $0x78] sm:$0xff] }
 0x1ee   :  { %832 = vrot.lane.b32.xlu0 %v1968_v60, %s1569_s1  ;;  %609 = vst.msk [vmem:[#allocation3 + $0x98] sm:$0xff] %vm429_vm0, %v575_v8 }
 0x1f0   :  { %v579_v13 = vpop.f32.mrb[20].mxu1 }
 0x1f1   :  { %808 = vrot.lane.b32.xlu1 %v543_v58, %s1569_s1  ;;  %v581_v22 = vpop.f32.mrb[21].mxu1  ;;  %v1975_v4 = vld [vmem:[#allocation3 + $0x88] sm:$0xff] }
 0x1f2   :  { %611 = vst.msk [vmem:[#allocation3 + $0xa8] sm:$0xff] %vm429_vm0, %v581_v22 }
 0x1f3   :  { %955 = vst.msk [vmem:[#allocation4 + $0x80] sm:$0xff] %vm615_vm1, %v1975_v4 }
 0x1f4   :  { %v1980_v10 = vpop.f32.mrb[22].mxu1 }
 0x1f5   :  { %821 = vrot.lane.b32.xlu1 %v1947_v16, %s1570_s6  ;;  %v587_v25 = vpop.f32.mrb[23].mxu1  ;;  %v956_v21 = vld [vmem:[#allocation3 + $0x98] sm:$0xff] }
 0x1f6   :  { %613 = vst.msk [vmem:[#allocation3 + $0xb8] sm:$0xff] %vm429_vm0, %v587_v25 }
 0x1f9   :  { %802 = vrot.lane.b32.xlu1 %v1958_v19, %s1569_s1  ;;  %v962_v50 = vld [vmem:[#allocation3 + $0xa8] sm:$0xff] }
 0x1fd   :  { %v357_v11 = vpop.f32.mrb[0].mxu0  ;;  %934 = vrot.lane.b32.xlu1 %v567_v33, %s1569_s1  ;;  %v968_v26 = vld [vmem:[#allocation3 + $0xb8] sm:$0xff] }
 0x1fe   :  { %v359_v31 = vpop.f32.mrb[1].mxu0  ;;  %616 = vst.msk [vmem:[#allocation4] sm:$0xff] %vm615_vm1, %v357_v11 }
 0x201   :  { %v363_v37 = vpop.f32.mrb[2].mxu0  ;;  %941 = vrot.lane.b32.xlu1 %v573_v7, %s1571_s7 }
 0x202   :  { %v365_v38 = vpop.f32.mrb[3].mxu0  ;;  %619 = vrot.lane.b32.xlu0 %v363_v37, %s1569_s1 }
 0x205   :  { %v369_v5 = vpop.f32.mrb[4].mxu0 }
 0x206   :  { %v371_v53 = vpop.f32.mrb[5].mxu0  ;;  %626 = vrot.lane.b32.xlu1 %v369_v5, %s1571_s7 }
 0x209   :  { %v375_v34 = vpop.f32.mrb[6].mxu0 }
 0x20a   :  { %v377_v57 = vpop.f32.mrb[7].mxu0  ;;  %633 = vrot.lane.b32.xlu1 %v375_v34, %s1570_s6 }
 0x20d   :  { %v381_v35 = vpop.f32.mrb[8].mxu0 }
 0x20e   :  { %v383_v23 = vpop.f32.mrb[9].mxu0  ;;  %766 = vrot.lane.b32.xlu0 %v381_v35, %s1570_s6  ;;  %745 = vst.msk [vmem:[#allocation4 + $0x30] sm:$0xff] %vm615_vm1, %v381_v35 }
 0x211   :  { %v1999_v9 = vpop.f32.mrb[10].mxu0 }
 0x212   :  { %v389_v39 = vpop.f32.mrb[11].mxu0  ;;  %748 = vrot.lane.b32.xlu0 %v1999_v9, %s1569_s1 }
 0x215   :  { %v393_v45 = vpop.f32.mrb[12].mxu0 }
 0x216   :  { %v395_v40 = vpop.f32.mrb[13].mxu0  ;;  %754 = vrot.lane.b32.xlu0 %v393_v45, %s1571_s7  ;;  %775 = vrot.lane.b32.xlu1 %v393_v45, %s1569_s1 }
 0x219   :  { %v399_v14 = vpop.f32.mrb[14].mxu0 }
 0x21a   :  { %v401_v43 = vpop.f32.mrb[15].mxu0  ;;  %760 = vrot.lane.b32.xlu0 %v399_v14, %s1570_s6 }
 0x21d   :  { %v405_v2 = vpop.f32.mrb[16].mxu0 }
 0x21e   :  { %v407_v41 = vpop.f32.mrb[17].mxu0  ;;  %781 = vrot.lane.b32.xlu0 %v399_v14, %s1571_s7  ;;  %871 = vst.msk [vmem:[#allocation4 + $0x60] sm:$0xff] %vm615_vm1, %v405_v2 }
 0x221   :  { %v2008_v42 = vpop.f32.mrb[18].mxu0 }
 0x222   :  { %v413_v12 = vpop.f32.mrb[19].mxu0  ;;  %892 = vrot.lane.b32.xlu0 %v405_v2, %s1570_s6  ;;  %920 = vrot.lane.b32.xlu1 %v2008_v42, %s1570_s6 }
 0x225   :  { %v2013_v48 = vpop.f32.mrb[20].mxu0 }
 0x226   :  { %v419_v55 = vpop.f32.mrb[21].mxu0  ;;  %913 = vrot.lane.b32.xlu0 %v405_v2, %s1571_s7 }
 0x229   :  { %v423_v6 = vpop.f32.mrb[22].mxu0 }
 0x22a   :  { %v425_v1 = vpop.f32.mrb[23].mxu0  ;;  %874 = vrot.lane.b32.xlu0 %v2008_v42, %s1569_s1  ;;  %886 = vrot.lane.b32.xlu1 %v423_v6, %s1570_s6 }
 0x22e   :  { %880 = vrot.lane.b32.xlu0 %v2013_v48, %s1571_s7  ;;  %838 = vrot.lane.b32.xlu1 %v836_v18, %s1571_s7 }
 0x232   :  { %901 = vrot.lane.b32.xlu0 %v2013_v48, %s1569_s1  ;;  %739 = vrot.lane.b32.xlu1 %v1945_v17, %s1571_s7 }
 0x236   :  { %907 = vrot.lane.b32.xlu0 %v423_v6, %s1571_s7  ;;  %928 = vrot.lane.b32.xlu1 %v423_v6, %s1569_s1 }
 0x23a   :  { %947 = vrot.lane.b32.xlu0 %v579_v13, %s1570_s6  ;;  %850 = vrot.lane.b32.xlu1 %v1951_v63, %s1570_s6 }
 0x23b   :  { %v641_v3 = vpop.permute.xlu1 %640  ;;  %v683_v29 = vpop.permute.xlu0 %682 }
 0x23c   :  { %644 = vst.msk [vmem:[#allocation4 + $0x8] sm:$0xff] %vm615_vm1, %v641_v3  ;;  %686 = vst.msk [vmem:[#allocation4 + $0x18] sm:$0xff] %vm615_vm1, %v683_v29 }
 0x23d   :  { %646 = vst.msk [vmem:[#allocation4 + $0x8] sm:$0xff] %vm622_vm2, %v1919_v51 }
 0x23e   :  { %844 = vrot.lane.b32.xlu0 %v842_v46, %s1570_s6  ;;  %859 = vrot.lane.b32.xlu1 %v836_v18, %s1569_s1 }
 0x23f   :  { %v662_v47 = vpop.permute.xlu1 %661 }
 0x240   :  { %665 = vst.msk [vmem:[#allocation4 + $0x10] sm:$0xff] %vm615_vm1, %v662_v47 }
 0x242   :  { %958 = vrot.lane.b32.xlu0 %v956_v21, %s1569_s1  ;;  %865 = vrot.lane.b32.xlu1 %v842_v46, %s1571_s7 }
 0x243   :  { %v669_v52 = vpop.permute.xlu1 %668 }
 0x244   :  { %v725_v0 = vpop.permute.xlu0 %724  ;;  %671 = vst.msk [vmem:[#allocation4 + $0x10] sm:$0xff] %vm622_vm2, %v669_v52 }
 0x245   :  { %728 = vst.msk [vmem:[#allocation4 + $0x28] sm:$0xff] %vm615_vm1, %v725_v0 }
 0x246   :  { %673 = vst.msk [vmem:[#allocation4 + $0x10] sm:$0xff] %vm629_vm3, %v1923_v27  ;;  %964 = vrot.lane.b32.xlu0 %v962_v50, %s1571_s7  ;;  %976 = vrot.lane.b32.xlu1 %v1975_v4, %s1570_s6 }
 0x247   :  { %730 = vst.msk [vmem:[#allocation4 + $0x28] sm:$0xff] %vm622_vm2, %v1934_v54  ;;  %v690_v51 = vpop.permute.xlu1 %689 }
 0x248   :  { %692 = vst.msk [vmem:[#allocation4 + $0x18] sm:$0xff] %vm622_vm2, %v690_v51 }
 0x24a   :  { %970 = vrot.lane.b32.xlu0 %v968_v26, %s1570_s6  ;;  %991 = vrot.lane.b32.xlu1 %v968_v26, %s1571_s7 }
 0x24b   :  { %v707_v24 = vpop.permute.xlu1 %706 }
 0x24c   :  { %709 = vst.msk [vmem:[#allocation4 + $0x20] sm:$0xff] %vm622_vm2, %v707_v24  ;;  %v713_v27 = vpop.permute.xlu0 %712 }
 0x24d   :  { %715 = vst.msk [vmem:[#allocation4 + $0x20] sm:$0xff] %vm629_vm3, %v713_v27 }
 0x24e   :  { %985 = vrot.lane.b32.xlu0 %v962_v50, %s1569_s1 }
 0x24f   :  { %v650_v15 = vpop.permute.xlu1 %649 }
 0x250   :  { %652 = vst.msk [vmem:[#allocation4 + $0x8] sm:$0xff] %vm629_vm3, %v650_v15  ;;  %v734_v56 = vpop.permute.xlu0 %733 }
 0x251   :  { %736 = vst.msk [vmem:[#allocation4 + $0x28] sm:$0xff] %vm629_vm3, %v734_v56 }
 0x253   :  { %v696_v54 = vpop.permute.xlu1 %695 }
 0x254   :  { %698 = vst.msk [vmem:[#allocation4 + $0x18] sm:$0xff] %vm629_vm3, %v696_v54  ;;  %v719_v58 = vpop.permute.xlu0 %718 }
 0x255   :  { %700 = vst.msk [vmem:[#allocation4 + $0x18] sm:$0xff] %vm636_vm4, %v1930_v28  ;;  %721 = vst.msk [vmem:[#allocation4 + $0x20] sm:$0xff] %vm636_vm4, %v719_v58 }
 0x257   :  { %v656_v61 = vpop.permute.xlu1 %655 }
 0x258   :  { %658 = vst.msk [vmem:[#allocation4 + $0x8] sm:$0xff] %vm636_vm4, %v656_v61  ;;  %v795_v44 = vpop.permute.xlu0 %794 }
 0x25b   :  { %v677_v59 = vpop.permute.xlu1 %676 }
 0x25c   :  { %679 = vst.msk [vmem:[#allocation4 + $0x10] sm:$0xff] %vm636_vm4, %v677_v59  ;;  %v816_v49 = vpop.permute.xlu0 %815 }
 0x25f   :  { %v788_v17 = vpop.permute.xlu1 %787  ;;  %v1003_v37 = vld [vmem:[#allocation4 + $0x8] sm:$0xff] }
 0x260   :  { %791 = vst.msk [vmem:[#allocation4 + $0x40] sm:$0xff] %vm615_vm1, %v788_v17  ;;  %v833_v62 = vpop.permute.xlu0 %832 }
 0x261   :  { %797 = vst.msk [vmem:[#allocation4 + $0x40] sm:$0xff] %vm622_vm2, %v795_v44  ;;  %835 = vst.msk [vmem:[#allocation4 + $0x50] sm:$0xff] %vm622_vm2, %v833_v62 }
 0x262   :  { %799 = vst.msk [vmem:[#allocation4 + $0x40] sm:$0xff] %vm629_vm3, %v1947_v16 }
 0x263   :  { %v809_v28 = vpop.permute.xlu1 %808  ;;  %v1013_v39 = vld [vmem:[#allocation4 + $0x10] sm:$0xff] }
 0x264   :  { %812 = vst.msk [vmem:[#allocation4 + $0x48] sm:$0xff] %vm615_vm1, %v809_v28 }
 0x265   :  { %818 = vst.msk [vmem:[#allocation4 + $0x48] sm:$0xff] %vm622_vm2, %v816_v49 }
 0x267   :  { %v822_v63 = vpop.permute.xlu1 %821 }
 0x268   :  { %824 = vst.msk [vmem:[#allocation4 + $0x48] sm:$0xff] %vm629_vm3, %v822_v63  ;;  %v1033_v63 = vld [vmem:[#allocation4 + $0x20] sm:$0xff] }
 0x269   :  { %826 = vst.msk [vmem:[#allocation4 + $0x48] sm:$0xff] %vm636_vm4, %v1958_v19 }
 0x26b   :  { %v803_v32 = vpop.permute.xlu1 %802 }
 0x26c   :  { %805 = vst.msk [vmem:[#allocation4 + $0x40] sm:$0xff] %vm636_vm4, %v803_v32 }
 0x26f   :  { %v935_v33 = vpop.permute.xlu1 %934 }
 0x270   :  { %938 = vst.msk [vmem:[#allocation4 + $0x78] sm:$0xff] %vm615_vm1, %v935_v33  ;;  %v1083_v32 = vld [vmem:[#allocation4 + $0x48] sm:$0xff] }
 0x273   :  { %v942_v20 = vpop.permute.xlu1 %941  ;;  %v1073_v24 = vld [vmem:[#allocation4 + $0x40] sm:$0xff] }
 0x274   :  { %944 = vst.msk [vmem:[#allocation4 + $0x78] sm:$0xff] %vm622_vm2, %v942_v20  ;;  %v620_v16 = vpop.permute.xlu0 %619 }
 0x275   :  { %623 = vst.msk [vmem:[#allocation4] sm:$0xff] %vm622_vm2, %v620_v16 }
 0x278   :  { %v627_v7 = vpop.permute.xlu1 %626 }
 0x279   :  { %630 = vst.msk [vmem:[#allocation4] sm:$0xff] %vm629_vm3, %v627_v7 }
 0x27c   :  { %v634_v8 = vpop.permute.xlu1 %633 }
 0x27d   :  { %637 = vst.msk [vmem:[#allocation4] sm:$0xff] %vm636_vm4, %v634_v8 }
 0x280   :  { %v767_v13 = vpop.permute.xlu0 %766 }
 0x281   :  { %770 = vst.msk [vmem:[#allocation4 + $0x38] sm:$0xff] %vm615_vm1, %v767_v13 }
 0x282   :  { %772 = vst.msk [vmem:[#allocation4 + $0x38] sm:$0xff] %vm622_vm2, %v1999_v9 }
 0x284   :  { %v2082_v19 = vld [vmem:[#allocation4] sm:$0xff]  ;;  %v749_v22 = vpop.permute.xlu0 %748 }
 0x285   :  { %vm1339_vm5 = vcmp.le.f32.partialorder %v2082_v19, -inf  ;;  %751 = vst.msk [vmem:[#allocation4 + $0x30] sm:$0xff] %vm622_vm2, %v749_v22  ;;  %vm1054_vm6 = vcmp.ge.f32.partialorder %v2082_v19, -inf }
 0x286   :  { %v1005_v4 = vsel %vm1339_vm5, -inf, %v2082_v19  ;;  %v1006_v25 = vsel %vm1339_vm5, 0.0, %v1572_v30  ;;  %v1055_v11 = vsel %vm1054_vm6, %v2082_v19, -inf  ;;  %v1056_v31 = vsel %vm1054_vm6, 0.0, %v1572_v30 }
 0x287   :  { %vm1007_vm7 = vcmp.ge.f32.partialorder %v1005_v4, -inf  ;;  %vm1057_vm8 = vcmp.ge.f32.partialorder %v1055_v11, -inf }
 0x288   :  { %v1008_v38 = vsel %vm1007_vm7, %v1005_v4, -inf  ;;  %v2091_v5 = vsel %vm1007_vm7, %v1006_v25, 2.0  ;;  %v776_v53 = vpop.permute.xlu1 %775  ;;  %v755_v34 = vpop.permute.xlu0 %754  ;;  %v2094_v57 = vsel %vm1057_vm8, %v1056_v31, 2.0  ;;  %v1058_v2 = vsel %vm1057_vm8, %v1055_v11, -inf }
 0x289   :  { %v2096_v35 = vadd.f32 %v1008_v38, %v1003_v37  ;;  %778 = vst.msk [vmem:[#allocation4 + $0x38] sm:$0xff] %vm629_vm3, %v776_v53  ;;  %757 = vst.msk [vmem:[#allocation4 + $0x30] sm:$0xff] %vm629_vm3, %v755_v34 }
 0x28b   :  { %vm1340_vm9 = vcmp.le.f32.partialorder %v2096_v35, -inf }
 0x28c   :  { %v2104_v23 = vsel %vm1340_vm9, -inf, %v2096_v35  ;;  %v761_v9 = vpop.permute.xlu0 %760 }
 0x28d   :  { %vm2519_vm10 = vcmp.ge.f32.partialorder %v2104_v23, -inf  ;;  %763 = vst.msk [vmem:[#allocation4 + $0x30] sm:$0xff] %vm636_vm4, %v761_v9 }
 0x28e   :  { %v1018_v45 = vsel %vm2519_vm10, %v2104_v23, -inf }
 0x28f   :  { %v2111_v40 = vadd.f32 %v1018_v45, %v1013_v39 }
 0x290   :  { %v782_v14 = vpop.permute.xlu0 %781 }
 0x291   :  { %784 = vst.msk [vmem:[#allocation4 + $0x38] sm:$0xff] %vm636_vm4, %v782_v14  ;;  %vm1341_vm11 = vcmp.le.f32.partialorder %v2111_v40, -inf }
 0x292   :  { %v2118_v43 = vsel %vm1341_vm11, -inf, %v2111_v40 }
 0x293   :  { %vm1027_vm12 = vcmp.ge.f32.partialorder %v2118_v43, -inf }
 0x294   :  { %v1053_v41 = vld [vmem:[#allocation4 + $0x30] sm:$0xff]  ;;  %v893_v12 = vpop.permute.xlu0 %892  ;;  %v921_v1 = vpop.permute.xlu1 %920  ;;  %v1028_v3 = vsel %vm1027_vm12, %v2118_v43, -inf }
 0x295   :  { %v2121_v55 = vadd.f32 %v1058_v2, %v1053_v41  ;;  %896 = vst.msk [vmem:[#allocation4 + $0x68] sm:$0xff] %vm615_vm1, %v893_v12 }
 0x296   :  { %898 = vst.msk [vmem:[#allocation4 + $0x68] sm:$0xff] %vm622_vm2, %v2008_v42  ;;  %v1023_v42 = vld [vmem:[#allocation4 + $0x18] sm:$0xff] }
 0x297   :  { %vm1064_vm13 = vcmp.ge.f32.partialorder %v2096_v35, %v2121_v55  ;;  %v2150_v21 = vadd.f32 %v1028_v3, %v1023_v42  ;;  %vm1114_vm6 = vcmp.ge.f32.partialorder %v2121_v55, -inf }
 0x298   :  { %v2134_v6 = vsel %vm1064_vm13, %v2096_v35, %v2121_v55  ;;  %v914_v18 = vpop.permute.xlu0 %913  ;;  %v1063_v46 = vld [vmem:[#allocation4 + $0x38] sm:$0xff]  ;;  %v2186_v56 = vsel %vm1114_vm6, %v2121_v55, -inf }
 0x299   :  { %vm2520_vm14 = vcmp.ge.f32.partialorder %v2134_v6, %v2082_v19  ;;  %917 = vst.msk [vmem:[#allocation4 + $0x70] sm:$0xff] %vm615_vm1, %v914_v18  ;;  %vm1342_vm5 = vcmp.le.f32.partialorder %v2150_v21, -inf  ;;  %vm2522_vm10 = vcmp.ge.f32.partialorder %v2186_v56, -inf }
 0x29a   :  { %v1068_v29 = vsel %vm2520_vm14, %v2134_v6, %v2082_v19  ;;  %923 = vst.msk [vmem:[#allocation4 + $0x70] sm:$0xff] %vm622_vm2, %v921_v1  ;;  %v2179_v27 = vsel %vm1342_vm5, -inf, %v2150_v21  ;;  %v1118_v62 = vsel %vm2522_vm10, %v2186_v56, -inf }
 0x29b   :  { %v2148_v47 = vadd.f32 %v1068_v29, %v1063_v46  ;;  %925 = vst.msk [vmem:[#allocation4 + $0x70] sm:$0xff] %vm629_vm3, %v2013_v48  ;;  %vm1037_vm8 = vcmp.ge.f32.partialorder %v2179_v27, -inf }
 0x29c   :  { %v887_v52 = vpop.permute.xlu1 %886  ;;  %v875_v0 = vpop.permute.xlu0 %874  ;;  %v1038_v44 = vsel %vm1037_vm8, %v2179_v27, -inf }
 0x29d   :  { %vm2524_vm15 = vcmp.ge.f32.partialorder %v2111_v40, %v2148_v47  ;;  %877 = vst.msk [vmem:[#allocation4 + $0x60] sm:$0xff] %vm622_vm2, %v875_v0  ;;  %v2218_v20 = vadd.f32 %v1038_v44, %v1033_v63  ;;  %v1026_v44 = vsel %vm1341_vm11, 0.0, %v1572_v30 }
 0x29e   :  { %v2162_v50 = vsel %vm2524_vm15, %v2111_v40, %v2148_v47 }
 0x29f   :  { %vm2521_vm0 = vcmp.ge.f32.partialorder %v2162_v50, %v2096_v35 }
 0x2a0   :  { %v1078_v48 = vsel %vm2521_vm0, %v2162_v50, %v2096_v35  ;;  %v839_v51 = vpop.permute.xlu1 %838  ;;  %v881_v26 = vpop.permute.xlu0 %880 }
 0x2a1   :  { %841 = vst.msk [vmem:[#allocation4 + $0x50] sm:$0xff] %vm629_vm3, %v839_v51  ;;  %883 = vst.msk [vmem:[#allocation4 + $0x60] sm:$0xff] %vm629_vm3, %v881_v26  ;;  %v2181_v15 = vadd.f32 %v1078_v48, %v1073_v24 }
 0x2a2   :  { %889 = vst.msk [vmem:[#allocation4 + $0x60] sm:$0xff] %vm636_vm4, %v887_v52 }
 0x2a3   :  { %vm2527_vm7 = vcmp.ge.f32.partialorder %v2150_v21, %v2181_v15 }
 0x2a4   :  { %v740_v54 = vpop.permute.xlu1 %739  ;;  %v902_v58 = vpop.permute.xlu0 %901  ;;  %v2198_v61 = vsel %vm2527_vm7, %v2150_v21, %v2181_v15 }
 0x2a5   :  { %742 = vst.msk [vmem:[#allocation4 + $0x28] sm:$0xff] %vm636_vm4, %v740_v54  ;;  %vm2523_vm14 = vcmp.ge.f32.partialorder %v2198_v61, %v2111_v40 }
 0x2a6   :  { %904 = vst.msk [vmem:[#allocation4 + $0x68] sm:$0xff] %vm629_vm3, %v902_v58  ;;  %v1088_v17 = vsel %vm2523_vm14, %v2198_v61, %v2111_v40  ;;  %vm1343_vm14 = vcmp.le.f32.partialorder %v2218_v20, -inf }
 0x2a7   :  { %v2220_v16 = vadd.f32 %v1088_v17, %v1083_v32  ;;  %v1046_v63 = vsel %vm1343_vm14, 0.0, %v1572_v30  ;;  %v2319_v32 = vsel %vm1340_vm9, 0.0, %v1572_v30 }
 0x2a8   :  { %v929_v59 = vpop.permute.xlu1 %928  ;;  %v908_v49 = vpop.permute.xlu0 %907 }
 0x2a9   :  { %v1113_v28 = vld [vmem:[#allocation4 + $0x60] sm:$0xff]  ;;  %931 = vst.msk [vmem:[#allocation4 + $0x70] sm:$0xff] %vm636_vm4, %v929_v59  ;;  %910 = vst.msk [vmem:[#allocation4 + $0x68] sm:$0xff] %vm636_vm4, %v908_v49  ;;  %vm2532_vm11 = vcmp.ge.f32.partialorder %v2218_v20, %v2220_v16 }
 0x2aa   :  { %v2216_v33 = vadd.f32 %v1118_v62, %v1113_v28  ;;  %v1036_v28 = vsel %vm1342_vm5, 0.0, %v1572_v30 }
 0x2ac   :  { %vm2526_vm0 = vcmp.ge.f32.partialorder %v2148_v47, %v2216_v33  ;;  %v851_v7 = vpop.permute.xlu1 %850  ;;  %v948_v8 = vpop.permute.xlu0 %947  ;;  %v1043_v34 = vld [vmem:[#allocation4 + $0x28] sm:$0xff] }
 0x2ad   :  { %v2229_v13 = vsel %vm2526_vm0, %v2148_v47, %v2216_v33  ;;  %854 = vst.msk [vmem:[#allocation4 + $0x58] sm:$0xff] %vm615_vm1, %v851_v7  ;;  %vm2529_vm1 = vcmp.ge.f32.partialorder %v2218_v20, %v2220_v16  ;;  %v2323_v7 = vsel %vm1027_vm12, %v1026_v44, 2.0 }
 0x2ae   :  { %950 = vst.msk [vmem:[#allocation4 + $0x78] sm:$0xff] %vm629_vm3, %v948_v8  ;;  %vm2525_vm10 = vcmp.ge.f32.partialorder %v2229_v13, %v2121_v55  ;;  %v2329_v8 = vsel %vm1064_vm13, 0.0, %v1572_v30  ;;  %vm2533_vm13 = vcmp.ge.f32.partialorder %v2150_v21, %v2181_v15 }
 0x2af   :  { %856 = vst.msk [vmem:[#allocation4 + $0x58] sm:$0xff] %vm622_vm2, %v1968_v60  ;;  %v1128_v22 = vsel %vm2525_vm10, %v2229_v13, %v2121_v55  ;;  %v1045_v60 = vsel %vm1343_vm14, -inf, %v2218_v20  ;;  %vm2534_vm14 = vcmp.ge.f32.partialorder %v2148_v47, %v2216_v33 }
 0x2b0   :  { %952 = vst.msk [vmem:[#allocation4 + $0x78] sm:$0xff] %vm636_vm4, %v1980_v10  ;;  %v1123_v4 = vld [vmem:[#allocation4 + $0x68] sm:$0xff]  ;;  %v860_v25 = vpop.permute.xlu1 %859  ;;  %v845_v11 = vpop.permute.xlu0 %844  ;;  %v2259_v10 = vsel %vm2529_vm1, %v2218_v20, %v2220_v16  ;;  %vm1047_vm10 = vcmp.ge.f32.partialorder %v1045_v60, -inf  ;;  %v1133_v9 = vld [vmem:[#allocation4 + $0x70] sm:$0xff] }
 0x2b1   :  { %v2247_v31 = vadd.f32 %v1128_v22, %v1123_v4  ;;  %862 = vst.msk [vmem:[#allocation4 + $0x58] sm:$0xff] %vm629_vm3, %v860_v25  ;;  %vm2530_vm7 = vcmp.ge.f32.partialorder %v2259_v10, %v2150_v21  ;;  %v1048_v14 = vsel %vm1047_vm10, %v1045_v60, -inf }
 0x2b2   :  { %847 = vst.msk [vmem:[#allocation4 + $0x50] sm:$0xff] %vm636_vm4, %v845_v11  ;;  %v1098_v2 = vsel %vm2530_vm7, %v2259_v10, %v2150_v21  ;;  %v1049_v18 = vadd.f32 %v1048_v14, %v1043_v34  ;;  %v2337_v11 = vsel %vm1114_vm6, 0.0, %v1572_v30 }
 0x2b3   :  { %vm1134_vm15 = vcmp.ge.f32.partialorder %v2181_v15, %v2247_v31 }
 0x2b4   :  { %v2268_v37 = vsel %vm1134_vm15, %v2181_v15, %v2247_v31  ;;  %v866_v38 = vpop.permute.xlu1 %865  ;;  %v959_v53 = vpop.permute.xlu0 %958  ;;  %v1136_v34 = vsel %vm1134_vm15, 0.0, %v1572_v30  ;;  %v1086_v31 = vsel %vm2533_vm13, 0.0, %v1572_v30  ;;  %vm2535_vm15 = vcmp.ge.f32.partialorder %v2259_v10, %v2150_v21 }
 0x2b5   :  { %vm2528_vm0 = vcmp.ge.f32.partialorder %v2268_v37, %v2148_v47  ;;  %868 = vst.msk [vmem:[#allocation4 + $0x58] sm:$0xff] %vm636_vm4, %v866_v38  ;;  %v2343_v38 = vsel %vm1037_vm8, %v1036_v28, 2.0 }
 0x2b6   :  { %961 = vst.msk [vmem:[#allocation4 + $0x80] sm:$0xff] %vm622_vm2, %v959_v53  ;;  %v1138_v39 = vsel %vm2528_vm0, %v2268_v37, %v2148_v47  ;;  %v2346_v53 = vsel %vm1047_vm10, %v1046_v63, 2.0 }
 0x2b7   :  { %v1139_v45 = vadd.f32 %v1138_v39, %v1133_v9  ;;  %v1143_v46 = vld [vmem:[#allocation4 + $0x78] sm:$0xff]  ;;  %v1096_v9 = vsel %vm2532_vm11, 0.0, %v1572_v30  ;;  %vm2539_vm11 = vcmp.ge.f32.partialorder %v2111_v40, %v2148_v47 }
 0x2b8   :  { %v977_v12 = vpop.permute.xlu1 %976  ;;  %v965_v1 = vpop.permute.xlu0 %964 }
 0x2b9   :  { %v1093_v41 = vld [vmem:[#allocation4 + $0x50] sm:$0xff]  ;;  %vm1144_vm2 = vcmp.ge.f32.partialorder %v2220_v16, %v1139_v45  ;;  %967 = vst.msk [vmem:[#allocation4 + $0x80] sm:$0xff] %vm629_vm3, %v965_v1 }
 0x2ba   :  { %v1099_v3 = vadd.f32 %v1098_v2, %v1093_v41  ;;  %v1145_v42 = vsel %vm1144_vm2, %v2220_v16, %v1139_v45  ;;  %v1146_v27 = vsel %vm1144_vm2, 0.0, %v1572_v30 }
 0x2bb   :  { %vm2531_vm0 = vcmp.ge.f32.partialorder %v1145_v42, %v2181_v15  ;;  %vm2537_vm5 = vcmp.ge.f32.partialorder %v1145_v42, %v2181_v15 }
 0x2bc   :  { %vm1104_vm1 = vcmp.ge.f32.partialorder %v1049_v18, %v1099_v3  ;;  %v1148_v29 = vsel %vm2531_vm0, %v1145_v42, %v2181_v15  ;;  %v971_v0 = vpop.permute.xlu0 %970  ;;  %v992_v26 = vpop.permute.xlu1 %991  ;;  %v1103_v58 = vld [vmem:[#allocation4 + $0x58] sm:$0xff] }
 0x2bd   :  { %v1105_v52 = vsel %vm1104_vm1, %v1049_v18, %v1099_v3  ;;  %v1149_v48 = vadd.f32 %v1148_v29, %v1143_v46  ;;  %973 = vst.msk [vmem:[#allocation4 + $0x80] sm:$0xff] %vm636_vm4, %v971_v0  ;;  %v1106_v43 = vsel %vm1104_vm1, 0.0, %v1572_v30  ;;  %v2387_v18 = vsel %vm2537_vm5, %v1146_v27, 2.0 }
 0x2be   :  { %vm1107_vm3 = vcmp.ge.f32.partialorder %v1105_v52, %v2218_v20 }
 0x2bf   :  { %vm1154_vm7 = vcmp.ge.f32.partialorder %v1099_v3, %v1149_v48  ;;  %v1108_v54 = vsel %vm1107_vm3, %v1105_v52, %v2218_v20  ;;  %v2363_v14 = vsel %vm1107_vm3, %v1106_v43, 2.0  ;;  %v2378_v20 = vsel %vm2535_vm15, %v1096_v9, 2.0 }
 0x2c0   :  { %v986_v51 = vpop.permute.xlu0 %985  ;;  %v1155_v24 = vsel %vm1154_vm7, %v1099_v3, %v1149_v48  ;;  %v1109_v17 = vadd.f32 %v1108_v54, %v1103_v58  ;;  %v1156_v22 = vsel %vm1154_vm7, 0.0, %v1572_v30  ;;  %vm1213_vm8 = vcmp.eq.f32.partialorder %v2363_v14, 1.0 }
 0x2c1   :  { %vm1157_vm0 = vcmp.ge.f32.partialorder %v1155_v24, %v2220_v16  ;;  %vm1270_vm1 = vcmp.eq.f32.partialorder %v2363_v14, 0.0  ;;  %vm1186_vm3 = vcmp.eq.f32.partialorder %v2387_v18, 1.0  ;;  %v1076_v48 = vsel %vm2539_vm11, 0.0, %v1572_v30 }
 0x2c2   :  { %v1158_v59 = vsel %vm1157_vm0, %v1155_v24, %v2220_v16  ;;  %v1160_v60 = vsel %vm1157_vm0, %v1156_v22, 2.0  ;;  %v1126_v16 = vsel %vm2534_vm14, 0.0, %v1572_v30  ;;  %vm2536_vm0 = vcmp.ge.f32.partialorder %v2268_v37, %v2148_v47 }
 0x2c3   :  { %v2383_v1 = vsel %vm2536_vm0, %v1136_v34, 2.0  ;;  %vm1180_vm6 = vcmp.eq.f32.partialorder %v1160_v60, 1.0  ;;  %vm1210_vm7 = vcmp.eq.f32.partialorder %v1160_v60, 0.0  ;;  %vm1225_vm13 = vcmp.eq.f32.partialorder %v2378_v20, 1.0 }
 0x2c4   :  { %v1153_v49 = vld [vmem:[#allocation4 + $0x80] sm:$0xff]  ;;  %vm2540_vm14 = vcmp.ge.f32.partialorder %v2198_v61, %v2111_v40  ;;  %vm1291_vm15 = vcmp.eq.f32.partialorder %v2343_v38, 1.0  ;;  %vm1276_vm5 = vcmp.eq.f32.partialorder %v2378_v20, 0.0  ;;  %vm2542_vm11 = vcmp.ge.f32.partialorder %v2186_v56, -inf }
 0x2c5   :  { %v1159_v62 = vadd.f32 %v1158_v59, %v1153_v49  ;;  %v1120_v9 = vsel %vm2542_vm11, %v2337_v11, 2.0  ;;  %vm1326_vm11 = vcmp.eq.f32.partialorder %v2091_v5, 1.0 }
 0x2c7   :  { %vm1163_vm4 = vcmp.ge.f32.partialorder %v1109_v17, %v1159_v62 }
 0x2c8   :  { %v1164_v4 = vsel %vm1163_vm4, %v1109_v17, %v1159_v62  ;;  %v1165_v25 = vsel %vm1163_vm4, 0.0, %v1572_v30  ;;  %vm1222_vm4 = vcmp.eq.f32.partialorder %v2387_v18, 0.0 }
 0x2c9   :  { %vm1166_vm9 = vcmp.ge.f32.partialorder %v1164_v4, %v1099_v3 }
 0x2ca   :  { %v1167_v39 = vsel %vm1166_vm9, %v1165_v25, 2.0  ;;  %vm2538_vm9 = vcmp.ge.f32.partialorder %v2229_v13, %v2121_v55  ;;  %v2423_v13 = vsel %vm2540_vm14, %v1086_v31, 2.0 }
 0x2cb   :  { %vm1174_vm10 = vcmp.eq.f32.partialorder %v1167_v39, 1.0  ;;  %vm1204_vm12 = vcmp.eq.f32.partialorder %v1167_v39, 0.0  ;;  %vm1216_vm2 = vcmp.eq.f32.partialorder %v1167_v39, 2.0  ;;  %v2402_v29 = vsel %vm2538_vm9, %v1126_v16, 2.0 }
 0x2cc   :  { %v1175_v2 = vsel %vm1174_vm10, 1.0, %v1568_v36  ;;  %v1205_v41 = vsel %vm1204_vm12, 1.0, %v1568_v36  ;;  %vm1279_vm10 = vcmp.eq.f32.partialorder %v2346_v53, 1.0  ;;  %v1217_v55 = vsel %vm1216_vm2, 1.0, %v1568_v36 }
 0x2cd   :  { %v1176_v45 = vmax.f32 %v1175_v2, 0.0  ;;  %v1206_v12 = vmax.f32 %v1205_v41, 0.0  ;;  %vm1192_vm12 = vcmp.eq.f32.partialorder %v2383_v1, 1.0  ;;  %vm1198_vm0 = vcmp.eq.f32.partialorder %v2402_v29, 1.0 }
 0x2ce   :  { %vm1237_vm2 = vcmp.eq.f32.partialorder %v2423_v13, 1.0  ;;  %vm1240_vm9 = vcmp.eq.f32.partialorder %v2387_v18, 2.0 }
 0x2cf   :  { %1345 = vst [vmem:[%s2518_s2 + $0x80] sm:$0xff] %v1176_v45  ;;  %v1181_v21 = vsel %vm1180_vm6, %v1176_v45, 0.0  ;;  %1350 = vst [vmem:[%s2518_s2 + $0x58] sm:$0xff] %v1206_v12  ;;  %v1211_v33 = vsel %vm1210_vm7, %v1176_v45, 0.0  ;;  %v1271_v37 = vsel %vm1270_vm1, %v1206_v12, 0.0  ;;  %v1214_v3 = vsel %vm1213_vm8, %v1206_v12, 0.0 }
 0x2d0   :  { %v1182_v10 = vmax.f32 %v1181_v21, 0.0  ;;  %v1212_v15 = vmax.f32 %v1211_v33, 0.0  ;;  %v1272_v42 = vmax.f32 %v1271_v37, 0.0  ;;  %vm1234_vm6 = vcmp.eq.f32.partialorder %v2383_v1, 0.0 }
 0x2d1   :  { %vm1228_vm7 = vcmp.eq.f32.partialorder %v1160_v60, 2.0  ;;  %vm2541_vm8 = vcmp.ge.f32.partialorder %v2162_v50, %v2096_v35  ;;  %vm1282_vm1 = vcmp.eq.f32.partialorder %v2363_v14, 2.0 }
 0x2d2   :  { %1346 = vst [vmem:[%s2518_s2 + $0x78] sm:$0xff] %v1182_v10  ;;  %v1187_v46 = vsel %vm1186_vm3, %v1182_v10, 0.0  ;;  %v1215_v52 = vmax.f32 %v1212_v15, %v1214_v3  ;;  %v1223_v0 = vsel %vm1222_vm4, %v1182_v10, 0.0  ;;  %1356 = vst [vmem:[%s2518_s2 + $0x28] sm:$0xff] %v1272_v42  ;;  %v2443_v44 = vsel %vm2541_vm8, %v1076_v48, 2.0 }
 0x2d3   :  { %v2412_v51 = vmax.f32 %v1187_v46, 0.0  ;;  %v1224_v47 = vmax.f32 %v1223_v0, 0.0  ;;  %v1229_v49 = vsel %vm1228_vm7, %v1176_v45, 0.0  ;;  %v1280_v17 = vsel %vm1279_vm10, %v1272_v42, 0.0 }
 0x2d4   :  { %v1218_v30 = vmax.f32 %v1215_v52, %v1217_v55  ;;  %vm1288_vm3 = vcmp.eq.f32.partialorder %v2423_v13, 0.0  ;;  %v1283_v63 = vsel %vm1282_vm1, %v1206_v12, 0.0  ;;  %vm1246_vm4 = vcmp.eq.f32.partialorder %v2402_v29, 0.0 }
 0x2d5   :  { %1347 = vst [vmem:[%s2518_s2 + $0x70] sm:$0xff] %v2412_v51  ;;  %v1193_v36 = vsel %vm1192_vm12, %v2412_v51, 0.0  ;;  %v1235_v54 = vsel %vm1234_vm6, %v2412_v51, 0.0  ;;  %vm1303_vm10 = vcmp.eq.f32.partialorder %v2323_v7, 1.0  ;;  %v1241_v39 = vsel %vm1240_vm9, %v1182_v10, 0.0 }
 0x2d6   :  { %v2434_v40 = vmax.f32 %v1193_v36, 0.0  ;;  %1351 = vst [vmem:[%s2518_s2 + $0x50] sm:$0xff] %v1218_v30  ;;  %v1226_v61 = vsel %vm1225_vm13, %v1218_v30, 0.0  ;;  %v1277_v26 = vsel %vm1276_vm5, %v1218_v30, 0.0  ;;  %v1236_v50 = vmax.f32 %v1235_v54, 0.0 }
 0x2d7   :  { %v1227_v24 = vmax.f32 %v1224_v47, %v1226_v61  ;;  %v1278_v58 = vmax.f32 %v1277_v26, 0.0  ;;  %vm2543_vm12 = vcmp.ge.f32.partialorder %v2134_v6, %v2082_v19  ;;  %vm1294_vm13 = vcmp.eq.f32.partialorder %v2378_v20, 2.0 }
 0x2d8   :  { %1348 = vst [vmem:[%s2518_s2 + $0x68] sm:$0xff] %v2434_v40  ;;  %v1199_v59 = vsel %vm1198_vm0, %v2434_v40, 0.0  ;;  %v1247_v53 = vsel %vm1246_vm4, %v2434_v40, 0.0  ;;  %v1070_v60 = vsel %vm2543_vm12, %v2329_v8, 2.0  ;;  %vm1249_vm14 = vcmp.eq.f32.partialorder %v2443_v44, 1.0 }
 0x2d9   :  { %v1200_v62 = vmax.f32 %v1199_v59, 0.0  ;;  %v1230_v28 = vmax.f32 %v1227_v24, %v1229_v49  ;;  %v1281_v35 = vmax.f32 %v1278_v58, %v1280_v17  ;;  %vm1300_vm0 = vcmp.eq.f32.partialorder %v2443_v44, 0.0 }
 0x2da   :  { %v1248_v11 = vmax.f32 %v1247_v53, 0.0  ;;  %v1295_v31 = vsel %vm1294_vm13, %v1218_v30, 0.0  ;;  %vm1258_vm5 = vcmp.eq.f32.partialorder %v1120_v9, 0.0  ;;  %vm2544_vm6 = vcmp.ge.f32.partialorder %v2104_v23, -inf }
 0x2db   :  { %1349 = vst [vmem:[%s2518_s2 + $0x60] sm:$0xff] %v1200_v62  ;;  %1352 = vst [vmem:[%s2518_s2 + $0x48] sm:$0xff] %v1230_v28  ;;  %v1238_v22 = vsel %vm1237_vm2, %v1230_v28, 0.0  ;;  %v1284_v4 = vmax.f32 %v1281_v35, %v1283_v63  ;;  %v1289_v25 = vsel %vm1288_vm3, %v1230_v28, 0.0  ;;  %v1259_v6 = vsel %vm1258_vm5, %v1200_v62, 0.0 }
 0x2dc   :  { %v1239_v43 = vmax.f32 %v1236_v50, %v1238_v22  ;;  %v1290_v34 = vmax.f32 %v1289_v25, 0.0  ;;  %v1020_v45 = vsel %vm2544_vm6, %v2319_v32, 2.0  ;;  %vm1306_vm7 = vcmp.eq.f32.partialorder %v2423_v13, 2.0 }
 0x2dd   :  { %1357 = vst [vmem:[%s2518_s2 + $0x20] sm:$0xff] %v1284_v4  ;;  %v1292_v27 = vsel %vm1291_vm15, %v1284_v4, 0.0  ;;  %vm1252_vm15 = vcmp.eq.f32.partialorder %v2383_v1, 2.0  ;;  %vm1261_vm8 = vcmp.eq.f32.partialorder %v1070_v60, 1.0  ;;  %vm1312_vm1 = vcmp.eq.f32.partialorder %v1070_v60, 0.0 }
 0x2de   :  { %v1242_v14 = vmax.f32 %v1239_v43, %v1241_v39  ;;  %v1293_v56 = vmax.f32 %v1290_v34, %v1292_v27  ;;  %v1253_v16 = vsel %vm1252_vm15, %v2412_v51, 0.0  ;;  %v1260_v18 = vmax.f32 %v1259_v6, 0.0 }
 0x2df   :  { %v1307_v21 = vsel %vm1306_vm7, %v1230_v28, 0.0  ;;  %vm1264_vm2 = vcmp.eq.f32.partialorder %v2402_v29, 2.0  ;;  %vm1315_vm3 = vcmp.eq.f32.partialorder %v1020_v45, 1.0  ;;  %vm1318_vm4 = vcmp.eq.f32.partialorder %v2443_v44, 2.0 }
 0x2e0   :  { %1353 = vst [vmem:[%s2518_s2 + $0x40] sm:$0xff] %v1242_v14  ;;  %v1250_v38 = vsel %vm1249_vm14, %v1242_v14, 0.0  ;;  %v1296_v2 = vmax.f32 %v1293_v56, %v1295_v31  ;;  %v1301_v41 = vsel %vm1300_vm0, %v1242_v14, 0.0  ;;  %v1265_v15 = vsel %vm1264_vm2, %v2434_v40, 0.0 }
 0x2e1   :  { %v1251_v19 = vmax.f32 %v1248_v11, %v1250_v38  ;;  %v1302_v8 = vmax.f32 %v1301_v41, 0.0  ;;  %vm1323_vm9 = vcmp.eq.f32.partialorder %v2094_v57, 0.0  ;;  %v1319_v46 = vsel %vm1318_vm4, %v1242_v14, 0.0 }
 0x2e2   :  { %1358 = vst [vmem:[%s2518_s2 + $0x18] sm:$0xff] %v1296_v2  ;;  %v1304_v20 = vsel %vm1303_vm10, %v1296_v2, 0.0  ;;  %vm1329_vm10 = vcmp.eq.f32.partialorder %v1070_v60, 2.0 }
 0x2e3   :  { %v1254_v12 = vmax.f32 %v1251_v19, %v1253_v16  ;;  %v1305_v1 = vmax.f32 %v1302_v8, %v1304_v20 }
 0x2e5   :  { %1354 = vst [vmem:[%s2518_s2 + $0x38] sm:$0xff] %v1254_v12  ;;  %v1262_v33 = vsel %vm1261_vm8, %v1254_v12, 0.0  ;;  %v1308_v10 = vmax.f32 %v1305_v1, %v1307_v21  ;;  %v1313_v7 = vsel %vm1312_vm1, %v1254_v12, 0.0  ;;  %v1330_v55 = vsel %vm1329_vm10, %v1254_v12, 0.0 }
 0x2e6   :  { %v1263_v23 = vmax.f32 %v1260_v18, %v1262_v33  ;;  %v1314_v32 = vmax.f32 %v1313_v7, 0.0 }
 0x2e7   :  { %1359 = vst [vmem:[%s2518_s2 + $0x10] sm:$0xff] %v1308_v10  ;;  %v1316_v37 = vsel %vm1315_vm3, %v1308_v10, 0.0 }
 0x2e8   :  { %v1266_v3 = vmax.f32 %v1263_v23, %v1265_v15  ;;  %v1317_v42 = vmax.f32 %v1314_v32, %v1316_v37 }
 0x2ea   :  { %1355 = vst [vmem:[%s2518_s2 + $0x30] sm:$0xff] %v1266_v3  ;;  %v1320_v29 = vmax.f32 %v1317_v42, %v1319_v46  ;;  %v1324_v52 = vsel %vm1323_vm9, %v1266_v3, 0.0 }
 0x2eb   :  { %v1325_v0 = vmax.f32 %v1324_v52, 0.0 }
 0x2ec   :  { %1360 = vst [vmem:[%s2518_s2 + $0x8] sm:$0xff] %v1320_v29  ;;  %v1327_v48 = vsel %vm1326_vm11, %v1320_v29, 0.0 }
 0x2ed   :  { %v1328_v51 = vmax.f32 %v1325_v0, %v1327_v48 }
 0x2ef   :  { %v1331_v13 = vmax.f32 %v1328_v51, %v1330_v55 }
 0x2f1   :  { %1332 = vst [vmem:[%s2518_s2] sm:$0xff] %v1331_v13 }
 0x2f2   :  { %1337 = vsyncpa [#allocation7], 1 }
 0x2f3   :  { %1338 = vsyncpa [#allocation9], 1 }

</bundles_post_ra>
